<compile_context>
chip_gen: v7x
topology: tpu7x:2x2x1
jax: 0.10.0
libtpu: 0.0.40
codegen_flags: <defaults>
</compile_context>

<pallas_src>
import functools
import math

import jax
import jax.numpy as jnp
import numpy as np
from jax import lax
from jax.experimental import pallas as pl
from jax.experimental.pallas import tpu as pltpu


# -----------------------------------------------------------------------------
# Pallas kernel: conv1x1 -> BN -> ReLU -> conv3x3(pad=1) -> BN -> ReLU
#                -> conv1x1 -> BN -> (+residual) -> ReLU, for B images.
# -----------------------------------------------------------------------------
def _bottleneck_kernel(x_ref, w1_ref, w2_ref, w3_ref, b1_ref, b2_ref, b3_ref,
                       o_ref, pad_ref, *, B, H, W):
    HW = H * W
    P = w2_ref.shape[1]
    Cin = x_ref.shape[-1]
    Wp = pad_ref.shape[2]

    # --- conv1 (1x1, BN scale folded into weight) + bias + ReLU --------------
    x_bf = x_ref[...].reshape(B * HW, Cin)                        # bf16
    h1 = jnp.dot(x_bf, w1_ref[...], preferred_element_type=jnp.float32)
    h1 = jnp.maximum(h1 + b1_ref[...], 0.0)                       # (B*HW, P)

    # --- conv2 (3x3, stride 1, pad 1) via a zero-padded bf16 scratch ---------
    # Zero only the 1-pixel border; the interior is fully overwritten below.
    zrow = jnp.zeros((B, 1, Wp, P), pad_ref.dtype)
    zcol = jnp.zeros((B, H + 2, 1, P), pad_ref.dtype)
    pad_ref[:, 0:1, :, :] = zrow
    pad_ref[:, H + 1:H + 2, :, :] = zrow
    pad_ref[:, :, 0:1, :] = zcol
    pad_ref[:, :, W + 1:W + 2, :] = zcol
    # Single f32 -> bf16 cast of the stage-1 activations (not 9x via im2col).
    pad_ref[:, 1:H + 1, 1:W + 1, :] = h1.astype(pad_ref.dtype).reshape(B, H, W, P)

    taps = []
    for kh in range(3):
        for kw in range(3):
            tap = pad_ref[:, kh:kh + H, kw:kw + W, :]             # bf16 (B,H,W,P)
            taps.append(tap.reshape(B * HW, P))

    if P >= 128:
        # No materialized patch: 9 accumulating K=P matmuls into an f32 acc.
        h2 = jnp.zeros((B * HW, P), jnp.float32)
        for t, tap in enumerate(taps):
            h2 = h2 + jnp.dot(tap, w2_ref[t * P:(t + 1) * P, :],
                              preferred_element_type=jnp.float32)
    else:
        # Small P: single K=9P matmul keeps the systolic array fed (v5e/v6e).
        patch = jnp.concatenate(taps, axis=-1)                    # bf16 (B*HW,9P)
        h2 = jnp.dot(patch, w2_ref[...], preferred_element_type=jnp.float32)
    h2 = jnp.maximum(h2 + b2_ref[...], 0.0)

    # --- conv3 (1x1) + bias + residual + ReLU --------------------------------
    h3 = jnp.dot(h2.astype(jnp.bfloat16), w3_ref[...],
                 preferred_element_type=jnp.float32)              # (B*HW, Cout)
    h3 = h3 + b3_ref[...]
    # Re-read the residual here instead of keeping it live across 3 matmuls.
    res = x_ref[...].reshape(B * HW, Cin).astype(jnp.float32)
    out = jnp.maximum(h3 + res, 0.0)
    o_ref[...] = out.reshape(o_ref.shape).astype(o_ref.dtype)


# -----------------------------------------------------------------------------
# Host-side helpers (plain JAX / Python glue).
# -----------------------------------------------------------------------------
def _fold_bn(gamma, beta, mean, var, eps):
    scale = gamma / jnp.sqrt(var + eps)
    bias = beta - mean * scale
    return scale, bias


def _chip_info():
    """Return (tensorcores_per_chip, per-core VMEM capacity bytes), conservative."""
    kind = ""
    try:
        kind = jax.devices()[0].device_kind.lower()
    except Exception:
        pass
    cores = 2 if "7" in kind else 1            # v7x: 2 TensorCores per chip
    cap = 64 * 1024 * 1024                     # conservative default (v7x per-TC)
    try:
        info = pltpu.get_tpu_info()
        c = int(getattr(info, "vmem_capacity_bytes", 0) or 0)
        if c > 0:
            cap = c
    except Exception:
        pass
    if cores > 1:
        cap = min(cap, 64 * 1024 * 1024)       # v7x VMEM is per-TensorCore
    return cores, cap


def _per_image_vmem_bytes(H, W, Wp, cin, p, cout):
    """Honest-ish working-set estimate per image (bf16 I/O + bf16 scratch)."""
    hw = H * W
    b = 2 * hw * cin * 2                       # bf16 x block, double-buffered
    b += 2 * hw * cout * 2                     # bf16 out block, double-buffered
    b += (H + 2) * Wp * p * 2                  # bf16 padded scratch
    if p < 128:
        b += hw * 9 * p * 2                    # bf16 im2col patch (concat path)
    b += hw * (2 * p + 2 * cout + cin) * 4     # f32 h1/h2/h3/out + residual
    return b


def _choose_batch_block(n, hw, per_img_bytes, vmem_budget, target_rows, min_steps):
    b = max(1, min(n, max(1, target_rows // max(hw, 1))))
    b = max(1, min(b, max(1, vmem_budget // max(per_img_bytes, 1))))
    min_steps = max(1, min(min_steps, n))
    while b > 1 and -(-n // b) < min_steps:    # keep enough grid steps per core
        b -= 1
    while n % b != 0:                          # evenly divide the batch
        b -= 1
    return b


def bottleneck_forward(x_nchw, wt1, wt2, wt3, bn1, bn2, bn3, eps=1e-5):
    """Fused Bottleneck forward (eval mode), stride=1 / downsample=None."""
    N, Cin, H, W = x_nchw.shape
    P = wt1.shape[0]
    Cout = wt3.shape[0]
    HW = H * W
    assert Cin == Cout == 4 * P, (
        "kernel supports stride=1 / downsample=None (inplanes == planes*4)")
    assert wt2.shape == (P, P, 3, 3)

    # Fold BN scales into conv weights (in f32); keep only per-channel biases.
    s1, b1 = _fold_bn(*bn1, eps)
    s2, b2 = _fold_bn(*bn2, eps)
    s3, b3 = _fold_bn(*bn3, eps)

    w1 = (jnp.transpose(wt1[:, :, 0, 0], (1, 0)) * s1[None, :]
          ).astype(jnp.bfloat16)                                    # (Cin, P)
    w2 = (jnp.transpose(wt2, (2, 3, 1, 0)).reshape(9 * P, P)
          * s2[None, :]).astype(jnp.bfloat16)                       # (9P, P)
    w3 = (jnp.transpose(wt3[:, :, 0, 0], (1, 0)) * s3[None, :]
          ).astype(jnp.bfloat16)                                    # (P, Cout)

    b1 = b1.reshape(1, P).astype(jnp.float32)
    b2 = b2.reshape(1, P).astype(jnp.float32)
    b3 = b3.reshape(1, Cout).astype(jnp.float32)

    # bf16 at the HBM boundary: halves x/out DMA bytes of a memory-bound block.
    # TODO(synk): the NCHW<->channels-last transposes are kept only for API
    #             parity with the PyTorch module; in a full ResNet keep
    #             activations channels-last between blocks and drop them.
    x = jnp.transpose(x_nchw, (0, 2, 3, 1)).reshape(N, HW, Cin).astype(jnp.bfloat16)

    Wp = -(-(W + 2) // 8) * 8                  # sublane-aligned scratch row pitch
    cores, vmem_cap = _chip_info()
    per_img = _per_image_vmem_bytes(H, W, Wp, Cin, P, Cout)
    weight_bytes = 2 * (w1.size + w2.size + w3.size) + 4 * (b1.size + b2.size + b3.size)

    vmem_budget = min(int(0.65 * vmem_cap), 96 * 1024 * 1024)
    target_rows = 2048 if cores > 1 else 4096
    min_steps = min(N, 2 * cores) if cores > 1 else 1   # >=2 steps per TC on v7x
    B = _choose_batch_block(N, HW, per_img,
                            max(per_img, vmem_budget - 2 * weight_bytes),
                            target_rows, min_steps)
    grid = (N // B,)

    vmem_est = B * per_img + 2 * weight_bytes
    vmem_limit = int(max(16 * 1024 * 1024,
                         min(min(100 * 1024 * 1024, int(0.8 * vmem_cap)),
                             2 * vmem_est)))

    kernel = functools.partial(_bottleneck_kernel, B=B, H=H, W=W)

    def _run(buffered_weights):
        def wspec(shape):
            if buffered_weights:
                return pl.BlockSpec(shape, lambda n: (0,) * len(shape),
                                    pipeline_mode=pl.Buffered(1))
            return pl.BlockSpec(shape, lambda n: (0,) * len(shape))

        grid_spec = pltpu.PrefetchScalarGridSpec(
            num_scalar_prefetch=0,
            grid=grid,
            in_specs=[
                pl.BlockSpec((B, HW, Cin), lambda n: (n, 0, 0)),    # x (bf16)
                wspec((Cin, P)),                                    # w1 (bf16)
                wspec((9 * P, P)),                                  # w2 (bf16)
                wspec((P, Cout)),                                   # w3 (bf16)
                wspec((1, P)),                                      # b1 (f32)
                wspec((1, P)),                                      # b2 (f32)
                wspec((1, Cout)),                                   # b3 (f32)
            ],
            out_specs=pl.BlockSpec((B, HW, Cout), lambda n: (n, 0, 0)),
            scratch_shapes=[pltpu.VMEM((B, H + 2, Wp, P), jnp.bfloat16)],
        )
        return pl.pallas_call(
            kernel,
            out_shape=jax.ShapeDtypeStruct((N, HW, Cout), jnp.bfloat16),
            grid_spec=grid_spec,
            compiler_params=pltpu.CompilerParams(
                dimension_semantics=("parallel",),
                vmem_limit_bytes=vmem_limit),
        )(x, w1, w2, w3, b1, b2, b3)

    try:
        # Grid-constant weights/biases never re-fetch: single-buffer them to
        # save VMEM (matters most on v7x's 64 MiB per core).
        out = jax.block_until_ready(_run(True))
    except Exception:
        out = _run(False)

    out = jnp.transpose(out.reshape(N, H, W, Cout), (0, 3, 1, 2))
    return out.astype(x_nchw.dtype)


# -----------------------------------------------------------------------------
# Pure-JAX reference (mirrors the PyTorch forward in eval mode), for checking.
# -----------------------------------------------------------------------------
def _bn(x, gamma, beta, mean, var, eps=1e-5):
    g = gamma.reshape(1, -1, 1, 1)
    b = beta.reshape(1, -1, 1, 1)
    m = mean.reshape(1, -1, 1, 1)
    v = var.reshape(1, -1, 1, 1)
    return g * (x - m) * lax.rsqrt(v + eps) + b


def _conv_nchw(x, w, padding):
    return lax.conv_general_dilated(
        x, w, window_strides=(1, 1), padding=padding,
        dimension_numbers=("NCHW", "OIHW", "NCHW"))


def bottleneck_reference(x, wt1, wt2, wt3, bn1, bn2, bn3, eps=1e-5):
    out = _bn(_conv_nchw(x, wt1, "VALID"), *bn1, eps=eps)
    out = jnp.maximum(out, 0.0)
    out = _bn(_conv_nchw(out, wt2, [(1, 1), (1, 1)]), *bn2, eps=eps)
    out = jnp.maximum(out, 0.0)
    out = _bn(_conv_nchw(out, wt3, "VALID"), *bn3, eps=eps)
    return jnp.maximum(out + x, 0.0)


# -----------------------------------------------------------------------------
if __name__ == "__main__":
    def _bn_params(k, c):
        k1, k2, k3, k4 = jax.random.split(k, 4)
        gamma = jax.random.uniform(k1, (c,), jnp.float32, 0.5, 1.5)
        beta = 0.1 * jax.random.normal(k2, (c,), jnp.float32)
        mean = 0.1 * jax.random.normal(k3, (c,), jnp.float32)
        var = jax.random.uniform(k4, (c,), jnp.float32, 0.5, 1.5)
        return gamma, beta, mean, var

    def _run_case(key, planes, H, W, N=2, eps=1e-5):
        inplanes = planes * 4
        ks = jax.random.split(key, 7)
        # PyTorch-style OIHW conv weights, fan-in scaled to keep values O(1).
        wt1 = (1.0 / math.sqrt(inplanes)) * jax.random.normal(
            ks[0], (planes, inplanes, 1, 1), jnp.float32)
        wt2 = (1.0 / math.sqrt(9 * planes)) * jax.random.normal(
            ks[1], (planes, planes, 3, 3), jnp.float32)
        wt3 = (1.0 / math.sqrt(planes)) * jax.random.normal(
            ks[2], (inplanes, planes, 1, 1), jnp.float32)
        bn1 = _bn_params(ks[3], planes)
        bn2 = _bn_params(ks[4], planes)
        bn3 = _bn_params(ks[5], inplanes)
        x = jax.random.normal(ks[6], (N, inplanes, H, W), jnp.float32)

        out = jax.block_until_ready(
            bottleneck_forward(x, wt1, wt2, wt3, bn1, bn2, bn3, eps=eps))
        ref = jax.block_until_ready(
            bottleneck_reference(x, wt1, wt2, wt3, bn1, bn2, bn3, eps=eps))
        # bf16 I/O + bf16 matmul operands with f32 accumulation -> loose tol.
        np.testing.assert_allclose(np.asarray(out), np.asarray(ref),
                                   rtol=5e-2, atol=5e-2)

    key = jax.random.PRNGKey(0)
    k1, k2 = jax.random.split(key)
    # Small P: exercises the single K=9P im2col-concat matmul path.
    _run_case(k1, planes=32, H=8, W=8)
    # P >= 128: exercises the 9 accumulating K=P matmuls (no patch) path.
    _run_case(k2, planes=128, H=4, W=4)
    print("KERNEL_OK")
</pallas_src>

<mosaic_0001>
module attributes {stable_mosaic.version = 11 : i64} {
  func.func @_bottleneck_kernel(%arg0: i32, %arg1: memref<2x64x128xbf16, #tpu.memory_space<vmem>>, %arg2: memref<128x32xbf16, #tpu.memory_space<vmem>>, %arg3: memref<288x32xbf16, #tpu.memory_space<vmem>>, %arg4: memref<32x128xbf16, #tpu.memory_space<vmem>>, %arg5: memref<1x32xf32, #tpu.memory_space<vmem>>, %arg6: memref<1x32xf32, #tpu.memory_space<vmem>>, %arg7: memref<1x128xf32, #tpu.memory_space<vmem>>, %arg8: memref<2x64x128xbf16, #tpu.memory_space<vmem>>, %arg9: memref<2x10x16x32xbf16, #tpu.memory_space<vmem>>) attributes {dimension_semantics = [#tpu.dimension_semantics<parallel>], iteration_bounds = array<i64: 1>, scalar_prefetch = 0 : i64, scratch_operands = 1 : i64, tpu.core_type = #tpu.core_type<tc>, window_params = [{transform_indices = @transform_0, window_bounds = array<i64: 2, 64, 128>}, {pipeline_mode = #tpu.pipeline_mode<synchronous>, transform_indices = @transform_1, window_bounds = array<i64: 128, 32>}, {pipeline_mode = #tpu.pipeline_mode<synchronous>, transform_indices = @transform_2, window_bounds = array<i64: 288, 32>}, {pipeline_mode = #tpu.pipeline_mode<synchronous>, transform_indices = @transform_3, window_bounds = array<i64: 32, 128>}, {pipeline_mode = #tpu.pipeline_mode<synchronous>, transform_indices = @transform_4, window_bounds = array<i64: 1, 32>}, {pipeline_mode = #tpu.pipeline_mode<synchronous>, transform_indices = @transform_5, window_bounds = array<i64: 1, 32>}, {pipeline_mode = #tpu.pipeline_mode<synchronous>, transform_indices = @transform_6, window_bounds = array<i64: 1, 128>}, {transform_indices = @transform_7, window_bounds = array<i64: 2, 64, 128>}]} {
    %c0 = arith.constant 0 : index
    %c0_0 = arith.constant 0 : index
    %c0_1 = arith.constant 0 : index
    %0 = vector.load %arg1[%c0, %c0_0, %c0_1] : memref<2x64x128xbf16, #tpu.memory_space<vmem>>, vector<2x64x128xbf16>
    %1 = vector.shape_cast %0 : vector<2x64x128xbf16> to vector<128x128xbf16>
    %c0_2 = arith.constant 0 : index
    %c0_3 = arith.constant 0 : index
    %2 = vector.load %arg2[%c0_2, %c0_3] : memref<128x32xbf16, #tpu.memory_space<vmem>>, vector<128x32xbf16>
    %cst = arith.constant dense<0.000000e+00> : vector<128x32xf32>
    %3 = tpu.matmul %1, %2, %cst {dimension_numbers = #tpu.dot_dimension_numbers<[1], [0], [0], [1], [0, 0, 1, 1], [], []>} : vector<128x128xbf16>, vector<128x32xbf16>, vector<128x32xf32> -> vector<128x32xf32>
    %c0_4 = arith.constant 0 : index
    %c0_5 = arith.constant 0 : index
    %4 = vector.load %arg5[%c0_4, %c0_5] : memref<1x32xf32, #tpu.memory_space<vmem>>, vector<1x32xf32>
    %5 = vector.broadcast %4 : vector<1x32xf32> to vector<128x32xf32>
    %6 = arith.addf %3, %5 : vector<128x32xf32>
    %cst_6 = arith.constant 0.000000e+00 : f32
    %7 = vector.broadcast %cst_6 : f32 to vector<128x32xf32>
    %8 = arith.maximumf %6, %7 : vector<128x32xf32>
    %cst_7 = arith.constant 0.000000e+00 : bf16
    %9 = vector.broadcast %cst_7 : bf16 to vector<2x1x16x32xbf16>
    %cst_8 = arith.constant 0.000000e+00 : bf16
    %10 = vector.broadcast %cst_8 : bf16 to vector<2x10x1x32xbf16>
    %c0_9 = arith.constant 0 : index
    %c0_10 = arith.constant 0 : index
    %c0_11 = arith.constant 0 : index
    %c0_12 = arith.constant 0 : index
    %11 = vector.load %arg9[%c0_9, %c0_10, %c0_11, %c0_12] : memref<2x10x16x32xbf16, #tpu.memory_space<vmem>>, vector<2x1x16x32xbf16>
    tpu.vector_store %arg9[%c0_9, %c0_10, %c0_11, %c0_12], %9 {strides = array<i32>} : memref<2x10x16x32xbf16, #tpu.memory_space<vmem>>, vector<2x1x16x32xbf16>,
    %c0_13 = arith.constant 0 : index
    %c9 = arith.constant 9 : index
    %c0_14 = arith.constant 0 : index
    %c0_15 = arith.constant 0 : index
    %12 = vector.load %arg9[%c0_13, %c9, %c0_14, %c0_15] : memref<2x10x16x32xbf16, #tpu.memory_space<vmem>>, vector<2x1x16x32xbf16>
    tpu.vector_store %arg9[%c0_13, %c9, %c0_14, %c0_15], %9 {strides = array<i32>} : memref<2x10x16x32xbf16, #tpu.memory_space<vmem>>, vector<2x1x16x32xbf16>,
    %c0_16 = arith.constant 0 : index
    %c0_17 = arith.constant 0 : index
    %c0_18 = arith.constant 0 : index
    %c0_19 = arith.constant 0 : index
    %13 = vector.load %arg9[%c0_16, %c0_17, %c0_18, %c0_19] : memref<2x10x16x32xbf16, #tpu.memory_space<vmem>>, vector<2x10x1x32xbf16>
    tpu.vector_store %arg9[%c0_16, %c0_17, %c0_18, %c0_19], %10 {strides = array<i32>} : memref<2x10x16x32xbf16, #tpu.memory_space<vmem>>, vector<2x10x1x32xbf16>,
    %c0_20 = arith.constant 0 : index
    %c0_21 = arith.constant 0 : index
    %c9_22 = arith.constant 9 : index
    %c0_23 = arith.constant 0 : index
    %14 = vector.load %arg9[%c0_20, %c0_21, %c9_22, %c0_23] : memref<2x10x16x32xbf16, #tpu.memory_space<vmem>>, vector<2x10x1x32xbf16>
    tpu.vector_store %arg9[%c0_20, %c0_21, %c9_22, %c0_23], %10 {strides = array<i32>} : memref<2x10x16x32xbf16, #tpu.memory_space<vmem>>, vector<2x10x1x32xbf16>,
    %15 = arith.truncf %8 : vector<128x32xf32> to vector<128x32xbf16>
    %16 = vector.shape_cast %15 : vector<128x32xbf16> to vector<2x8x8x32xbf16>
    %c0_24 = arith.constant 0 : index
    %c1 = arith.constant 1 : index
    %c1_25 = arith.constant 1 : index
    %c0_26 = arith.constant 0 : index
    %17 = vector.load %arg9[%c0_24, %c1, %c1_25, %c0_26] : memref<2x10x16x32xbf16, #tpu.memory_space<vmem>>, vector<2x8x8x32xbf16>
    tpu.vector_store %arg9[%c0_24, %c1, %c1_25, %c0_26], %16 {strides = array<i32>} : memref<2x10x16x32xbf16, #tpu.memory_space<vmem>>, vector<2x8x8x32xbf16>,
    %c0_27 = arith.constant 0 : index
    %c0_28 = arith.constant 0 : index
    %c0_29 = arith.constant 0 : index
    %c0_30 = arith.constant 0 : index
    %18 = vector.load %arg9[%c0_27, %c0_28, %c0_29, %c0_30] : memref<2x10x16x32xbf16, #tpu.memory_space<vmem>>, vector<2x8x8x32xbf16>
    %19 = vector.shape_cast %18 : vector<2x8x8x32xbf16> to vector<128x32xbf16>
    %c0_31 = arith.constant 0 : index
    %c0_32 = arith.constant 0 : index
    %c1_33 = arith.constant 1 : index
    %c0_34 = arith.constant 0 : index
    %20 = vector.load %arg9[%c0_31, %c0_32, %c1_33, %c0_34] : memref<2x10x16x32xbf16, #tpu.memory_space<vmem>>, vector<2x8x8x32xbf16>
    %21 = vector.shape_cast %20 : vector<2x8x8x32xbf16> to vector<128x32xbf16>
    %c0_35 = arith.constant 0 : index
    %c0_36 = arith.constant 0 : index
    %c2 = arith.constant 2 : index
    %c0_37 = arith.constant 0 : index
    %22 = vector.load %arg9[%c0_35, %c0_36, %c2, %c0_37] : memref<2x10x16x32xbf16, #tpu.memory_space<vmem>>, vector<2x8x8x32xbf16>
    %23 = vector.shape_cast %22 : vector<2x8x8x32xbf16> to vector<128x32xbf16>
    %c0_38 = arith.constant 0 : index
    %c1_39 = arith.constant 1 : index
    %c0_40 = arith.constant 0 : index
    %c0_41 = arith.constant 0 : index
    %24 = vector.load %arg9[%c0_38, %c1_39, %c0_40, %c0_41] : memref<2x10x16x32xbf16, #tpu.memory_space<vmem>>, vector<2x8x8x32xbf16>
    %25 = vector.shape_cast %24 : vector<2x8x8x32xbf16> to vector<128x32xbf16>
    %c0_42 = arith.constant 0 : index
    %c1_43 = arith.constant 1 : index
    %c1_44 = arith.constant 1 : index
    %c0_45 = arith.constant 0 : index
    %26 = vector.load %arg9[%c0_42, %c1_43, %c1_44, %c0_45] : memref<2x10x16x32xbf16, #tpu.memory_space<vmem>>, vector<2x8x8x32xbf16>
    %27 = vector.shape_cast %26 : vector<2x8x8x32xbf16> to vector<128x32xbf16>
    %c0_46 = arith.constant 0 : index
    %c1_47 = arith.constant 1 : index
    %c2_48 = arith.constant 2 : index
    %c0_49 = arith.constant 0 : index
    %28 = vector.load %arg9[%c0_46, %c1_47, %c2_48, %c0_49] : memref<2x10x16x32xbf16, #tpu.memory_space<vmem>>, vector<2x8x8x32xbf16>
    %29 = vector.shape_cast %28 : vector<2x8x8x32xbf16> to vector<128x32xbf16>
    %c0_50 = arith.constant 0 : index
    %c2_51 = arith.constant 2 : index
    %c0_52 = arith.constant 0 : index
    %c0_53 = arith.constant 0 : index
    %30 = vector.load %arg9[%c0_50, %c2_51, %c0_52, %c0_53] : memref<2x10x16x32xbf16, #tpu.memory_space<vmem>>, vector<2x8x8x32xbf16>
    %31 = vector.shape_cast %30 : vector<2x8x8x32xbf16> to vector<128x32xbf16>
    %c0_54 = arith.constant 0 : index
    %c2_55 = arith.constant 2 : index
    %c1_56 = arith.constant 1 : index
    %c0_57 = arith.constant 0 : index
    %32 = vector.load %arg9[%c0_54, %c2_55, %c1_56, %c0_57] : memref<2x10x16x32xbf16, #tpu.memory_space<vmem>>, vector<2x8x8x32xbf16>
    %33 = vector.shape_cast %32 : vector<2x8x8x32xbf16> to vector<128x32xbf16>
    %c0_58 = arith.constant 0 : index
    %c2_59 = arith.constant 2 : index
    %c2_60 = arith.constant 2 : index
    %c0_61 = arith.constant 0 : index
    %34 = vector.load %arg9[%c0_58, %c2_59, %c2_60, %c0_61] : memref<2x10x16x32xbf16, #tpu.memory_space<vmem>>, vector<2x8x8x32xbf16>
    %35 = vector.shape_cast %34 : vector<2x8x8x32xbf16> to vector<128x32xbf16>
    %36 = tpu.concatenate %19, %21, %23, %25, %27, %29, %31, %33, %35 in 1 : vector<128x32xbf16>, vector<128x32xbf16>, vector<128x32xbf16>, vector<128x32xbf16>, vector<128x32xbf16>, vector<128x32xbf16>, vector<128x32xbf16>, vector<128x32xbf16>, vector<128x32xbf16> -> vector<128x288xbf16>
    %c0_62 = arith.constant 0 : index
    %c0_63 = arith.constant 0 : index
    %37 = vector.load %arg3[%c0_62, %c0_63] : memref<288x32xbf16, #tpu.memory_space<vmem>>, vector<288x32xbf16>
    %cst_64 = arith.constant dense<0.000000e+00> : vector<128x32xf32>
    %38 = tpu.matmul %36, %37, %cst_64 {dimension_numbers = #tpu.dot_dimension_numbers<[1], [0], [0], [1], [0, 0, 1, 1], [], []>} : vector<128x288xbf16>, vector<288x32xbf16>, vector<128x32xf32> -> vector<128x32xf32>
    %c0_65 = arith.constant 0 : index
    %c0_66 = arith.constant 0 : index
    %39 = vector.load %arg6[%c0_65, %c0_66] : memref<1x32xf32, #tpu.memory_space<vmem>>, vector<1x32xf32>
    %40 = vector.broadcast %39 : vector<1x32xf32> to vector<128x32xf32>
    %41 = arith.addf %38, %40 : vector<128x32xf32>
    %cst_67 = arith.constant 0.000000e+00 : f32
    %42 = vector.broadcast %cst_67 : f32 to vector<128x32xf32>
    %43 = arith.maximumf %41, %42 : vector<128x32xf32>
    %44 = arith.truncf %43 : vector<128x32xf32> to vector<128x32xbf16>
    %c0_68 = arith.constant 0 : index
    %c0_69 = arith.constant 0 : index
    %45 = vector.load %arg4[%c0_68, %c0_69] : memref<32x128xbf16, #tpu.memory_space<vmem>>, vector<32x128xbf16>
    %cst_70 = arith.constant dense<0.000000e+00> : vector<128x128xf32>
    %46 = tpu.matmul %44, %45, %cst_70 {dimension_numbers = #tpu.dot_dimension_numbers<[1], [0], [0], [1], [0, 0, 1, 1], [], []>} : vector<128x32xbf16>, vector<32x128xbf16>, vector<128x128xf32> -> vector<128x128xf32>
    %c0_71 = arith.constant 0 : index
    %c0_72 = arith.constant 0 : index
    %47 = vector.load %arg7[%c0_71, %c0_72] : memref<1x128xf32, #tpu.memory_space<vmem>>, vector<1x128xf32>
    %48 = vector.broadcast %47 : vector<1x128xf32> to vector<128x128xf32>
    %49 = arith.addf %46, %48 : vector<128x128xf32>
    %c0_73 = arith.constant 0 : index
    %c0_74 = arith.constant 0 : index
    %c0_75 = arith.constant 0 : index
    %50 = vector.load %arg1[%c0_73, %c0_74, %c0_75] : memref<2x64x128xbf16, #tpu.memory_space<vmem>>, vector<2x64x128xbf16>
    %51 = vector.shape_cast %50 : vector<2x64x128xbf16> to vector<128x128xbf16>
    %52 = arith.extf %51 : vector<128x128xbf16> to vector<128x128xf32>
    %53 = arith.addf %49, %52 : vector<128x128xf32>
    %cst_76 = arith.constant 0.000000e+00 : f32
    %54 = vector.broadcast %cst_76 : f32 to vector<128x128xf32>
    %55 = arith.maximumf %53, %54 : vector<128x128xf32>
    %56 = vector.shape_cast %55 : vector<128x128xf32> to vector<2x64x128xf32>
    %57 = arith.truncf %56 : vector<2x64x128xf32> to vector<2x64x128xbf16>
    %c0_77 = arith.constant 0 : index
    %c0_78 = arith.constant 0 : index
    %c0_79 = arith.constant 0 : index
    %58 = vector.load %arg8[%c0_77, %c0_78, %c0_79] : memref<2x64x128xbf16, #tpu.memory_space<vmem>>, vector<2x64x128xbf16>
    tpu.vector_store %arg8[%c0_77, %c0_78, %c0_79], %57 {strides = array<i32>} : memref<2x64x128xbf16, #tpu.memory_space<vmem>>, vector<2x64x128xbf16>,
    return
  }
  func.func @transform_0(%arg0: i32) -> (i32, i32, i32) {
    %c0_i32 = arith.constant 0 : i32
    %c0_i32_0 = arith.constant 0 : i32
    %c0_i32_1 = arith.constant 0 : i32
    return %arg0, %c0_i32, %c0_i32_0 : i32, i32, i32
  }
  func.func @transform_1(%arg0: i32) -> (i32, i32) {
    %c0_i32 = arith.constant 0 : i32
    %c0_i32_0 = arith.constant 0 : i32
    %c0_i32_1 = arith.constant 0 : i32
    return %c0_i32, %c0_i32_0 : i32, i32
  }
  func.func @transform_2(%arg0: i32) -> (i32, i32) {
    %c0_i32 = arith.constant 0 : i32
    %c0_i32_0 = arith.constant 0 : i32
    %c0_i32_1 = arith.constant 0 : i32
    return %c0_i32, %c0_i32_0 : i32, i32
  }
  func.func @transform_3(%arg0: i32) -> (i32, i32) {
    %c0_i32 = arith.constant 0 : i32
    %c0_i32_0 = arith.constant 0 : i32
    %c0_i32_1 = arith.constant 0 : i32
    return %c0_i32, %c0_i32_0 : i32, i32
  }
  func.func @transform_4(%arg0: i32) -> (i32, i32) {
    %c0_i32 = arith.constant 0 : i32
    %c0_i32_0 = arith.constant 0 : i32
    %c0_i32_1 = arith.constant 0 : i32
    return %c0_i32, %c0_i32_0 : i32, i32
  }
  func.func @transform_5(%arg0: i32) -> (i32, i32) {
    %c0_i32 = arith.constant 0 : i32
    %c0_i32_0 = arith.constant 0 : i32
    %c0_i32_1 = arith.constant 0 : i32
    return %c0_i32, %c0_i32_0 : i32, i32
  }
  func.func @transform_6(%arg0: i32) -> (i32, i32) {
    %c0_i32 = arith.constant 0 : i32
    %c0_i32_0 = arith.constant 0 : i32
    %c0_i32_1 = arith.constant 0 : i32
    return %c0_i32, %c0_i32_0 : i32, i32
  }
  func.func @transform_7(%arg0: i32) -> (i32, i32, i32) {
    %c0_i32 = arith.constant 0 : i32
    %c0_i32_0 = arith.constant 0 : i32
    %c0_i32_1 = arith.constant 0 : i32
    return %arg0, %c0_i32, %c0_i32_0 : i32, i32, i32
  }
}

module attributes {stable_mosaic.version = 11 : i64} {
  func.func @_bottleneck_kernel(%arg0: i32, %arg1: memref<2x64x128xbf16, #tpu.memory_space<vmem>>, %arg2: memref<128x32xbf16, #tpu.memory_space<vmem>>, %arg3: memref<288x32xbf16, #tpu.memory_space<vmem>>, %arg4: memref<32x128xbf16, #tpu.memory_space<vmem>>, %arg5: memref<1x32xf32, #tpu.memory_space<vmem>>, %arg6: memref<1x32xf32, #tpu.memory_space<vmem>>, %arg7: memref<1x128xf32, #tpu.memory_space<vmem>>, %arg8: memref<2x64x128xbf16, #tpu.memory_space<vmem>>, %arg9: memref<2x10x16x32xbf16, #tpu.memory_space<vmem>>) attributes {dimension_semantics = [#tpu.dimension_semantics<parallel>], iteration_bounds = array<i64: 1>, scalar_prefetch = 0 : i64, scratch_operands = 1 : i64, tpu.core_type = #tpu.core_type<tc>, window_params = [{transform_indices = @transform_0, window_bounds = array<i64: 2, 64, 128>}, {pipeline_mode = #tpu.pipeline_mode<synchronous>, transform_indices = @transform_1, window_bounds = array<i64: 128, 32>}, {pipeline_mode = #tpu.pipeline_mode<synchronous>, transform_indices = @transform_2, window_bounds = array<i64: 288, 32>}, {pipeline_mode = #tpu.pipeline_mode<synchronous>, transform_indices = @transform_3, window_bounds = array<i64: 32, 128>}, {pipeline_mode = #tpu.pipeline_mode<synchronous>, transform_indices = @transform_4, window_bounds = array<i64: 1, 32>}, {pipeline_mode = #tpu.pipeline_mode<synchronous>, transform_indices = @transform_5, window_bounds = array<i64: 1, 32>}, {pipeline_mode = #tpu.pipeline_mode<synchronous>, transform_indices = @transform_6, window_bounds = array<i64: 1, 128>}, {transform_indices = @transform_7, window_bounds = array<i64: 2, 64, 128>}]} {
    %c0 = arith.constant 0 : index
    %c0_0 = arith.constant 0 : index
    %c0_1 = arith.constant 0 : index
    %0 = vector.load %arg1[%c0, %c0_0, %c0_1] : memref<2x64x128xbf16, #tpu.memory_space<vmem>>, vector<2x64x128xbf16>
    %1 = vector.shape_cast %0 : vector<2x64x128xbf16> to vector<128x128xbf16>
    %c0_2 = arith.constant 0 : index
    %c0_3 = arith.constant 0 : index
    %2 = vector.load %arg2[%c0_2, %c0_3] : memref<128x32xbf16, #tpu.memory_space<vmem>>, vector<128x32xbf16>
    %cst = arith.constant dense<0.000000e+00> : vector<128x32xf32>
    %3 = tpu.matmul %1, %2, %cst {dimension_numbers = #tpu.dot_dimension_numbers<[1], [0], [0], [1], [0, 0, 1, 1], [], []>} : vector<128x128xbf16>, vector<128x32xbf16>, vector<128x32xf32> -> vector<128x32xf32>
    %c0_4 = arith.constant 0 : index
    %c0_5 = arith.constant 0 : index
    %4 = vector.load %arg5[%c0_4, %c0_5] : memref<1x32xf32, #tpu.memory_space<vmem>>, vector<1x32xf32>
    %5 = vector.broadcast %4 : vector<1x32xf32> to vector<128x32xf32>
    %6 = arith.addf %3, %5 : vector<128x32xf32>
    %cst_6 = arith.constant 0.000000e+00 : f32
    %7 = vector.broadcast %cst_6 : f32 to vector<128x32xf32>
    %8 = arith.maximumf %6, %7 : vector<128x32xf32>
    %cst_7 = arith.constant 0.000000e+00 : bf16
    %9 = vector.broadcast %cst_7 : bf16 to vector<2x1x16x32xbf16>
    %cst_8 = arith.constant 0.000000e+00 : bf16
    %10 = vector.broadcast %cst_8 : bf16 to vector<2x10x1x32xbf16>
    %c0_9 = arith.constant 0 : index
    %c0_10 = arith.constant 0 : index
    %c0_11 = arith.constant 0 : index
    %c0_12 = arith.constant 0 : index
    %11 = vector.load %arg9[%c0_9, %c0_10, %c0_11, %c0_12] : memref<2x10x16x32xbf16, #tpu.memory_space<vmem>>, vector<2x1x16x32xbf16>
    tpu.vector_store %arg9[%c0_9, %c0_10, %c0_11, %c0_12], %9 {strides = array<i32>} : memref<2x10x16x32xbf16, #tpu.memory_space<vmem>>, vector<2x1x16x32xbf16>,
    %c0_13 = arith.constant 0 : index
    %c9 = arith.constant 9 : index
    %c0_14 = arith.constant 0 : index
    %c0_15 = arith.constant 0 : index
    %12 = vector.load %arg9[%c0_13, %c9, %c0_14, %c0_15] : memref<2x10x16x32xbf16, #tpu.memory_space<vmem>>, vector<2x1x16x32xbf16>
    tpu.vector_store %arg9[%c0_13, %c9, %c0_14, %c0_15], %9 {strides = array<i32>} : memref<2x10x16x32xbf16, #tpu.memory_space<vmem>>, vector<2x1x16x32xbf16>,
    %c0_16 = arith.constant 0 : index
    %c0_17 = arith.constant 0 : index
    %c0_18 = arith.constant 0 : index
    %c0_19 = arith.constant 0 : index
    %13 = vector.load %arg9[%c0_16, %c0_17, %c0_18, %c0_19] : memref<2x10x16x32xbf16, #tpu.memory_space<vmem>>, vector<2x10x1x32xbf16>
    tpu.vector_store %arg9[%c0_16, %c0_17, %c0_18, %c0_19], %10 {strides = array<i32>} : memref<2x10x16x32xbf16, #tpu.memory_space<vmem>>, vector<2x10x1x32xbf16>,
    %c0_20 = arith.constant 0 : index
    %c0_21 = arith.constant 0 : index
    %c9_22 = arith.constant 9 : index
    %c0_23 = arith.constant 0 : index
    %14 = vector.load %arg9[%c0_20, %c0_21, %c9_22, %c0_23] : memref<2x10x16x32xbf16, #tpu.memory_space<vmem>>, vector<2x10x1x32xbf16>
    tpu.vector_store %arg9[%c0_20, %c0_21, %c9_22, %c0_23], %10 {strides = array<i32>} : memref<2x10x16x32xbf16, #tpu.memory_space<vmem>>, vector<2x10x1x32xbf16>,
    %15 = arith.truncf %8 : vector<128x32xf32> to vector<128x32xbf16>
    %16 = vector.shape_cast %15 : vector<128x32xbf16> to vector<2x8x8x32xbf16>
    %c0_24 = arith.constant 0 : index
    %c1 = arith.constant 1 : index
    %c1_25 = arith.constant 1 : index
    %c0_26 = arith.constant 0 : index
    %17 = vector.load %arg9[%c0_24, %c1, %c1_25, %c0_26] : memref<2x10x16x32xbf16, #tpu.memory_space<vmem>>, vector<2x8x8x32xbf16>
    tpu.vector_store %arg9[%c0_24, %c1, %c1_25, %c0_26], %16 {strides = array<i32>} : memref<2x10x16x32xbf16, #tpu.memory_space<vmem>>, vector<2x8x8x32xbf16>,
    %c0_27 = arith.constant 0 : index
    %c0_28 = arith.constant 0 : index
    %c0_29 = arith.constant 0 : index
    %c0_30 = arith.constant 0 : index
    %18 = vector.load %arg9[%c0_27, %c0_28, %c0_29, %c0_30] : memref<2x10x16x32xbf16, #tpu.memory_space<vmem>>, vector<2x8x8x32xbf16>
    %19 = vector.shape_cast %18 : vector<2x8x8x32xbf16> to vector<128x32xbf16>
    %c0_31 = arith.constant 0 : index
    %c0_32 = arith.constant 0 : index
    %c1_33 = arith.constant 1 : index
    %c0_34 = arith.constant 0 : index
    %20 = vector.load %arg9[%c0_31, %c0_32, %c1_33, %c0_34] : memref<2x10x16x32xbf16, #tpu.memory_space<vmem>>, vector<2x8x8x32xbf16>
    %21 = vector.shape_cast %20 : vector<2x8x8x32xbf16> to vector<128x32xbf16>
    %c0_35 = arith.constant 0 : index
    %c0_36 = arith.constant 0 : index
    %c2 = arith.constant 2 : index
    %c0_37 = arith.constant 0 : index
    %22 = vector.load %arg9[%c0_35, %c0_36, %c2, %c0_37] : memref<2x10x16x32xbf16, #tpu.memory_space<vmem>>, vector<2x8x8x32xbf16>
    %23 = vector.shape_cast %22 : vector<2x8x8x32xbf16> to vector<128x32xbf16>
    %c0_38 = arith.constant 0 : index
    %c1_39 = arith.constant 1 : index
    %c0_40 = arith.constant 0 : index
    %c0_41 = arith.constant 0 : index
    %24 = vector.load %arg9[%c0_38, %c1_39, %c0_40, %c0_41] : memref<2x10x16x32xbf16, #tpu.memory_space<vmem>>, vector<2x8x8x32xbf16>
    %25 = vector.shape_cast %24 : vector<2x8x8x32xbf16> to vector<128x32xbf16>
    %c0_42 = arith.constant 0 : index
    %c1_43 = arith.constant 1 : index
    %c1_44 = arith.constant 1 : index
    %c0_45 = arith.constant 0 : index
    %26 = vector.load %arg9[%c0_42, %c1_43, %c1_44, %c0_45] : memref<2x10x16x32xbf16, #tpu.memory_space<vmem>>, vector<2x8x8x32xbf16>
    %27 = vector.shape_cast %26 : vector<2x8x8x32xbf16> to vector<128x32xbf16>
    %c0_46 = arith.constant 0 : index
    %c1_47 = arith.constant 1 : index
    %c2_48 = arith.constant 2 : index
    %c0_49 = arith.constant 0 : index
    %28 = vector.load %arg9[%c0_46, %c1_47, %c2_48, %c0_49] : memref<2x10x16x32xbf16, #tpu.memory_space<vmem>>, vector<2x8x8x32xbf16>
    %29 = vector.shape_cast %28 : vector<2x8x8x32xbf16> to vector<128x32xbf16>
    %c0_50 = arith.constant 0 : index
    %c2_51 = arith.constant 2 : index
    %c0_52 = arith.constant 0 : index
    %c0_53 = arith.constant 0 : index
    %30 = vector.load %arg9[%c0_50, %c2_51, %c0_52, %c0_53] : memref<2x10x16x32xbf16, #tpu.memory_space<vmem>>, vector<2x8x8x32xbf16>
    %31 = vector.shape_cast %30 : vector<2x8x8x32xbf16> to vector<128x32xbf16>
    %c0_54 = arith.constant 0 : index
    %c2_55 = arith.constant 2 : index
    %c1_56 = arith.constant 1 : index
    %c0_57 = arith.constant 0 : index
    %32 = vector.load %arg9[%c0_54, %c2_55, %c1_56, %c0_57] : memref<2x10x16x32xbf16, #tpu.memory_space<vmem>>, vector<2x8x8x32xbf16>
    %33 = vector.shape_cast %32 : vector<2x8x8x32xbf16> to vector<128x32xbf16>
    %c0_58 = arith.constant 0 : index
    %c2_59 = arith.constant 2 : index
    %c2_60 = arith.constant 2 : index
    %c0_61 = arith.constant 0 : index
    %34 = vector.load %arg9[%c0_58, %c2_59, %c2_60, %c0_61] : memref<2x10x16x32xbf16, #tpu.memory_space<vmem>>, vector<2x8x8x32xbf16>
    %35 = vector.shape_cast %34 : vector<2x8x8x32xbf16> to vector<128x32xbf16>
    %36 = tpu.concatenate %19, %21, %23, %25, %27, %29, %31, %33, %35 in 1 : vector<128x32xbf16>, vector<128x32xbf16>, vector<128x32xbf16>, vector<128x32xbf16>, vector<128x32xbf16>, vector<128x32xbf16>, vector<128x32xbf16>, vector<128x32xbf16>, vector<128x32xbf16> -> vector<128x288xbf16>
    %c0_62 = arith.constant 0 : index
    %c0_63 = arith.constant 0 : index
    %37 = vector.load %arg3[%c0_62, %c0_63] : memref<288x32xbf16, #tpu.memory_space<vmem>>, vector<288x32xbf16>
    %cst_64 = arith.constant dense<0.000000e+00> : vector<128x32xf32>
    %38 = tpu.matmul %36, %37, %cst_64 {dimension_numbers = #tpu.dot_dimension_numbers<[1], [0], [0], [1], [0, 0, 1, 1], [], []>} : vector<128x288xbf16>, vector<288x32xbf16>, vector<128x32xf32> -> vector<128x32xf32>
    %c0_65 = arith.constant 0 : index
    %c0_66 = arith.constant 0 : index
    %39 = vector.load %arg6[%c0_65, %c0_66] : memref<1x32xf32, #tpu.memory_space<vmem>>, vector<1x32xf32>
    %40 = vector.broadcast %39 : vector<1x32xf32> to vector<128x32xf32>
    %41 = arith.addf %38, %40 : vector<128x32xf32>
    %cst_67 = arith.constant 0.000000e+00 : f32
    %42 = vector.broadcast %cst_67 : f32 to vector<128x32xf32>
    %43 = arith.maximumf %41, %42 : vector<128x32xf32>
    %44 = arith.truncf %43 : vector<128x32xf32> to vector<128x32xbf16>
    %c0_68 = arith.constant 0 : index
    %c0_69 = arith.constant 0 : index
    %45 = vector.load %arg4[%c0_68, %c0_69] : memref<32x128xbf16, #tpu.memory_space<vmem>>, vector<32x128xbf16>
    %cst_70 = arith.constant dense<0.000000e+00> : vector<128x128xf32>
    %46 = tpu.matmul %44, %45, %cst_70 {dimension_numbers = #tpu.dot_dimension_numbers<[1], [0], [0], [1], [0, 0, 1, 1], [], []>} : vector<128x32xbf16>, vector<32x128xbf16>, vector<128x128xf32> -> vector<128x128xf32>
    %c0_71 = arith.constant 0 : index
    %c0_72 = arith.constant 0 : index
    %47 = vector.load %arg7[%c0_71, %c0_72] : memref<1x128xf32, #tpu.memory_space<vmem>>, vector<1x128xf32>
    %48 = vector.broadcast %47 : vector<1x128xf32> to vector<128x128xf32>
    %49 = arith.addf %46, %48 : vector<128x128xf32>
    %c0_73 = arith.constant 0 : index
    %c0_74 = arith.constant 0 : index
    %c0_75 = arith.constant 0 : index
    %50 = vector.load %arg1[%c0_73, %c0_74, %c0_75] : memref<2x64x128xbf16, #tpu.memory_space<vmem>>, vector<2x64x128xbf16>
    %51 = vector.shape_cast %50 : vector<2x64x128xbf16> to vector<128x128xbf16>
    %52 = arith.extf %51 : vector<128x128xbf16> to vector<128x128xf32>
    %53 = arith.addf %49, %52 : vector<128x128xf32>
    %cst_76 = arith.constant 0.000000e+00 : f32
    %54 = vector.broadcast %cst_76 : f32 to vector<128x128xf32>
    %55 = arith.maximumf %53, %54 : vector<128x128xf32>
    %56 = vector.shape_cast %55 : vector<128x128xf32> to vector<2x64x128xf32>
    %57 = arith.truncf %56 : vector<2x64x128xf32> to vector<2x64x128xbf16>
    %c0_77 = arith.constant 0 : index
    %c0_78 = arith.constant 0 : index
    %c0_79 = arith.constant 0 : index
    %58 = vector.load %arg8[%c0_77, %c0_78, %c0_79] : memref<2x64x128xbf16, #tpu.memory_space<vmem>>, vector<2x64x128xbf16>
    tpu.vector_store %arg8[%c0_77, %c0_78, %c0_79], %57 {strides = array<i32>} : memref<2x64x128xbf16, #tpu.memory_space<vmem>>, vector<2x64x128xbf16>,
    return
  }
  func.func @transform_0(%arg0: i32) -> (i32, i32, i32) {
    %c0_i32 = arith.constant 0 : i32
    %c0_i32_0 = arith.constant 0 : i32
    %c0_i32_1 = arith.constant 0 : i32
    return %arg0, %c0_i32, %c0_i32_0 : i32, i32, i32
  }
  func.func @transform_1(%arg0: i32) -> (i32, i32) {
    %c0_i32 = arith.constant 0 : i32
    %c0_i32_0 = arith.constant 0 : i32
    %c0_i32_1 = arith.constant 0 : i32
    return %c0_i32, %c0_i32_0 : i32, i32
  }
  func.func @transform_2(%arg0: i32) -> (i32, i32) {
    %c0_i32 = arith.constant 0 : i32
    %c0_i32_0 = arith.constant 0 : i32
    %c0_i32_1 = arith.constant 0 : i32
    return %c0_i32, %c0_i32_0 : i32, i32
  }
  func.func @transform_3(%arg0: i32) -> (i32, i32) {
    %c0_i32 = arith.constant 0 : i32
    %c0_i32_0 = arith.constant 0 : i32
    %c0_i32_1 = arith.constant 0 : i32
    return %c0_i32, %c0_i32_0 : i32, i32
  }
  func.func @transform_4(%arg0: i32) -> (i32, i32) {
    %c0_i32 = arith.constant 0 : i32
    %c0_i32_0 = arith.constant 0 : i32
    %c0_i32_1 = arith.constant 0 : i32
    return %c0_i32, %c0_i32_0 : i32, i32
  }
  func.func @transform_5(%arg0: i32) -> (i32, i32) {
    %c0_i32 = arith.constant 0 : i32
    %c0_i32_0 = arith.constant 0 : i32
    %c0_i32_1 = arith.constant 0 : i32
    return %c0_i32, %c0_i32_0 : i32, i32
  }
  func.func @transform_6(%arg0: i32) -> (i32, i32) {
    %c0_i32 = arith.constant 0 : i32
    %c0_i32_0 = arith.constant 0 : i32
    %c0_i32_1 = arith.constant 0 : i32
    return %c0_i32, %c0_i32_0 : i32, i32
  }
  func.func @transform_7(%arg0: i32) -> (i32, i32, i32) {
    %c0_i32 = arith.constant 0 : i32
    %c0_i32_0 = arith.constant 0 : i32
    %c0_i32_1 = arith.constant 0 : i32
    return %arg0, %c0_i32, %c0_i32_0 : i32, i32, i32
  }
}

</mosaic_0001>

<bundles_post_ra>
// kernel: tpu_custom_call.1
= control target key start
LH: loop header
LB: loop body
LE: loop exit
PB: predicated region body
PF: predicated region fallthrough
CT: control target
= control target key end

     0   :  { %s5164_s0 = inlined_call_operand.vmem [shape: bf16[2,64,128], index: 0, kind: input, shape index: {}]   ;;  %s5165_s1 = inlined_call_operand.vmem [shape: bf16[128,32], index: 1, kind: input, shape index: {}]   ;;  %s5166_s2 = inlined_call_operand.vmem [shape: bf16[288,32], index: 2, kind: input, shape index: {}]   ;;  %s5167_s3 = inlined_call_operand.vmem [shape: bf16[32,128], index: 3, kind: input, shape index: {}]   ;;  %s5168_s4 = inlined_call_operand.vmem [shape: f32[1,32], index: 4, kind: input, shape index: {}]   ;;  %s5169_s5 = inlined_call_operand.vmem [shape: f32[1,32], index: 5, kind: input, shape index: {}]   ;;  %s5170_s6 = inlined_call_operand.vmem [shape: f32[1,128], index: 6, kind: input, shape index: {}]   ;;  %s5171_s7 = inlined_call_operand.hbm [shape: bf16[2,64,128], index: 7, kind: output, shape index: {}]  }
   0x1   :  { %v4017_v0 = vld [vmem:[%s5165_s1] sm:$0xff]   ;;  %v4018_v1 = vld [vmem:[%s5165_s1 + $0x8] sm:$0xff]   ;;  %v4019_v2 = vld [vmem:[%s5165_s1 + $0x10] sm:$0xff]  }
   0x2   :  { %3935 = vmatprep.subr.bf16.mxu0 %v4017_v0  ;;  %v4020_v3 = vld [vmem:[%s5165_s1 + $0x18] sm:$0xff]   ;;  %v4025_v4 = vld [vmem:[%s5164_s0] sm:$0xff]   ;;  %v4022_v6 = vld [vmem:[%s5165_s1 + $0x28] sm:$0xff]  }
   0x3   :  { %3936 = vmatpush3.bf16.msra.mxu0 %v4017_v0  ;;  %3951 = vmatprep.mubr.bf16.mxu0 %v4025_v4  ;;  %v4021_v5 = vld [vmem:[%s5165_s1 + $0x20] sm:$0xff]   ;;  %v4023_v7 = vld [vmem:[%s5165_s1 + $0x30] sm:$0xff]   ;;  %v4024_v8 = vld [vmem:[%s5165_s1 + $0x38] sm:$0xff]  }
   0x4   :  { %3937 = vmatprep.subr.bf16.mxu0 %v4018_v1 }
   0x7   :  { %3938 = vmatpush3.bf16.msra.mxu0 %v4018_v1 }
   0x8   :  { %3939 = vmatprep.subr.bf16.mxu0 %v4019_v2 }
   0xb   :  { %3940 = vmatpush3.bf16.msra.mxu0 %v4019_v2 }
   0xc   :  { %3941 = vmatprep.subr.bf16.mxu0 %v4020_v3 }
   0xf   :  { %3942 = vmatpush3.bf16.msra.mxu0 %v4020_v3 }
  0x10   :  { %3943 = vmatprep.subr.bf16.mxu0 %v4021_v5 }
  0x13   :  { %3944 = vmatpush3.bf16.msra.mxu0 %v4021_v5 }
  0x14   :  { %3945 = vmatprep.subr.bf16.mxu0 %v4022_v6 }
  0x17   :  { %3946 = vmatpush3.bf16.msra.mxu0 %v4022_v6 }
  0x18   :  { %3947 = vmatprep.subr.bf16.mxu0 %v4023_v7 }
  0x1b   :  { %3948 = vmatpush3.bf16.msra.mxu0 %v4023_v7 }
  0x1c   :  { %3949 = vmatprep.subr.bf16.mxu0 %v4024_v8 }
  0x1d   :  { %12 = vsyncpa [#allocation4], 0  ;;  %v4026_v9 = vld [vmem:[%s5164_s0 + $0x8] sm:$0xff]   ;;  %v4027_v10 = vld [vmem:[%s5164_s0 + $0x10] sm:$0xff]   ;;  %vm282_vm0 = vcmask 253952   ;;  %vm345_vm2 = vcmask 258052  }
  0x1e   :  { %v4028_v11 = vld [vmem:[%s5164_s0 + $0x18] sm:$0xff]   ;;  %v4029_v12 = vld [vmem:[%s5164_s0 + $0x20] sm:$0xff]   ;;  %v4030_v13 = vld [vmem:[%s5164_s0 + $0x28] sm:$0xff]   ;;  %vm283_vm1 = vsmask.f32 256  ;;  %vm276_vm6 = vcmask 261120  }
  0x1f   :  { %3950 = vmatpush3.bf16.msra.mxu0 %v4024_v8  ;;  %v4031_v14 = vld [vmem:[%s5164_s0 + $0x30] sm:$0xff]   ;;  %v4032_v15 = vld [vmem:[%s5164_s0 + $0x38] sm:$0xff]   ;;  %vm346_vm3 = vsmask.f32 7954  ;;  %vm4389_vm4 = vmand %vm282_vm0, %vm283_vm1  ;;  %v4295_v50 = vmov 0   ;;  %vm1071_vm7 = vcmask 1042432  }
  0x20   :  { %v294_v17 = vld [vmem:[#allocation2 + $0x18] sm:$0x1]  ;;  %v357_v18 = vld [vmem:[#allocation2 + $0x18] sm:$0x10]  ;;  %vm4395_vm5 = vmand %vm345_vm2, %vm346_vm3  ;;  %277 = vst.msk [vmem:[#allocation2] sm:$0xff] %vm276_vm6, %v4295_v50  ;;  %vm1072_vm8 = vcmask 1046532  }
  0x21   :  { %v295_v19 = vsel %vm4389_vm4, 0, %v294_v17  ;;  %v288_v21 = vld [vmem:[#allocation2 + $0x8] sm:$0x1]  ;;  %v351_v22 = vld [vmem:[#allocation2 + $0x8] sm:$0x10]  ;;  %v358_v23 = vsel %vm4395_vm5, 0, %v357_v18  ;;  %vm4494_vm13 = vmor %vm1071_vm7, %vm1072_vm8 }
  0x22   :  { %3952 = vmatmul.mubr.bf16.vlgmr.msra.gmra.mrb[0].mxu0 %v4026_v9  ;;  %296 = vst [vmem:[#allocation2 + $0x18] sm:$0x1] %v295_v19  ;;  %v289_v24 = vsel %vm4389_vm4, 0, %v288_v21  ;;  %v352_v25 = vsel %vm4395_vm5, 0, %v351_v22  ;;  %v297_v26 = vld [vmem:[#allocation2 + $0x20] sm:$0x1] }
  0x23   :  { %3955 = vmatprep.mubr.bf16.mxu0 %v4027_v10  ;;  %359 = vst [vmem:[#allocation2 + $0x18] sm:$0x10] %v358_v23  ;;  %290 = vst [vmem:[#allocation2 + $0x8] sm:$0x1] %v289_v24  ;;  %v298_v27 = vsel %vm4389_vm4, 0, %v297_v26  ;;  %v4034_v55 = vld [vmem:[%s5166_s2 + $0x80] sm:$0xff]  }
  0x24   :  { %353 = vst [vmem:[#allocation2 + $0x8] sm:$0x10] %v352_v25  ;;  %v360_v28 = vld [vmem:[#allocation2 + $0x20] sm:$0x10]  ;;  %v291_v29 = vld [vmem:[#allocation2 + $0x10] sm:$0x1]  ;;  %3967 = vmatprep.subr.bf16.mxu0 %v4034_v55 }
  0x25   :  { %299 = vst [vmem:[#allocation2 + $0x20] sm:$0x1] %v298_v27  ;;  %v361_v30 = vsel %vm4395_vm5, 0, %v360_v28  ;;  %v292_v31 = vsel %vm4389_vm4, 0, %v291_v29  ;;  %v354_v32 = vld [vmem:[#allocation2 + $0x10] sm:$0x10]  ;;  %3968 = vmatpush3.bf16.msra.mxu0 %v4034_v55 }
  0x26   :  { %362 = vst [vmem:[#allocation2 + $0x20] sm:$0x10] %v361_v30  ;;  %293 = vst [vmem:[#allocation2 + $0x10] sm:$0x1] %v292_v31  ;;  %v355_v33 = vsel %vm4395_vm5, 0, %v354_v32  ;;  %vm585_vm11 = vcmask 258048  }
  0x27   :  { %356 = vst [vmem:[#allocation2 + $0x10] sm:$0x10] %v355_v33  ;;  %v306_v34 = vld [vmem:[#allocation2 + $0x38] sm:$0x1]  ;;  %v369_v35 = vld [vmem:[#allocation2 + $0x38] sm:$0x10] }
  0x28   :  { %v307_v36 = vsel %vm4389_vm4, 0, %v306_v34  ;;  %v370_v37 = vsel %vm4395_vm5, 0, %v369_v35  ;;  %v300_v38 = vld [vmem:[#allocation2 + $0x28] sm:$0x1]  ;;  %v363_v39 = vld [vmem:[#allocation2 + $0x28] sm:$0x10] }
  0x29   :  { %308 = vst [vmem:[#allocation2 + $0x38] sm:$0x1] %v307_v36  ;;  %371 = vst [vmem:[#allocation2 + $0x38] sm:$0x10] %v370_v37  ;;  %v309_v40 = vld [vmem:[#allocation2 + $0x40] sm:$0x1] }
  0x2a   :  { %3956 = vmatmul.mubr.bf16.gmra.mrb[4].mxu0 %v4028_v11  ;;  %v301_v41 = vsel %vm4389_vm4, 0, %v300_v38  ;;  %v364_v42 = vsel %vm4395_vm5, 0, %v363_v39  ;;  %v310_v43 = vsel %vm4389_vm4, 0, %v309_v40  ;;  %v372_v44 = vld [vmem:[#allocation2 + $0x40] sm:$0x10]  ;;  %278 = vst.msk [vmem:[#allocation2 + $0x50] sm:$0xff] %vm276_vm6, %v4295_v50 }
  0x2b   :  { %3959 = vmatprep.mubr.bf16.mxu0 %v4029_v12  ;;  %302 = vst [vmem:[#allocation2 + $0x28] sm:$0x1] %v301_v41  ;;  %365 = vst [vmem:[#allocation2 + $0x28] sm:$0x10] %v364_v42  ;;  %v303_v45 = vld [vmem:[#allocation2 + $0x30] sm:$0x1] }
  0x2c   :  { %311 = vst [vmem:[#allocation2 + $0x40] sm:$0x1] %v310_v43  ;;  %v373_v46 = vsel %vm4395_vm5, 0, %v372_v44  ;;  %v304_v47 = vsel %vm4389_vm4, 0, %v303_v45  ;;  %v366_v48 = vld [vmem:[#allocation2 + $0x30] sm:$0x10] }
  0x2d   :  { %374 = vst [vmem:[#allocation2 + $0x40] sm:$0x10] %v373_v46  ;;  %305 = vst [vmem:[#allocation2 + $0x30] sm:$0x1] %v304_v47  ;;  %v367_v49 = vsel %vm4395_vm5, 0, %v366_v48  ;;  %v4044_v12 = vld [vmem:[%s5166_s2 + $0x88] sm:$0xff]  }
  0x2e   :  { %368 = vst [vmem:[#allocation2 + $0x30] sm:$0x10] %v367_v49  ;;  %280 = vst.msk [vmem:[#allocation2 + $0x48] sm:$0xff] %vm276_vm6, %v4295_v50  ;;  %v324_v51 = vld [vmem:[#allocation2 + $0x68] sm:$0x1]  ;;  %3969 = vmatprep.subr.bf16.mxu0 %v4044_v12  ;;  %s4297_s15 = smov 64  }
  0x2f   :  { %281 = vst.msk [vmem:[#allocation2 + $0x98] sm:$0xff] %vm276_vm6, %v4295_v50  ;;  %v387_v52 = vld [vmem:[#allocation2 + $0x68] sm:$0x10]  ;;  %v325_v53 = vsel %vm4389_vm4, 0, %v324_v51  ;;  %v348_v56 = vld [vmem:[#allocation2] sm:$0x10]  ;;  %3970 = vmatpush3.bf16.msra.mxu0 %v4044_v12 }
  0x30   :  { %v388_v54 = vsel %vm4395_vm5, 0, %v387_v52  ;;  %326 = vst [vmem:[#allocation2 + $0x68] sm:$0x1] %v325_v53  ;;  %v349_v57 = vsel %vm4395_vm5, 0, %v348_v56  ;;  %v318_v58 = vld [vmem:[#allocation2 + $0x58] sm:$0x1] }
  0x31   :  { %389 = vst [vmem:[#allocation2 + $0x68] sm:$0x10] %v388_v54  ;;  %v381_v59 = vld [vmem:[#allocation2 + $0x58] sm:$0x10]  ;;  %350 = vst [vmem:[#allocation2] sm:$0x10] %v349_v57 }
  0x32   :  { %3960 = vmatmul.mubr.bf16.gmra.mrb[8].mxu0 %v4030_v13  ;;  %v319_v60 = vsel %vm4389_vm4, 0, %v318_v58  ;;  %v382_v61 = vsel %vm4395_vm5, 0, %v381_v59  ;;  %v327_v62 = vld [vmem:[#allocation2 + $0x70] sm:$0x1]  ;;  %v390_v63 = vld [vmem:[#allocation2 + $0x70] sm:$0x10] }
  0x33   :  { %3963 = vmatprep.mubr.bf16.mxu0 %v4031_v14  ;;  %320 = vst [vmem:[#allocation2 + $0x58] sm:$0x1] %v319_v60  ;;  %383 = vst [vmem:[#allocation2 + $0x58] sm:$0x10] %v382_v61  ;;  %v328_v0 = vsel %vm4389_vm4, 0, %v327_v62  ;;  %v391_v1 = vsel %vm4395_vm5, 0, %v390_v63 }
  0x34   :  { %329 = vst [vmem:[#allocation2 + $0x70] sm:$0x1] %v328_v0  ;;  %392 = vst [vmem:[#allocation2 + $0x70] sm:$0x10] %v391_v1  ;;  %v321_v2 = vld [vmem:[#allocation2 + $0x60] sm:$0x1] }
  0x35   :  { %v384_v3 = vld [vmem:[#allocation2 + $0x60] sm:$0x10]  ;;  %v322_v4 = vsel %vm4389_vm4, 0, %v321_v2  ;;  %v336_v6 = vld [vmem:[#allocation2 + $0x88] sm:$0x1]  ;;  %s4298_s16 = smov 32  }
  0x36   :  { %v385_v5 = vsel %vm4395_vm5, 0, %v384_v3  ;;  %323 = vst [vmem:[#allocation2 + $0x60] sm:$0x1] %v322_v4  ;;  %v399_v7 = vld [vmem:[#allocation2 + $0x88] sm:$0x10]  ;;  %v337_v8 = vsel %vm4389_vm4, 0, %v336_v6 }
  0x37   :  { %386 = vst [vmem:[#allocation2 + $0x60] sm:$0x10] %v385_v5  ;;  %v400_v9 = vsel %vm4395_vm5, 0, %v399_v7  ;;  %v285_v10 = vld [vmem:[#allocation2] sm:$0x1]  ;;  %vm2515_vm0 = vcmask 523264  }
  0x38   :  { %338 = vst [vmem:[#allocation2 + $0x88] sm:$0x1] %v337_v8  ;;  %401 = vst [vmem:[#allocation2 + $0x88] sm:$0x10] %v400_v9  ;;  %v286_v11 = vsel %vm4389_vm4, 0, %v285_v10  ;;  %vm2532_vm1 = vcmask 785408  }
  0x39   :  { %287 = vst [vmem:[#allocation2] sm:$0x1] %v286_v11  ;;  %v330_v13 = vld [vmem:[#allocation2 + $0x78] sm:$0x1]  ;;  %v393_v14 = vld [vmem:[#allocation2 + $0x78] sm:$0x10] }
  0x3a   :  { %3964 = vmatmul.mubr.bf16.gmra.mrb[12].mxu0 %v4032_v15  ;;  %v331_v15 = vsel %vm4389_vm4, 0, %v330_v13  ;;  %v394_v17 = vsel %vm4395_vm5, 0, %v393_v14  ;;  %v312_v18 = vld [vmem:[#allocation2 + $0x48] sm:$0x1]  ;;  %v375_v19 = vld [vmem:[#allocation2 + $0x48] sm:$0x10] }
  0x3b   :  { %332 = vst [vmem:[#allocation2 + $0x78] sm:$0x1] %v331_v15  ;;  %395 = vst [vmem:[#allocation2 + $0x78] sm:$0x10] %v394_v17  ;;  %v313_v21 = vsel %vm4389_vm4, 0, %v312_v18  ;;  %v376_v22 = vsel %vm4395_vm5, 0, %v375_v19 }
  0x3c   :  { %314 = vst [vmem:[#allocation2 + $0x48] sm:$0x1] %v313_v21  ;;  %377 = vst [vmem:[#allocation2 + $0x48] sm:$0x10] %v376_v22  ;;  %v339_v23 = vld [vmem:[#allocation2 + $0x90] sm:$0x1] }
  0x3d   :  { %v402_v24 = vld [vmem:[#allocation2 + $0x90] sm:$0x10]  ;;  %v340_v25 = vsel %vm4389_vm4, 0, %v339_v23  ;;  %v333_v27 = vld [vmem:[#allocation2 + $0x80] sm:$0x1] }
  0x3e   :  { %v403_v26 = vsel %vm4395_vm5, 0, %v402_v24  ;;  %341 = vst [vmem:[#allocation2 + $0x90] sm:$0x1] %v340_v25  ;;  %v396_v28 = vld [vmem:[#allocation2 + $0x80] sm:$0x10]  ;;  %v334_v29 = vsel %vm4389_vm4, 0, %v333_v27 }
  0x3f   :  { %404 = vst [vmem:[#allocation2 + $0x90] sm:$0x10] %v403_v26  ;;  %v397_v30 = vsel %vm4395_vm5, 0, %v396_v28  ;;  %335 = vst [vmem:[#allocation2 + $0x80] sm:$0x1] %v334_v29 }
  0x40   :  { %398 = vst [vmem:[#allocation2 + $0x80] sm:$0x10] %v397_v30  ;;  %v652_v31 = vld [vmem:[#allocation2] sm:$0x1f]  ;;  %v378_v35 = vld [vmem:[#allocation2 + $0x50] sm:$0x10] }
  0x41   :  { %v3351_v33 = vcombine.low %v652_v31, %v652_v31  ;;  %v379_v38 = vsel %vm4395_vm5, 0, %v378_v35  ;;  %v315_v41 = vld [vmem:[#allocation2 + $0x50] sm:$0x1]  ;;  %v975_v42 = vld [vmem:[#allocation2] sm:$0x1e]  ;;  %v3352_v46 = vcombine.high %v652_v31, %v652_v31 }
  0x42   :  { %380 = vst [vmem:[#allocation2 + $0x50] sm:$0x10] %v379_v38  ;;  %v316_v43 = vsel %vm4389_vm4, 0, %v315_v41  ;;  %v3383_v49 = vcombine.low %v975_v42, %v975_v42  ;;  %v3384_v52 = vcombine.high %v975_v42, %v975_v42  ;;  %v4486_v55 = vld [vmem:[%s5168_s4] ss:$0 sm:$0xff]  ;;  %s4296_s4 = smov 96  }
  0x43   :  { %v1658_v32 = vld [vmem:[#allocation2 + $0x48] sm:$0x1f]  ;;  %v752_v36 = vshrl.u32 %v3351_v33, 16  ;;  %v755_v37 = vshll.u32 %v3351_v33, 16  ;;  %317 = vst [vmem:[#allocation2 + $0x50] sm:$0x1] %v316_v43 }
  0x44   :  { %v3525_v34 = vcombine.low %v1658_v32, %v1658_v32  ;;  %v1978_v50 = vld [vmem:[#allocation2 + $0x48] sm:$0x1e]  ;;  %v3526_v51 = vcombine.high %v1658_v32, %v1658_v32  ;;  %v761_v58 = vshll.u32 %v3352_v46, 16  ;;  %v4488_v60 = vrot.slane %v3383_v49, 9 }
  0x45   :  { %v754_v44 = vrot.slane %v752_v36, 4  ;;  %v757_v45 = vrot.slane %v755_v37, 5  ;;  %v3557_v56 = vcombine.low %v1978_v50, %v1978_v50  ;;  %v3558_v57 = vcombine.high %v1978_v50, %v1978_v50 }
  0x46   :  { %v1846_v39 = vshrl.u32 %v3525_v34, 16  ;;  %v1849_v40 = vshll.u32 %v3525_v34, 16  ;;  %vm748_vm9 = vsmask.f32 3328  ;;  %v1855_v61 = vshll.u32 %v3526_v51, 16 }
  0x47   :  { %v758_v53 = vor.u32 %v757_v45, %v754_v44  ;;  %vm749_vm10 = vsmask.f32 7440  ;;  %vm586_vm12 = vsmask.f32 4354  ;;  %v4490_v1 = vrot.slane %v3384_v52, 5 }
  0x48   :  { %v1848_v47 = vrot.slane %v1846_v39, 4  ;;  %v1851_v48 = vrot.slane %v1849_v40, 5  ;;  %v4498_v7 = vrot.slane %v3557_v56, 9  ;;  %v4500_v8 = vrot.slane %v3558_v57, 5  ;;  %vm4505_vm14 = vmor %vm748_vm9, %vm749_vm10  ;;  %v594_v57 = vld [vmem:[#allocation2 + $0x18] sm:$0x1f] }
  0x49   :  { %v983_v54 = vld [vmem:[#allocation2 + $0x50] sm:$0x1e]  ;;  %v759_v2 = vrot.slane %v758_v53, 4  ;;  %v763_v9 = vrot.slane %v761_v58, 5  ;;  %v1857_v14 = vrot.slane %v1855_v61, 5  ;;  %v1077_v31 = vsel %vm4494_vm13, %v4488_v60, %v4490_v1  ;;  %vm4544_vm15 = vmand %vm585_vm11, %vm586_vm12 }
  0x4a   :  { %v1852_v59 = vor.u32 %v1851_v48, %v1848_v47  ;;  %v3399_v62 = vcombine.low %v983_v54, %v983_v54  ;;  %v3400_v63 = vcombine.high %v983_v54, %v983_v54  ;;  %v660_v0 = vld [vmem:[#allocation2 + $0x50] sm:$0x1f]  ;;  %v2098_v35 = vsel %vm4494_vm13, %v4498_v7, %v4500_v8 }
  0x4b   :  { %v3367_v3 = vcombine.low %v660_v0, %v660_v0  ;;  %v3368_v4 = vcombine.high %v660_v0, %v660_v0  ;;  %v4524_v32 = vsel %vm4505_vm14, %v759_v2, %v763_v9  ;;  %v588_v2 = vld [vmem:[#allocation2 + $0x8] sm:$0x1f] }
  0x4c   :  { %v1853_v10 = vrot.slane %v1852_v59, 4  ;;  %v4510_v21 = vrot.slane %v3399_v62, 9  ;;  %v4512_v22 = vrot.slane %v3400_v63, 5 }
  0x4d   :  { %v864_v15 = vshrl.u32 %v3367_v3, 16  ;;  %v867_v17 = vshll.u32 %v3367_v3, 16  ;;  %v4514_v23 = vshll.u32 %v3368_v4, 16 }
  0x4e   :  { %v4532_v39 = vsel %vm4505_vm14, %v1853_v10, %v1857_v14  ;;  %v1109_v40 = vsel %vm4494_vm13, %v4510_v21, %v4512_v22 }
  0x4f   :  { %v866_v27 = vrot.slane %v864_v15, 4  ;;  %v869_v28 = vrot.slane %v867_v17, 5  ;;  %v875_v44 = vrot.slane %v4514_v23, 5 }
  0x51   :  { %v870_v36 = vor.u32 %v869_v28, %v866_v27 }
  0x53   :  { %v4539_v49 = vrot.slane %v870_v36, 4 }
  0xf5   :  { %v3953_v5 = vpop.f32.mrb[0].mxu0 }
  0xf6   :  { %v206_v11 = vadd.f32 %v3953_v5, %v4486_v55  ;;  %v197_v12 = vpop.f32.mrb[1].mxu0 }
  0xf7   :  { %v198_v18 = vadd.f32 %v4486_v55, %v197_v12  ;;  %v3954_v19 = vpop.f32.mrb[2].mxu0 }
  0xf8   :  { %v262_v24 = vmax.f32 %v206_v11, 0.0  ;;  %v209_v25 = vadd.f32 %v3954_v19, %v4486_v55  ;;  %v200_v26 = vpop.f32.mrb[3].mxu0  ;;  %v597_v11 = vld [vmem:[#allocation2 + $0x20] sm:$0x1f]  ;;  %v591_v19 = vld [vmem:[#allocation2 + $0x10] sm:$0x1f] }
  0xf9   :  { %v260_v29 = vmax.f32 %v198_v18, 0.0  ;;  %v201_v30 = vadd.f32 %v4486_v55, %v200_v26 }
  0xfa   :  { %v3719_v33 = vpack.c.bf16 %v262_v24, %v262_v24  ;;  %v263_v34 = vmax.f32 %v209_v25, 0.0 }
  0xfb   :  { %v3717_v37 = vpack.c.bf16 %v260_v29, %v260_v29  ;;  %v261_v38 = vmax.f32 %v201_v30, 0.0 }
  0xfc   :  { %v471_v41 = vshrl.u32 %v3719_v33, 16  ;;  %v474_v42 = vshll.u32 %v3719_v33, 16  ;;  %v3720_v43 = vpack.c.bf16 %v263_v34, %v263_v34 }
  0xfd   :  { %v457_v45 = vshrl.u32 %v3717_v37, 16  ;;  %v460_v46 = vshll.u32 %v3717_v37, 16  ;;  %v3718_v47 = vpack.c.bf16 %v261_v38, %v261_v38  ;;  %v3957_v48 = vpop.f32.mrb[4].mxu0 }
  0xfe   :  { %v473_v50 = vrot.slane %v471_v41, 7  ;;  %v478_v51 = vshrl.u32 %v3720_v43, 16  ;;  %v481_v52 = vshll.u32 %v3720_v43, 16  ;;  %v222_v53 = vadd.f32 %v3957_v48, %v4486_v55  ;;  %v213_v54 = vpop.f32.mrb[5].mxu0 }
  0xff   :  { %v459_v58 = vrot.slane %v457_v45, 7  ;;  %v464_v59 = vshrl.u32 %v3718_v47, 16  ;;  %v467_v61 = vshll.u32 %v3718_v47, 16  ;;  %v214_v62 = vadd.f32 %v4486_v55, %v213_v54  ;;  %v3958_v63 = vpop.f32.mrb[6].mxu0 }
 0x100   :  { %v476_v0 = vor.u32 %v474_v42, %v473_v50  ;;  %v480_v3 = vrot.slane %v478_v51, 7  ;;  %v266_v4 = vmax.f32 %v222_v53, 0.0  ;;  %v225_v5 = vadd.f32 %v3958_v63, %v4486_v55  ;;  %v216_v9 = vpop.f32.mrb[7].mxu0  ;;  %v606_v51 = vld [vmem:[#allocation2 + $0x38] sm:$0x1f] }
 0x101   :  { %v462_v10 = vor.u32 %v460_v46, %v459_v58  ;;  %v466_v12 = vrot.slane %v464_v59, 7  ;;  %v264_v14 = vmax.f32 %v214_v62, 0.0  ;;  %v217_v15 = vadd.f32 %v4486_v55, %v216_v9  ;;  %v603_v9 = vld [vmem:[#allocation2 + $0x30] sm:$0x1f] }
 0x102   :  { %v595_v17 = vsel %vm4544_vm15, %v476_v0, %v594_v57  ;;  %v483_v18 = vor.u32 %v481_v52, %v480_v3  ;;  %v3723_v24 = vpack.c.bf16 %v266_v4, %v266_v4  ;;  %v267_v25 = vmax.f32 %v225_v5, 0.0  ;;  %v609_v4 = vld [vmem:[#allocation2 + $0x40] sm:$0x1f] }
 0x103   :  { %596 = vst [vmem:[#allocation2 + $0x18] sm:$0x1f] %v595_v17  ;;  %v589_v26 = vsel %vm4544_vm15, %v462_v10, %v588_v2  ;;  %v469_v27 = vor.u32 %v467_v61, %v466_v12  ;;  %v3721_v28 = vpack.c.bf16 %v264_v14, %v264_v14  ;;  %v265_v29 = vmax.f32 %v217_v15, 0.0  ;;  %v600_v61 = vld [vmem:[#allocation2 + $0x28] sm:$0x1f] }
 0x104   :  { %590 = vst [vmem:[#allocation2 + $0x8] sm:$0x1f] %v589_v26  ;;  %v598_v30 = vsel %vm4544_vm15, %v483_v18, %v597_v11  ;;  %v499_v33 = vshrl.u32 %v3723_v24, 16  ;;  %v502_v34 = vshll.u32 %v3723_v24, 16  ;;  %v3724_v36 = vpack.c.bf16 %v267_v25, %v267_v25 }
 0x105   :  { %599 = vst [vmem:[#allocation2 + $0x20] sm:$0x1f] %v598_v30  ;;  %v592_v37 = vsel %vm4544_vm15, %v469_v27, %v591_v19  ;;  %v485_v38 = vshrl.u32 %v3721_v28, 16  ;;  %v488_v41 = vshll.u32 %v3721_v28, 16  ;;  %v3722_v42 = vpack.c.bf16 %v265_v29, %v265_v29  ;;  %v3961_v43 = vpop.f32.mrb[8].mxu0 }
 0x106   :  { %593 = vst [vmem:[#allocation2 + $0x10] sm:$0x1f] %v592_v37  ;;  %v501_v45 = vrot.slane %v499_v33, 7  ;;  %v506_v46 = vshrl.u32 %v3724_v36, 16  ;;  %v509_v47 = vshll.u32 %v3724_v36, 16  ;;  %v238_v48 = vadd.f32 %v3961_v43, %v4486_v55  ;;  %v229_v50 = vpop.f32.mrb[9].mxu0 }
 0x107   :  { %v487_v52 = vrot.slane %v485_v38, 7  ;;  %v492_v53 = vshrl.u32 %v3722_v42, 16  ;;  %v495_v54 = vshll.u32 %v3722_v42, 16  ;;  %v230_v57 = vadd.f32 %v4486_v55, %v229_v50  ;;  %v3962_v58 = vpop.f32.mrb[10].mxu0 }
 0x108   :  { %v504_v59 = vor.u32 %v502_v34, %v501_v45  ;;  %v508_v62 = vrot.slane %v506_v46, 7  ;;  %v270_v63 = vmax.f32 %v238_v48, 0.0  ;;  %v241_v0 = vadd.f32 %v3962_v58, %v4486_v55  ;;  %v232_v2 = vpop.f32.mrb[11].mxu0 }
 0x109   :  { %v490_v3 = vor.u32 %v488_v41, %v487_v52  ;;  %v494_v5 = vrot.slane %v492_v53, 7  ;;  %v268_v10 = vmax.f32 %v230_v57, 0.0  ;;  %v233_v11 = vadd.f32 %v4486_v55, %v232_v2  ;;  %v612_v41 = vld [vmem:[#allocation2 + $0x58] sm:$0x1f] }
 0x10a   :  { %v607_v12 = vsel %vm4544_vm15, %v504_v59, %v606_v51  ;;  %v511_v14 = vor.u32 %v509_v47, %v508_v62  ;;  %v3727_v15 = vpack.c.bf16 %v270_v63, %v270_v63  ;;  %v1476_v17 = vld [vmem:[#allocation2 + $0x18] sm:$0x1e]  ;;  %v4570_v18 = vsel %vm4505_vm14, %v4539_v49, %v875_v44  ;;  %v618_v49 = vld [vmem:[#allocation2 + $0x68] sm:$0x1f] }
 0x10b   :  { %608 = vst [vmem:[#allocation2 + $0x38] sm:$0x1f] %v607_v12  ;;  %v601_v19 = vsel %vm4544_vm15, %v490_v3, %v600_v61  ;;  %v497_v24 = vor.u32 %v495_v54, %v494_v5  ;;  %v3725_v25 = vpack.c.bf16 %v268_v10, %v268_v10  ;;  %v3467_v26 = vcombine.low %v1476_v17, %v1476_v17  ;;  %v4574_v27 = vld [vmem:[#allocation2 + $0x18] sm:$0x1e] }
 0x10c   :  { %602 = vst [vmem:[#allocation2 + $0x28] sm:$0x1f] %v601_v19  ;;  %v610_v28 = vsel %vm4544_vm15, %v511_v14, %v609_v4  ;;  %v4033_v29 = vld [vmem:[#allocation2 + $0x18] ss:$8 sps:$4 sm:$0xff]   ;;  %v527_v23 = vshrl.u32 %v3727_v15, 16  ;;  %v530_v30 = vshll.u32 %v3727_v15, 16  ;;  %v3468_v33 = vcombine.high %v1476_v17, %v1476_v17 }
 0x10d   :  { %611 = vst [vmem:[#allocation2 + $0x40] sm:$0x1f] %v610_v28  ;;  %v604_v44 = vsel %vm4544_vm15, %v497_v24, %v603_v9  ;;  %v513_v34 = vshrl.u32 %v3725_v25, 16  ;;  %v516_v36 = vshll.u32 %v3725_v25, 16  ;;  %v3545_v37 = vcombine.low %v4574_v27, %v4574_v27  ;;  %2293 = vrot.lane.b32.xlu1 %v4033_v29, %s4296_s4  ;;  %v1477_v42 = vld [vmem:[#allocation2 + $0x20] sm:$0x1e] }
 0x10e   :  { %605 = vst [vmem:[#allocation2 + $0x30] sm:$0x1f] %v604_v44  ;;  %v529_v38 = vrot.slane %v527_v23, 7  ;;  %v3497_v43 = vrot.slane %v3467_v26, 9  ;;  %v1580_v45 = vrot.slane %v3468_v33, 5  ;;  %v271_v46 = vmax.f32 %v241_v0, 0.0 }
 0x10f   :  { %v515_v47 = vrot.slane %v513_v34, 7  ;;  %v3469_v48 = vcombine.low %v1477_v42, %v1477_v42  ;;  %v3470_v50 = vcombine.high %v1477_v42, %v1477_v42  ;;  %v269_v51 = vmax.f32 %v233_v11, 0.0  ;;  %v1971_v52 = vld [vmem:[#allocation2 + $0x10] sm:$0x1e]  ;;  %v3965_v53 = vpop.f32.mrb[12].mxu0 }
 0x110   :  { %v532_v54 = vor.u32 %v530_v30, %v529_v38  ;;  %v4035_v57 = vld [vmem:[#allocation2 + $0x10] ss:$8 sps:$4 sm:$0xff]   ;;  %v1581_v58 = vsel %vm4494_vm13, %v3497_v43, %v1580_v45  ;;  %v3728_v59 = vpack.c.bf16 %v271_v46, %v271_v46  ;;  %v3543_v61 = vcombine.low %v1971_v52, %v1971_v52  ;;  %v245_v62 = vpop.f32.mrb[13].mxu0  ;;  %v1474_v17 = vld [vmem:[#allocation2 + $0x8] sm:$0x1e] }
 0x111   :  { %v518_v63 = vor.u32 %v516_v36, %v515_v47  ;;  %v3498_v2 = vrot.slane %v3469_v48, 9  ;;  %v1584_v3 = vrot.slane %v3470_v50, 5  ;;  %v3726_v4 = vpack.c.bf16 %v269_v51, %v269_v51  ;;  %2411 = vrot.lane.b32.xlu1 %v4035_v57, %s4297_s15  ;;  %v621_v25 = vld [vmem:[#allocation2 + $0x70] sm:$0x1f]  ;;  %v4595_v34 = vpop.f32.mrb[14].mxu0 }
 0x112   :  { %v619_v0 = vsel %vm4544_vm15, %v532_v54, %v618_v49  ;;  %v534_v5 = vshrl.u32 %v3728_v59, 16  ;;  %v537_v9 = vshll.u32 %v3728_v59, 16  ;;  %v3544_v10 = vcombine.high %v1971_v52, %v1971_v52  ;;  %v4045_v29 = vld [vmem:[#allocation2 + $0x8] ss:$8 sps:$4 sm:$0xff]   ;;  %v615_v38 = vld [vmem:[#allocation2 + $0x60] sm:$0x1f] }
 0x113   :  { %620 = vst [vmem:[#allocation2 + $0x68] sm:$0x1f] %v619_v0  ;;  %v613_v11 = vsel %vm4544_vm15, %v518_v63, %v612_v41  ;;  %v1585_v12 = vsel %vm4494_vm13, %v3498_v2, %v1584_v3  ;;  %v520_v14 = vshrl.u32 %v3726_v4, 16  ;;  %v523_v15 = vshll.u32 %v3726_v4, 16  ;;  %v1475_v49 = vld [vmem:[#allocation2 + $0x10] sm:$0x1e] }
 0x114   :  { %614 = vst [vmem:[#allocation2 + $0x58] sm:$0x1f] %v613_v11  ;;  %v3632_v19 = vcombine.low %v1581_v58, %v1585_v12  ;;  %v536_v24 = vrot.slane %v534_v5, 7  ;;  %v3546_v26 = vcombine.high %v4574_v27, %v4574_v27  ;;  %v3575_v28 = vrot.slane %v3543_v61, 9  ;;  %v4600_v43 = vpop.f32.mrb[15].mxu0 }
 0x115   :  { %v522_v23 = vrot.slane %v520_v14, 7  ;;  %v2069_v30 = vrot.slane %v3544_v10, 5  ;;  %v3576_v33 = vrot.slane %v3545_v37, 9  ;;  %v254_v44 = vadd.f32 %v3965_v53, %v4486_v55  ;;  %2291 = vrot.lane.b32.xlu1 %v4045_v29, %s4296_s4  ;;  %v1973_v53 = vld [vmem:[#allocation2 + $0x20] sm:$0x1e] }
 0x116   :  { %2357 = vrot.lane.b32.xlu0 %v3632_v19, %s4298_s16  ;;  %v539_v36 = vor.u32 %v537_v9, %v536_v24  ;;  %v2073_v41 = vrot.slane %v3546_v26, 5  ;;  %v246_v42 = vadd.f32 %v4486_v55, %v245_v62  ;;  %v3463_v27 = vcombine.low %v1474_v17, %v1474_v17  ;;  %v1974_v61 = vld [vmem:[#allocation2 + $0x28] sm:$0x1e]  ;;  %v1975_v26 = vld [vmem:[#allocation2 + $0x30] sm:$0x1e] }
 0x117   :  { %v525_v45 = vor.u32 %v523_v15, %v522_v23  ;;  %v2070_v37 = vsel %vm4494_vm13, %v3575_v28, %v2069_v30  ;;  %v274_v46 = vmax.f32 %v254_v44, 0.0  ;;  %v3464_v47 = vcombine.high %v1474_v17, %v1474_v17  ;;  %v976_v10 = vld [vmem:[#allocation2 + $0x8] sm:$0x1e]  ;;  %v654_v60 = vld [vmem:[#allocation2 + $0x10] sm:$0x1f] }
 0x118   :  { %v622_v48 = vsel %vm4544_vm15, %v539_v36, %v621_v25  ;;  %v2074_v50 = vsel %vm4494_vm13, %v3576_v33, %v2073_v41  ;;  %v272_v51 = vmax.f32 %v246_v42, 0.0  ;;  %v3465_v52 = vcombine.low %v1475_v49, %v1475_v49  ;;  %v630_v28 = vld [vmem:[#allocation2 + $0x88] sm:$0x1f]  ;;  %v1976_v42 = vld [vmem:[#allocation2 + $0x38] sm:$0x1e] }
 0x119   :  { %623 = vst [vmem:[#allocation2 + $0x70] sm:$0x1f] %v622_v48  ;;  %v616_v54 = vsel %vm4544_vm15, %v525_v45, %v615_v38  ;;  %v3655_v57 = vcombine.low %v2070_v37, %v2074_v50  ;;  %v3731_v58 = vpack.c.bf16 %v274_v46, %v274_v46  ;;  %v3466_v59 = vcombine.high %v1475_v49, %v1475_v49  ;;  %v624_v49 = vld [vmem:[#allocation2 + $0x78] sm:$0x1f] }
 0x11a   :  { %617 = vst [vmem:[#allocation2 + $0x60] sm:$0x1f] %v616_v54  ;;  %v3729_v62 = vpack.c.bf16 %v272_v51, %v272_v51  ;;  %v3495_v63 = vrot.slane %v3463_v27, 9  ;;  %v1572_v2 = vrot.slane %v3464_v47, 5  ;;  %v3496_v3 = vrot.slane %v3465_v52, 9 }
 0x11b   :  { %3971 = vmatprep.mubr.msk.bf16.mxu0 %vm276_vm6, %v3655_v57  ;;  %v555_v4 = vshrl.u32 %v3731_v58, 16  ;;  %v558_v0 = vshll.u32 %v3731_v58, 16  ;;  %v1576_v5 = vrot.slane %v3466_v59, 5  ;;  %v3547_v9 = vcombine.low %v1973_v53, %v1973_v53  ;;  %v977_v47 = vld [vmem:[#allocation2 + $0x10] sm:$0x1e] }
 0x11c   :  { %v541_v11 = vshrl.u32 %v3729_v62, 16  ;;  %v544_v12 = vshll.u32 %v3729_v62, 16  ;;  %v1573_v14 = vsel %vm4494_vm13, %v3495_v63, %v1572_v2  ;;  %v3548_v15 = vcombine.high %v1973_v53, %v1973_v53  ;;  %v978_v53 = vld [vmem:[#allocation2 + $0x18] sm:$0x1e]  ;;  %v4058_v59 = vld [vmem:[#allocation2 + $0x20] ss:$8 sps:$4 sm:$0xff]  }
 0x11d   :  { %v557_v17 = vrot.slane %v555_v4, 7  ;;  %v1577_v19 = vsel %vm4494_vm13, %v3496_v3, %v1576_v5  ;;  %v3549_v24 = vcombine.low %v1974_v61, %v1974_v61  ;;  %v3550_v25 = vcombine.high %v1974_v61, %v1974_v61  ;;  %v1977_v4 = vld [vmem:[#allocation2 + $0x40] sm:$0x1e] }
 0x11e   :  { %v543_v29 = vrot.slane %v541_v11, 7  ;;  %v3631_v23 = vcombine.low %v1573_v14, %v1577_v19  ;;  %v3577_v30 = vrot.slane %v3547_v9, 9  ;;  %v2077_v33 = vrot.slane %v3548_v15, 5  ;;  %v4067_v19 = vld [vmem:[#allocation2 + $0x40] ss:$8 sps:$4 sm:$0xff]  }
 0x11f   :  { %v560_v44 = vor.u32 %v558_v0, %v557_v17  ;;  %v3578_v36 = vrot.slane %v3549_v24, 9  ;;  %v2081_v38 = vrot.slane %v3550_v25, 5  ;;  %v3385_v41 = vcombine.low %v976_v10, %v976_v10  ;;  %v653_v0 = vld [vmem:[#allocation2 + $0x8] sm:$0x1f] }
 0x120   :  { %v546_v27 = vor.u32 %v544_v12, %v543_v29  ;;  %2355 = vrot.lane.b32.xlu0 %v3631_v23, %s4298_s16  ;;  %v2078_v45 = vsel %vm4494_vm13, %v3577_v30, %v2077_v33  ;;  %v3386_v37 = vcombine.high %v976_v10, %v976_v10  ;;  %v3551_v46 = vcombine.low %v1975_v26, %v1975_v26 }
 0x121   :  { %v631_v48 = vsel %vm4544_vm15, %v560_v44, %v630_v28  ;;  %v2082_v50 = vsel %vm4494_vm13, %v3578_v36, %v2081_v38  ;;  %v3416_v51 = vrot.slane %v3385_v41, 9  ;;  %v3552_v52 = vcombine.high %v1975_v26, %v1975_v26  ;;  %v655_v36 = vld [vmem:[#allocation2 + $0x18] sm:$0x1f] }
 0x122   :  { %632 = vst [vmem:[#allocation2 + $0x88] sm:$0x1f] %v631_v48  ;;  %v625_v54 = vsel %vm4544_vm15, %v546_v27, %v624_v49  ;;  %v3656_v57 = vcombine.low %v2078_v45, %v2082_v50  ;;  %v1080_v58 = vrot.slane %v3386_v37, 5  ;;  %v3553_v61 = vcombine.low %v1976_v42, %v1976_v42  ;;  %v4073_v37 = vld [vmem:[#allocation2 + $0x30] ss:$8 sps:$4 sm:$0xff]  }
 0x123   :  { %626 = vst [vmem:[#allocation2 + $0x78] sm:$0x1f] %v625_v54  ;;  %v3554_v62 = vcombine.high %v1976_v42, %v1976_v42  ;;  %v3579_v63 = vrot.slane %v3551_v46, 9  ;;  %v2085_v2 = vrot.slane %v3552_v52, 5  ;;  %v3387_v3 = vcombine.low %v977_v47, %v977_v47  ;;  %v1651_v54 = vld [vmem:[#allocation2 + $0x10] sm:$0x1f] }
 0x124   :  { %3972 = vmatmul.mubr.msk.bf16.vlgmr.msra.gmra.mrb[16].mxu0 %vm276_vm6, %v3656_v57  ;;  %v1081_v5 = vsel %vm4494_vm13, %v3416_v51, %v1080_v58  ;;  %2413 = vrot.lane.b32.xlu0 %v4058_v59, %s4297_s15  ;;  %v3580_v9 = vrot.slane %v3553_v61, 9  ;;  %v3388_v10 = vcombine.high %v977_v47, %v977_v47  ;;  %v3389_v11 = vcombine.low %v978_v53, %v978_v53  ;;  %v4105_v56 = vld [vmem:[#allocation2 + $0x58] ss:$8 sps:$4 sm:$0xff]  }
 0x125   :  { %v3607_v12 = vcombine.low %v1077_v31, %v1081_v5  ;;  %v2086_v14 = vsel %vm4494_vm13, %v3579_v63, %v2085_v2  ;;  %v2089_v15 = vrot.slane %v3554_v62, 5  ;;  %v3390_v17 = vcombine.high %v978_v53, %v978_v53 }
 0x126   :  { %v3417_v24 = vrot.slane %v3387_v3, 9  ;;  %v1084_v25 = vrot.slane %v3388_v10, 5  ;;  %v3418_v26 = vrot.slane %v3389_v11, 9  ;;  %v3555_v28 = vcombine.low %v1977_v4, %v1977_v4 }
 0x127   :  { %2235 = vrot.lane.b32.xlu1 %v3607_v12, %s4297_s15  ;;  %v2090_v29 = vsel %vm4494_vm13, %v3580_v9, %v2089_v15  ;;  %v1088_v23 = vrot.slane %v3390_v17, 5  ;;  %v3556_v30 = vcombine.high %v1977_v4, %v1977_v4  ;;  %v3353_v33 = vcombine.low %v653_v0, %v653_v0  ;;  %v1652_v4 = vld [vmem:[#allocation2 + $0x18] sm:$0x1f] }
 0x128   :  { %v3657_v1 = vcombine.low %v2086_v14, %v2090_v29  ;;  %v1085_v31 = vsel %vm4494_vm13, %v3417_v24, %v1084_v25  ;;  %2417 = vrot.lane.b32.xlu0 %v4067_v19, %s4297_s15  ;;  %v3581_v44 = vrot.slane %v3555_v28, 9  ;;  %v3354_v49 = vcombine.high %v653_v0, %v653_v0  ;;  %v4072_v0 = vld [vmem:[#allocation2 + $0x38] ss:$8 sps:$4 sm:$0xff]  }
 0x129   :  { %v1089_v38 = vsel %vm4494_vm13, %v3418_v26, %v1088_v23  ;;  %v2093_v41 = vrot.slane %v3556_v30, 5  ;;  %v766_v42 = vshrl.u32 %v3353_v33, 16  ;;  %v769_v27 = vshll.u32 %v3353_v33, 16  ;;  %v4195_v29 = vld [vmem:[%s5166_s2 + $0x40] sm:$0xff]   ;;  %v4074_v23 = vld [vmem:[#allocation2 + $0x28] ss:$8 sps:$4 sm:$0xff]  }
 0x12a   :  { %3975 = vmatprep.mubr.msk.bf16.mxu0 %vm276_vm6, %v3657_v1  ;;  %v3608_v45 = vcombine.low %v1085_v31, %v1089_v38  ;;  %v775_v46 = vshll.u32 %v3354_v49, 16  ;;  %v3355_v47 = vcombine.low %v654_v60, %v654_v60  ;;  %v3356_v48 = vcombine.high %v654_v60, %v654_v60  ;;  %v979_v31 = vld [vmem:[#allocation2 + $0x20] sm:$0x1e]  ;;  %3851 = vmatprep.subr.bf16.mxu1 %v4195_v29 }
 0x12b   :  { %v2094_v50 = vsel %vm4494_vm13, %v3581_v44, %v2093_v41  ;;  %v768_v51 = vrot.slane %v766_v42, 4  ;;  %v771_v52 = vrot.slane %v769_v27, 5  ;;  %v3357_v53 = vcombine.low %v655_v36, %v655_v36  ;;  %v980_v41 = vld [vmem:[#allocation2 + $0x28] sm:$0x1e] }
 0x12c   :  { %2237 = vrot.lane.b32.xlu1 %v3608_v45, %s4297_s15  ;;  %v3658_v57 = vcombine.low %v2094_v50, %v2098_v35  ;;  %2415 = vrot.lane.b32.xlu0 %v4073_v37, %s4297_s15  ;;  %v777_v58 = vrot.slane %v775_v46, 5  ;;  %v3358_v59 = vcombine.high %v655_v36, %v655_v36  ;;  %v780_v61 = vshrl.u32 %v3355_v47, 16  ;;  %v1480_v50 = vld [vmem:[#allocation2 + $0x38] sm:$0x1e] }
 0x12d   :  { %v772_v62 = vor.u32 %v771_v52, %v768_v51  ;;  %v783_v63 = vshll.u32 %v3355_v47, 16  ;;  %v789_v2 = vshll.u32 %v3356_v48, 16  ;;  %v794_v3 = vshrl.u32 %v3357_v53, 16 }
 0x12e   :  { %3976 = vmatmul.mubr.msk.bf16.gmra.mrb[20].mxu0 %vm276_vm6, %v3658_v57  ;;  %v782_v5 = vrot.slane %v780_v61, 4  ;;  %v797_v9 = vshll.u32 %v3357_v53, 16  ;;  %v803_v10 = vshll.u32 %v3358_v59, 16  ;;  %v3511_v11 = vcombine.low %v1651_v54, %v1651_v54  ;;  %v4196_v57 = vld [vmem:[%s5166_s2] sm:$0xff]  }
 0x12f   :  { %v773_v12 = vrot.slane %v772_v62, 4  ;;  %v785_v7 = vrot.slane %v783_v63, 5  ;;  %v791_v8 = vrot.slane %v789_v2, 5  ;;  %v796_v35 = vrot.slane %v794_v3, 4  ;;  %3852 = vmatpush3.bf16.msra.mxu1 %v4196_v57 }
 0x130   :  { %2297 = vrot.lane.b32.xlu1 %v4072_v0, %s4296_s4  ;;  %v799_v14 = vrot.slane %v797_v9, 5  ;;  %v805_v15 = vrot.slane %v803_v10, 5  ;;  %v3512_v17 = vcombine.high %v1651_v54, %v1651_v54  ;;  %v3513_v19 = vcombine.low %v1652_v4, %v1652_v4  ;;  %v1481_v0 = vld [vmem:[#allocation2 + $0x40] sm:$0x1e] }
 0x131   :  { %v778_v24 = vsel %vm4505_vm14, %v773_v12, %v777_v58  ;;  %v786_v25 = vor.u32 %v785_v7, %v782_v5  ;;  %v3514_v26 = vcombine.high %v1652_v4, %v1652_v4  ;;  %v1748_v28 = vshrl.u32 %v3511_v11, 16  ;;  %v4197_v5 = vld [vmem:[%s5166_s2 + $0x48] sm:$0xff]  }
 0x132   :  { %v3599_v30 = vcombine.low %v4524_v32, %v778_v24  ;;  %v800_v33 = vor.u32 %v799_v14, %v796_v35  ;;  %v1751_v60 = vshll.u32 %v3511_v11, 16  ;;  %v1757_v1 = vshll.u32 %v3512_v17, 16  ;;  %v4198_v7 = vld [vmem:[%s5166_s2 + $0x8] sm:$0xff]   ;;  %3853 = vmatprep.subr.bf16.mxu1 %v4197_v5 }
 0x133   :  { %v787_v44 = vrot.slane %v786_v25, 4  ;;  %v1750_v49 = vrot.slane %v1748_v28, 4  ;;  %v1762_v36 = vshrl.u32 %v3513_v19, 16  ;;  %v1765_v38 = vshll.u32 %v3513_v19, 16  ;;  %3854 = vmatpush3.bf16.msra.mxu1 %v4198_v7 }
 0x134   :  { %2295 = vrot.lane.b32.xlu1 %v4074_v23, %s4296_s4  ;;  %2195 = vrot.lane.b32.xlu0 %v3599_v30, %s4298_s16  ;;  %v801_v42 = vrot.slane %v800_v33, 4  ;;  %v1753_v27 = vrot.slane %v1751_v60, 5  ;;  %v1759_v45 = vrot.slane %v1757_v1, 5  ;;  %v1771_v37 = vshll.u32 %v3514_v26, 16  ;;  %v981_v26 = vld [vmem:[#allocation2 + $0x30] sm:$0x1e] }
 0x135   :  { %v792_v32 = vsel %vm4505_vm14, %v787_v44, %v791_v8  ;;  %v1764_v46 = vrot.slane %v1762_v36, 4  ;;  %v1767_v47 = vrot.slane %v1765_v38, 5  ;;  %v3391_v48 = vcombine.low %v979_v31, %v979_v31  ;;  %v982_v33 = vld [vmem:[#allocation2 + $0x38] sm:$0x1e]  ;;  %v4204_v60 = vld [vmem:[%s5166_s2 + $0x10] sm:$0xff]  }
 0x136   :  { %v806_v51 = vsel %vm4505_vm14, %v801_v42, %v805_v15  ;;  %v1754_v52 = vor.u32 %v1753_v27, %v1750_v49  ;;  %v1773_v53 = vrot.slane %v1771_v37, 5  ;;  %v3392_v54 = vcombine.high %v979_v31, %v979_v31  ;;  %v4203_v15 = vld [vmem:[%s5166_s2 + $0x50] sm:$0xff]   ;;  %v4209_v36 = vld [vmem:[%s5166_s2 + $0x58] sm:$0xff]  }
 0x137   :  { %v3600_v58 = vcombine.low %v792_v32, %v806_v51  ;;  %v1768_v59 = vor.u32 %v1767_v47, %v1764_v46  ;;  %v3393_v61 = vcombine.low %v980_v41, %v980_v41  ;;  %v3394_v62 = vcombine.high %v980_v41, %v980_v41  ;;  %3855 = vmatprep.subr.bf16.mxu1 %v4203_v15  ;;  %v1479_v46 = vld [vmem:[#allocation2 + $0x30] sm:$0x1e] }
 0x138   :  { %v1755_v63 = vrot.slane %v1754_v52, 4  ;;  %v3419_v2 = vrot.slane %v3391_v48, 9  ;;  %v1092_v3 = vrot.slane %v3392_v54, 5  ;;  %v257_v4 = vadd.f32 %v4595_v34, %v4486_v55  ;;  %3856 = vmatpush3.bf16.msra.mxu1 %v4204_v60  ;;  %v4210_v52 = vld [vmem:[%s5166_s2 + $0x18] sm:$0xff]  }
 0x139   :  { %2197 = vrot.lane.b32.xlu1 %v3600_v58, %s4298_s16  ;;  %v1769_v9 = vrot.slane %v1768_v59, 4  ;;  %v3420_v10 = vrot.slane %v3393_v61, 9  ;;  %v1096_v11 = vrot.slane %v3394_v62, 5  ;;  %v3475_v12 = vcombine.low %v1480_v50, %v1480_v50  ;;  %3857 = vmatprep.subr.bf16.mxu1 %v4209_v36 }
 0x13a   :  { %v1760_v8 = vsel %vm4505_vm14, %v1755_v63, %v1759_v45  ;;  %v1093_v34 = vsel %vm4494_vm13, %v3419_v2, %v1092_v3  ;;  %v275_v35 = vmax.f32 %v257_v4, 0.0  ;;  %v3476_v14 = vcombine.high %v1480_v50, %v1480_v50  ;;  %v1478_v45 = vld [vmem:[#allocation2 + $0x28] sm:$0x1e]  ;;  %v1653_v3 = vld [vmem:[#allocation2 + $0x20] sm:$0x1f] }
 0x13b   :  { %v1774_v17 = vsel %vm4505_vm14, %v1769_v9, %v1773_v53  ;;  %v1097_v19 = vsel %vm4494_vm13, %v3420_v10, %v1096_v11  ;;  %v3477_v24 = vcombine.low %v1481_v0, %v1481_v0  ;;  %v3478_v25 = vcombine.high %v1481_v0, %v1481_v0  ;;  %v633_v53 = vld [vmem:[#allocation2 + $0x90] sm:$0x1f]  ;;  %v4211_v4 = vld [vmem:[%s5166_s2 + $0x60] sm:$0xff]   ;;  %v1654_v11 = vld [vmem:[#allocation2 + $0x28] sm:$0x1f] }
 0x13c   :  { %v3647_v28 = vcombine.low %v1760_v8, %v1774_v17  ;;  %v3609_v29 = vcombine.low %v1093_v34, %v1097_v19  ;;  %v3732_v23 = vpack.c.bf16 %v275_v35, %v275_v35  ;;  %v3501_v30 = vrot.slane %v3475_v12, 9  ;;  %v656_v12 = vld [vmem:[#allocation2 + $0x20] sm:$0x1f]  ;;  %3858 = vmatpush3.bf16.msra.mxu1 %v4210_v52 }
 0x13d   :  { %v1596_v1 = vrot.slane %v3476_v14, 5  ;;  %v3502_v31 = vrot.slane %v3477_v24, 9  ;;  %v1600_v44 = vrot.slane %v3478_v25, 5  ;;  %v249_v49 = vadd.f32 %v4486_v55, %v4600_v43  ;;  %v4212_v14 = vld [vmem:[%s5166_s2 + $0x20] sm:$0xff]   ;;  %3859 = vmatprep.subr.bf16.mxu1 %v4211_v4  ;;  %v4213_v25 = vld [vmem:[%s5166_s2 + $0x68] sm:$0xff]  }
 0x13e   :  { %2451 = vrot.lane.b32.xlu0 %v3647_v28, %s4296_s4  ;;  %2239 = vrot.lane.b32.xlu1 %v3609_v29, %s4297_s15  ;;  %v562_v38 = vshrl.u32 %v3732_v23, 16  ;;  %v565_v41 = vshll.u32 %v3732_v23, 16  ;;  %v3395_v42 = vcombine.low %v981_v26, %v981_v26  ;;  %v3396_v27 = vcombine.high %v981_v26, %v981_v26  ;;  %v627_v26 = vld [vmem:[#allocation2 + $0x80] sm:$0x1f] }
 0x13f   :  { %v1597_v37 = vsel %vm4494_vm13, %v3501_v30, %v1596_v1  ;;  %v1601_v55 = vsel %vm4494_vm13, %v3502_v31, %v1600_v44  ;;  %v273_v43 = vmax.f32 %v249_v49, 0.0  ;;  %v3397_v32 = vcombine.low %v982_v33, %v982_v33  ;;  %v4103_v1 = vld [vmem:[#allocation2 + $0x68] ss:$8 sps:$4 sm:$0xff]  }
 0x140   :  { %v564_v47 = vrot.slane %v562_v38, 7  ;;  %v3634_v48 = vcombine.low %v1597_v37, %v1601_v55  ;;  %v3398_v50 = vcombine.high %v982_v33, %v982_v33  ;;  %v3421_v51 = vrot.slane %v3395_v42, 9  ;;  %v657_v42 = vld [vmem:[#allocation2 + $0x28] sm:$0x1f]  ;;  %3860 = vmatpush3.bf16.msra.mxu1 %v4212_v14 }
 0x141   :  { %v3730_v54 = vpack.c.bf16 %v273_v43, %v273_v43  ;;  %v1100_v57 = vrot.slane %v3396_v27, 5  ;;  %v3422_v58 = vrot.slane %v3397_v32, 9  ;;  %v3471_v59 = vcombine.low %v1478_v45, %v1478_v45  ;;  %v4214_v27 = vld [vmem:[%s5166_s2 + $0x28] sm:$0xff]   ;;  %3861 = vmatprep.subr.bf16.mxu1 %v4213_v25  ;;  %v4215_v32 = vld [vmem:[%s5166_s2 + $0x70] sm:$0xff]  }
 0x142   :  { %v567_v61 = vor.u32 %v565_v41, %v564_v47  ;;  %2361 = vrot.lane.b32.xlu0 %v3634_v48, %s4298_s16  ;;  %v1104_v62 = vrot.slane %v3398_v50, 5  ;;  %v3472_v63 = vcombine.high %v1478_v45, %v1478_v45  ;;  %v3473_v2 = vcombine.low %v1479_v46, %v1479_v46 }
 0x143   :  { %v548_v0 = vshrl.u32 %v3730_v54, 16  ;;  %v551_v5 = vshll.u32 %v3730_v54, 16  ;;  %v1101_v9 = vsel %vm4494_vm13, %v3421_v51, %v1100_v57  ;;  %v3474_v10 = vcombine.high %v1479_v46, %v1479_v46  ;;  %v4104_v46 = vld [vmem:[#allocation2 + $0x60] ss:$8 sps:$4 sm:$0xff]  }
 0x144   :  { %v634_v7 = vsel %vm4544_vm15, %v567_v61, %v633_v53  ;;  %v1105_v8 = vsel %vm4494_vm13, %v3422_v58, %v1104_v62  ;;  %v3499_v34 = vrot.slane %v3471_v59, 9  ;;  %v1588_v35 = vrot.slane %v3472_v63, 5  ;;  %v1657_v58 = vld [vmem:[#allocation2 + $0x40] sm:$0x1f]  ;;  %3862 = vmatpush3.bf16.msra.mxu1 %v4214_v27 }
 0x145   :  { %635 = vst [vmem:[#allocation2 + $0x90] sm:$0x1f] %v634_v7  ;;  %v550_v15 = vrot.slane %v548_v0, 7  ;;  %v3610_v17 = vcombine.low %v1101_v9, %v1105_v8  ;;  %v3500_v19 = vrot.slane %v3473_v2, 9  ;;  %v1592_v24 = vrot.slane %v3474_v10, 5  ;;  %v4216_v2 = vld [vmem:[%s5166_s2 + $0x30] sm:$0xff]   ;;  %3863 = vmatprep.subr.bf16.mxu1 %v4215_v32 }
 0x146   :  { %v1589_v28 = vsel %vm4494_vm13, %v3499_v34, %v1588_v35  ;;  %v3515_v29 = vcombine.low %v1653_v3, %v1653_v3  ;;  %v3516_v23 = vcombine.high %v1653_v3, %v1653_v3  ;;  %v3517_v30 = vcombine.low %v1654_v11, %v1654_v11  ;;  %v658_v9 = vld [vmem:[#allocation2 + $0x30] sm:$0x1f]  ;;  %v4218_v10 = vld [vmem:[%s5166_s2 + $0x78] sm:$0xff]  }
 0x147   :  { %v553_v33 = vor.u32 %v551_v5, %v550_v15  ;;  %2241 = vrot.lane.b32.xlu1 %v3610_v17, %s4297_s15  ;;  %v1593_v60 = vsel %vm4494_vm13, %v3500_v19, %v1592_v24  ;;  %v3518_v31 = vcombine.high %v1654_v11, %v1654_v11  ;;  %v3359_v44 = vcombine.low %v656_v12, %v656_v12  ;;  %v659_v17 = vld [vmem:[#allocation2 + $0x38] sm:$0x1f] }
 0x148   :  { %v3633_v49 = vcombine.low %v1589_v28, %v1593_v60  ;;  %v1776_v36 = vshrl.u32 %v3515_v29, 16  ;;  %v1779_v38 = vshll.u32 %v3515_v29, 16  ;;  %v1785_v41 = vshll.u32 %v3516_v23, 16  ;;  %3864 = vmatpush3.bf16.msra.mxu1 %v4216_v2  ;;  %v4220_v28 = vld [vmem:[%s5166_s2 + $0x38] sm:$0xff]  }
 0x149   :  { %v628_v45 = vsel %vm4544_vm15, %v553_v33, %v627_v26  ;;  %v1790_v37 = vshrl.u32 %v3517_v30, 16  ;;  %v1793_v55 = vshll.u32 %v3517_v30, 16  ;;  %v1799_v43 = vshll.u32 %v3518_v31, 16  ;;  %3865 = vmatprep.subr.bf16.mxu1 %v4218_v10 }
 0x14a   :  { %629 = vst [vmem:[#allocation2 + $0x80] sm:$0x1f] %v628_v45  ;;  %2359 = vrot.lane.b32.xlu0 %v3633_v49, %s4298_s16  ;;  %v1778_v47 = vrot.slane %v1776_v36, 4  ;;  %v1781_v48 = vrot.slane %v1779_v38, 5  ;;  %v1787_v50 = vrot.slane %v1785_v41, 5  ;;  %v3360_v51 = vcombine.high %v656_v12, %v656_v12 }
 0x14b   :  { %2301 = vrot.lane.b32.xlu1 %v4103_v1, %s4296_s4  ;;  %v1792_v52 = vrot.slane %v1790_v37, 4  ;;  %v1795_v53 = vrot.slane %v1793_v55, 5  ;;  %v1801_v54 = vrot.slane %v1799_v43, 5  ;;  %v3361_v57 = vcombine.low %v657_v42, %v657_v42 }
 0x14c   :  { %v1782_v59 = vor.u32 %v1781_v48, %v1778_v47  ;;  %v3362_v61 = vcombine.high %v657_v42, %v657_v42  ;;  %v808_v62 = vshrl.u32 %v3359_v44, 16  ;;  %v811_v63 = vshll.u32 %v3359_v44, 16  ;;  %3866 = vmatpush3.bf16.msra.mxu1 %v4220_v28  ;;  %v1655_v47 = vld [vmem:[#allocation2 + $0x30] sm:$0x1f]  ;;  %v4761_v48 = vld [vmem:[%s5166_s2 + $0x80] sm:$0xff]  }
 0x14d   :  { %v1796_v3 = vor.u32 %v1795_v53, %v1792_v52  ;;  %v817_v4 = vshll.u32 %v3360_v51, 16  ;;  %v822_v0 = vshrl.u32 %v3361_v57, 16  ;;  %v825_v5 = vshll.u32 %v3361_v57, 16  ;;  %4007 = vmatprep.subr.bf16.mxu1 %v4761_v48 }
 0x14e   :  { %2419 = vrot.lane.b32.xlu0 %v4104_v46, %s4297_s15  ;;  %v1783_v11 = vrot.slane %v1782_v59, 4  ;;  %v810_v12 = vrot.slane %v808_v62, 4  ;;  %v813_v7 = vrot.slane %v811_v63, 5  ;;  %v831_v8 = vshll.u32 %v3362_v61, 16  ;;  %v1656_v59 = vld [vmem:[#allocation2 + $0x38] sm:$0x1f] }
 0x14f   :  { %2299 = vrot.lane.b32.xlu1 %v4105_v56, %s4296_s4  ;;  %v1797_v34 = vrot.slane %v1796_v3, 4  ;;  %v819_v35 = vrot.slane %v817_v4, 5  ;;  %v824_v14 = vrot.slane %v822_v0, 4  ;;  %v827_v15 = vrot.slane %v825_v5, 5 }
 0x150   :  { %v1788_v19 = vsel %vm4505_vm14, %v1783_v11, %v1787_v50  ;;  %v814_v24 = vor.u32 %v813_v7, %v810_v12  ;;  %v833_v25 = vrot.slane %v831_v8, 5  ;;  %v3523_v26 = vcombine.low %v1657_v58, %v1657_v58 }
 0x151   :  { %v1802_v29 = vsel %vm4505_vm14, %v1797_v34, %v1801_v54  ;;  %v828_v23 = vor.u32 %v827_v15, %v824_v14  ;;  %v3524_v30 = vcombine.high %v1657_v58, %v1657_v58  ;;  %v3363_v33 = vcombine.low %v658_v9, %v658_v9  ;;  %v1484_v15 = vld [vmem:[#allocation2 + $0x68] sm:$0x1e] }
 0x152   :  { %v3648_v60 = vcombine.low %v1788_v19, %v1802_v29  ;;  %v815_v1 = vrot.slane %v814_v24, 4  ;;  %v1832_v31 = vshrl.u32 %v3523_v26, 16  ;;  %v1835_v44 = vshll.u32 %v3523_v26, 16 }
 0x153   :  { %v829_v49 = vrot.slane %v828_v23, 4  ;;  %v1841_v36 = vshll.u32 %v3524_v30, 16  ;;  %v3364_v38 = vcombine.high %v658_v9, %v658_v9  ;;  %v3365_v41 = vcombine.low %v659_v17, %v659_v17  ;;  %v984_v9 = vld [vmem:[#allocation2 + $0x58] sm:$0x1e]  ;;  %v1485_v30 = vld [vmem:[#allocation2 + $0x70] sm:$0x1e] }
 0x154   :  { %2453 = vrot.lane.b32.xlu0 %v3648_v60, %s4296_s4  ;;  %v820_v42 = vsel %vm4505_vm14, %v815_v1, %v819_v35  ;;  %v1834_v27 = vrot.slane %v1832_v31, 4  ;;  %v1837_v45 = vrot.slane %v1835_v44, 5  ;;  %v3366_v37 = vcombine.high %v659_v17, %v659_v17 }
 0x155   :  { %v834_v55 = vsel %vm4505_vm14, %v829_v49, %v833_v25  ;;  %v1843_v43 = vrot.slane %v1841_v36, 5  ;;  %v836_v32 = vshrl.u32 %v3363_v33, 16  ;;  %v839_v46 = vshll.u32 %v3363_v33, 16 }
 0x156   :  { %v3601_v50 = vcombine.low %v820_v42, %v834_v55  ;;  %v1838_v51 = vor.u32 %v1837_v45, %v1834_v27  ;;  %v845_v56 = vshll.u32 %v3364_v38, 16  ;;  %v850_v52 = vshrl.u32 %v3365_v41, 16  ;;  %v985_v38 = vld [vmem:[#allocation2 + $0x60] sm:$0x1e] }
 0x157   :  { %v838_v53 = vrot.slane %v836_v32, 4  ;;  %v841_v54 = vrot.slane %v839_v46, 5  ;;  %v853_v57 = vshll.u32 %v3365_v41, 16  ;;  %v859_v58 = vshll.u32 %v3366_v37, 16 }
 0x158   :  { %2199 = vrot.lane.b32.xlu1 %v3601_v50, %s4298_s16  ;;  %v1839_v61 = vrot.slane %v1838_v51, 4  ;;  %v847_v62 = vrot.slane %v845_v56, 5  ;;  %v852_v63 = vrot.slane %v850_v52, 4  ;;  %v3519_v2 = vcombine.low %v1655_v47, %v1655_v47  ;;  %v986_v51 = vld [vmem:[#allocation2 + $0x68] sm:$0x1e] }
 0x159   :  { %v842_v3 = vor.u32 %v841_v54, %v838_v53  ;;  %v855_v4 = vrot.slane %v853_v57, 5  ;;  %v861_v0 = vrot.slane %v859_v58, 5  ;;  %v3520_v5 = vcombine.high %v1655_v47, %v1655_v47  ;;  %v1482_v58 = vld [vmem:[#allocation2 + $0x58] sm:$0x1e] }
 0x15a   :  { %v1844_v10 = vsel %vm4505_vm14, %v1839_v61, %v1843_v43  ;;  %v3521_v11 = vcombine.low %v1656_v59, %v1656_v59  ;;  %v3522_v12 = vcombine.high %v1656_v59, %v1656_v59  ;;  %v1804_v7 = vshrl.u32 %v3519_v2, 16 }
 0x15b   :  { %v3650_v8 = vcombine.low %v1844_v10, %v4532_v39  ;;  %v843_v34 = vrot.slane %v842_v3, 4  ;;  %v856_v35 = vor.u32 %v855_v4, %v852_v63  ;;  %v1807_v14 = vshll.u32 %v3519_v2, 16 }
 0x15c   :  { %v1806_v17 = vrot.slane %v1804_v7, 4  ;;  %v1813_v19 = vshll.u32 %v3520_v5, 16  ;;  %v1818_v24 = vshrl.u32 %v3521_v11, 16  ;;  %v1821_v25 = vshll.u32 %v3521_v11, 16  ;;  %v1483_v5 = vld [vmem:[#allocation2 + $0x60] sm:$0x1e] }
 0x15d   :  { %2457 = vrot.lane.b32.xlu0 %v3650_v8, %s4296_s4  ;;  %v848_v26 = vsel %vm4505_vm14, %v843_v34, %v847_v62  ;;  %v857_v28 = vrot.slane %v856_v35, 4  ;;  %v1809_v29 = vrot.slane %v1807_v14, 5  ;;  %v1827_v23 = vshll.u32 %v3522_v12, 16  ;;  %v661_v7 = vld [vmem:[#allocation2 + $0x58] sm:$0x1f] }
 0x15e   :  { %v1815_v33 = vrot.slane %v1813_v19, 5  ;;  %v1820_v60 = vrot.slane %v1818_v24, 4  ;;  %v1823_v39 = vrot.slane %v1821_v25, 5  ;;  %v3401_v1 = vcombine.low %v984_v9, %v984_v9  ;;  %v662_v34 = vld [vmem:[#allocation2 + $0x60] sm:$0x1f] }
 0x15f   :  { %v862_v31 = vsel %vm4505_vm14, %v857_v28, %v861_v0  ;;  %v1810_v44 = vor.u32 %v1809_v29, %v1806_v17  ;;  %v1829_v49 = vrot.slane %v1827_v23, 5  ;;  %v3402_v36 = vcombine.high %v984_v9, %v984_v9  ;;  %v663_v28 = vld [vmem:[#allocation2 + $0x68] sm:$0x1f] }
 0x160   :  { %v3602_v41 = vcombine.low %v848_v26, %v862_v31  ;;  %v1824_v42 = vor.u32 %v1823_v39, %v1820_v60  ;;  %v3424_v27 = vrot.slane %v3401_v1, 9  ;;  %v3483_v45 = vcombine.low %v1484_v15, %v1484_v15 }
 0x161   :  { %v1811_v37 = vrot.slane %v1810_v44, 4  ;;  %v1112_v55 = vrot.slane %v3402_v36, 5  ;;  %v3484_v43 = vcombine.high %v1484_v15, %v1484_v15  ;;  %v3485_v32 = vcombine.low %v1485_v30, %v1485_v30 }
 0x162   :  { %2201 = vrot.lane.b32.xlu1 %v3602_v41, %s4298_s16  ;;  %v1825_v46 = vrot.slane %v1824_v42, 4  ;;  %v3486_v47 = vcombine.high %v1485_v30, %v1485_v30  ;;  %v3505_v50 = vrot.slane %v3483_v45, 9  ;;  %v3403_v56 = vcombine.low %v985_v38, %v985_v38  ;;  %v1659_v41 = vld [vmem:[#allocation2 + $0x60] sm:$0x1f] }
 0x163   :  { %v1816_v52 = vsel %vm4505_vm14, %v1811_v37, %v1815_v33  ;;  %v1113_v53 = vsel %vm4494_vm13, %v3424_v27, %v1112_v55  ;;  %v1612_v54 = vrot.slane %v3484_v43, 5  ;;  %v3506_v57 = vrot.slane %v3485_v32, 9 }
 0x164   :  { %v1830_v59 = vsel %vm4505_vm14, %v1825_v46, %v1829_v49  ;;  %v3611_v61 = vcombine.low %v1109_v40, %v1113_v53  ;;  %v1616_v62 = vrot.slane %v3486_v47, 5  ;;  %v3404_v63 = vcombine.high %v985_v38, %v985_v38 }
 0x165   :  { %v3649_v2 = vcombine.low %v1816_v52, %v1830_v59  ;;  %v1613_v3 = vsel %vm4494_vm13, %v3505_v50, %v1612_v54  ;;  %v3405_v4 = vcombine.low %v986_v51, %v986_v51  ;;  %v3406_v0 = vcombine.high %v986_v51, %v986_v51 }
 0x166   :  { %2243 = vrot.lane.b32.xlu1 %v3611_v61, %s4297_s15  ;;  %v1617_v9 = vsel %vm4494_vm13, %v3506_v57, %v1616_v62  ;;  %v3425_v10 = vrot.slane %v3403_v56, 9  ;;  %v1116_v11 = vrot.slane %v3404_v63, 5  ;;  %v3479_v12 = vcombine.low %v1482_v58, %v1482_v58  ;;  %v1660_v56 = vld [vmem:[#allocation2 + $0x68] sm:$0x1f]  ;;  %v4146_v61 = vld [vmem:[#allocation2 + $0x70] ss:$8 sps:$4 sm:$0xff]  }
 0x167   :  { %2455 = vrot.lane.b32.xlu0 %v3649_v2, %s4296_s4  ;;  %v3636_v21 = vcombine.low %v1613_v3, %v1617_v9  ;;  %v3426_v22 = vrot.slane %v3405_v4, 9  ;;  %v1120_v40 = vrot.slane %v3406_v0, 5  ;;  %v3480_v8 = vcombine.high %v1482_v58, %v1482_v58 }
 0x168   :  { %v1117_v35 = vsel %vm4494_vm13, %v3425_v10, %v1116_v11  ;;  %v3481_v14 = vcombine.low %v1483_v5, %v1483_v5  ;;  %v3482_v15 = vcombine.high %v1483_v5, %v1483_v5  ;;  %v3503_v17 = vrot.slane %v3479_v12, 9 }
 0x169   :  { %v1121_v19 = vsel %vm4494_vm13, %v3426_v22, %v1120_v40  ;;  %v1604_v24 = vrot.slane %v3480_v8, 5  ;;  %v3369_v25 = vcombine.low %v661_v7, %v661_v7  ;;  %v3370_v26 = vcombine.high %v661_v7, %v661_v7  ;;  %v987_v7 = vld [vmem:[#allocation2 + $0x70] sm:$0x1e] }
 0x16a   :  { %v3612_v29 = vcombine.low %v1117_v35, %v1121_v19  ;;  %v3504_v23 = vrot.slane %v3481_v14, 9  ;;  %v1608_v30 = vrot.slane %v3482_v15, 5  ;;  %v3371_v33 = vcombine.low %v662_v34, %v662_v34  ;;  %v4148_v35 = vld [vmem:[#allocation2 + $0x80] ss:$8 sps:$4 sm:$0xff]  }
 0x16b   :  { %2365 = vrot.lane.b32.xlu0 %v3636_v21, %s4298_s16  ;;  %v1605_v60 = vsel %vm4494_vm13, %v3503_v17, %v1604_v24  ;;  %v878_v39 = vshrl.u32 %v3369_v25, 16  ;;  %v881_v1 = vshll.u32 %v3369_v25, 16  ;;  %v887_v31 = vshll.u32 %v3370_v26, 16 }
 0x16c   :  { %2245 = vrot.lane.b32.xlu1 %v3612_v29, %s4297_s15  ;;  %v1609_v44 = vsel %vm4494_vm13, %v3504_v23, %v1608_v30  ;;  %v3372_v49 = vcombine.high %v662_v34, %v662_v34  ;;  %v3373_v36 = vcombine.low %v663_v28, %v663_v28  ;;  %v3374_v38 = vcombine.high %v663_v28, %v663_v28  ;;  %v988_v34 = vld [vmem:[#allocation2 + $0x78] sm:$0x1e] }
 0x16d   :  { %v3635_v42 = vcombine.low %v1605_v60, %v1609_v44  ;;  %v880_v27 = vrot.slane %v878_v39, 4  ;;  %v883_v45 = vrot.slane %v881_v1, 5  ;;  %v889_v37 = vrot.slane %v887_v31, 5  ;;  %v4147_v60 = vld [vmem:[#allocation2 + $0x78] ss:$8 sps:$4 sm:$0xff]  }
 0x16e   :  { %v892_v55 = vshrl.u32 %v3371_v33, 16  ;;  %v895_v43 = vshll.u32 %v3371_v33, 16  ;;  %v901_v32 = vshll.u32 %v3372_v49, 16  ;;  %v906_v46 = vshrl.u32 %v3373_v36, 16  ;;  %v1486_v33 = vld [vmem:[#allocation2 + $0x78] sm:$0x1e] }
 0x16f   :  { %2363 = vrot.lane.b32.xlu0 %v3635_v42, %s4298_s16  ;;  %v884_v47 = vor.u32 %v883_v45, %v880_v27  ;;  %v909_v50 = vshll.u32 %v3373_v36, 16  ;;  %v915_v51 = vshll.u32 %v3374_v38, 16  ;;  %v3527_v52 = vcombine.low %v1659_v41, %v1659_v41  ;;  %v1487_v49 = vld [vmem:[#allocation2 + $0x80] sm:$0x1e] }
 0x170   :  { %v894_v53 = vrot.slane %v892_v55, 4  ;;  %v897_v54 = vrot.slane %v895_v43, 5  ;;  %v903_v57 = vrot.slane %v901_v32, 5  ;;  %v908_v58 = vrot.slane %v906_v46, 4  ;;  %v664_v43 = vld [vmem:[#allocation2 + $0x70] sm:$0x1f] }
 0x171   :  { %v885_v59 = vrot.slane %v884_v47, 4  ;;  %v911_v62 = vrot.slane %v909_v50, 5  ;;  %v917_v63 = vrot.slane %v915_v51, 5  ;;  %v3528_v2 = vcombine.high %v1659_v41, %v1659_v41 }
 0x172   :  { %v898_v3 = vor.u32 %v897_v54, %v894_v53  ;;  %v3529_v4 = vcombine.low %v1660_v56, %v1660_v56  ;;  %v3530_v0 = vcombine.high %v1660_v56, %v1660_v56  ;;  %v1860_v5 = vshrl.u32 %v3527_v52, 16  ;;  %v665_v54 = vld [vmem:[#allocation2 + $0x78] sm:$0x1f] }
 0x173   :  { %v890_v9 = vsel %vm4505_vm14, %v885_v59, %v889_v37  ;;  %2421 = vrot.lane.b32.xlu0 %v4146_v61, %s4297_s15  ;;  %v912_v10 = vor.u32 %v911_v62, %v908_v58  ;;  %v1863_v11 = vshll.u32 %v3527_v52, 16  ;;  %v1869_v12 = vshll.u32 %v3528_v2, 16  ;;  %v1661_v62 = vld [vmem:[#allocation2 + $0x70] sm:$0x1f] }
 0x174   :  { %v3603_v21 = vcombine.low %v4570_v18, %v890_v9  ;;  %v899_v22 = vrot.slane %v898_v3, 4  ;;  %v1862_v40 = vrot.slane %v1860_v5, 4  ;;  %v1874_v8 = vshrl.u32 %v3529_v4, 16 }
 0x175   :  { %v913_v14 = vrot.slane %v912_v10, 4  ;;  %v1865_v15 = vrot.slane %v1863_v11, 5  ;;  %v1871_v17 = vrot.slane %v1869_v12, 5  ;;  %v1877_v19 = vshll.u32 %v3529_v4, 16  ;;  %v1662_v11 = vld [vmem:[#allocation2 + $0x78] sm:$0x1f] }
 0x176   :  { %2203 = vrot.lane.b32.xlu1 %v3603_v21, %s4298_s16  ;;  %v904_v24 = vsel %vm4505_vm14, %v899_v22, %v903_v57  ;;  %v1876_v25 = vrot.slane %v1874_v8, 4  ;;  %v1883_v26 = vshll.u32 %v3530_v0, 16  ;;  %v3407_v28 = vcombine.low %v987_v7, %v987_v7 }
 0x177   :  { %2423 = vrot.lane.b32.xlu0 %v4148_v35, %s4297_s15  ;;  %v918_v18 = vsel %vm4505_vm14, %v913_v14, %v917_v63  ;;  %v1866_v29 = vor.u32 %v1865_v15, %v1862_v40  ;;  %v1879_v23 = vrot.slane %v1877_v19, 5  ;;  %v3408_v30 = vcombine.high %v987_v7, %v987_v7 }
 0x178   :  { %v3604_v39 = vcombine.low %v904_v24, %v918_v18  ;;  %v1885_v1 = vrot.slane %v1883_v26, 5  ;;  %v3409_v31 = vcombine.low %v988_v34, %v988_v34  ;;  %v3410_v44 = vcombine.high %v988_v34, %v988_v34 }
 0x179   :  { %v1867_v36 = vrot.slane %v1866_v29, 4  ;;  %v1880_v38 = vor.u32 %v1879_v23, %v1876_v25  ;;  %v3427_v41 = vrot.slane %v3407_v28, 9  ;;  %v1124_v42 = vrot.slane %v3408_v30, 5 }
 0x17a   :  { %2303 = vrot.lane.b32.xlu1 %v4147_v60, %s4296_s4  ;;  %v3428_v27 = vrot.slane %v3409_v31, 9  ;;  %v1128_v45 = vrot.slane %v3410_v44, 5  ;;  %v3487_v37 = vcombine.low %v1486_v33, %v1486_v33  ;;  %v3488_v55 = vcombine.high %v1486_v33, %v1486_v33  ;;  %v989_v33 = vld [vmem:[#allocation2 + $0x80] sm:$0x1e] }
 0x17b   :  { %v1872_v32 = vsel %vm4505_vm14, %v1867_v36, %v1871_v17  ;;  %v1881_v46 = vrot.slane %v1880_v38, 4  ;;  %v1125_v47 = vsel %vm4494_vm13, %v3427_v41, %v1124_v42  ;;  %v3489_v50 = vcombine.low %v1487_v49, %v1487_v49  ;;  %v990_v41 = vld [vmem:[#allocation2 + $0x88] sm:$0x1e] }
 0x17c   :  { %v1129_v51 = vsel %vm4494_vm13, %v3428_v27, %v1128_v45  ;;  %v3490_v56 = vcombine.high %v1487_v49, %v1487_v49  ;;  %v3507_v52 = vrot.slane %v3487_v37, 9  ;;  %v1620_v53 = vrot.slane %v3488_v55, 5  ;;  %v1488_v55 = vld [vmem:[#allocation2 + $0x88] sm:$0x1e] }
 0x17d   :  { %v1886_v57 = vsel %vm4505_vm14, %v1881_v46, %v1885_v1  ;;  %v3613_v58 = vcombine.low %v1125_v47, %v1129_v51  ;;  %v3508_v59 = vrot.slane %v3489_v50, 9  ;;  %v3375_v61 = vcombine.low %v664_v43, %v664_v43 }
 0x17e   :  { %2205 = vrot.lane.b32.xlu1 %v3604_v39, %s4298_s16  ;;  %v3651_v63 = vcombine.low %v1872_v32, %v1886_v57  ;;  %v1621_v2 = vsel %vm4494_vm13, %v3507_v52, %v1620_v53  ;;  %v1624_v3 = vrot.slane %v3490_v56, 5  ;;  %v3376_v4 = vcombine.high %v664_v43, %v664_v43  ;;  %v1489_v53 = vld [vmem:[#allocation2 + $0x90] sm:$0x1e] }
 0x17f   :  { %v3377_v0 = vcombine.low %v665_v54, %v665_v54  ;;  %v3378_v5 = vcombine.high %v665_v54, %v665_v54  ;;  %v920_v9 = vshrl.u32 %v3375_v61, 16  ;;  %v923_v10 = vshll.u32 %v3375_v61, 16  ;;  %v4833_v61 = vpop.permute.xlu1 %2293 }
 0x180   :  { %2459 = vrot.lane.b32.xlu0 %v3651_v63, %s4296_s4  ;;  %v1625_v12 = vsel %vm4494_vm13, %v3508_v59, %v1624_v3  ;;  %v929_v7 = vshll.u32 %v3376_v4, 16  ;;  %v3531_v21 = vcombine.low %v1661_v62, %v1661_v62  ;;  %v3532_v22 = vcombine.high %v1661_v62, %v1661_v62 }
 0x181   :  { %v3637_v40 = vcombine.low %v1621_v2, %v1625_v12  ;;  %v922_v8 = vrot.slane %v920_v9, 4  ;;  %v925_v34 = vrot.slane %v923_v10, 5  ;;  %v934_v35 = vshrl.u32 %v3377_v0, 16  ;;  %v666_v10 = vld [vmem:[#allocation2 + $0x80] sm:$0x1f] }
 0x182   :  { %2247 = vrot.lane.b32.xlu1 %v3613_v58, %s4297_s15  ;;  %v931_v14 = vrot.slane %v929_v7, 5  ;;  %v937_v15 = vshll.u32 %v3377_v0, 16  ;;  %v943_v17 = vshll.u32 %v3378_v5, 16  ;;  %v3533_v19 = vcombine.low %v1662_v11, %v1662_v11 }
 0x183   :  { %v926_v24 = vor.u32 %v925_v34, %v922_v8  ;;  %v936_v25 = vrot.slane %v934_v35, 4  ;;  %v3534_v26 = vcombine.high %v1662_v11, %v1662_v11  ;;  %v1888_v28 = vshrl.u32 %v3531_v21, 16  ;;  %v667_v11 = vld [vmem:[#allocation2 + $0x88] sm:$0x1f]  ;;  %v1663_v8 = vld [vmem:[#allocation2 + $0x80] sm:$0x1f] }
 0x184   :  { %2367 = vrot.lane.b32.xlu0 %v3637_v40, %s4298_s16  ;;  %v939_v18 = vrot.slane %v937_v15, 5  ;;  %v945_v29 = vrot.slane %v943_v17, 5  ;;  %v1891_v23 = vshll.u32 %v3531_v21, 16  ;;  %v1897_v30 = vshll.u32 %v3532_v22, 16 }
 0x185   :  { %v927_v60 = vrot.slane %v926_v24, 4  ;;  %v1890_v39 = vrot.slane %v1888_v28, 4  ;;  %v1902_v1 = vshrl.u32 %v3533_v19, 16  ;;  %v1905_v31 = vshll.u32 %v3533_v19, 16 }
 0x186   :  { %v940_v44 = vor.u32 %v939_v18, %v936_v25  ;;  %v1893_v49 = vrot.slane %v1891_v23, 5  ;;  %v1899_v36 = vrot.slane %v1897_v30, 5  ;;  %v1911_v38 = vshll.u32 %v3534_v26, 16  ;;  %v1664_v18 = vld [vmem:[#allocation2 + $0x88] sm:$0x1f]  ;;  %v4849_v30 = vpop.permute.xlu1 %2411 }
 0x187   :  { %v932_v42 = vsel %vm4505_vm14, %v927_v60, %v931_v14  ;;  %v1904_v27 = vrot.slane %v1902_v1, 4  ;;  %v1907_v45 = vrot.slane %v1905_v31, 5  ;;  %v3411_v37 = vcombine.low %v989_v33, %v989_v33 }
 0x188   :  { %v941_v43 = vrot.slane %v940_v44, 4  ;;  %v1894_v32 = vor.u32 %v1893_v49, %v1890_v39  ;;  %v1913_v46 = vrot.slane %v1911_v38, 5  ;;  %v3412_v47 = vcombine.high %v989_v33, %v989_v33  ;;  %v4839_v12 = vpop.permute.xlu0 %2357 }
 0x189   :  { %v1908_v50 = vor.u32 %v1907_v45, %v1904_v27  ;;  %v3413_v51 = vcombine.low %v990_v41, %v990_v41  ;;  %v3414_v56 = vcombine.high %v990_v41, %v990_v41  ;;  %v3429_v52 = vrot.slane %v3411_v37, 9 }
 0x18a   :  { %v946_v54 = vsel %vm4505_vm14, %v941_v43, %v945_v29  ;;  %v1895_v57 = vrot.slane %v1894_v32, 4  ;;  %v1132_v58 = vrot.slane %v3412_v47, 5  ;;  %v3491_v59 = vcombine.low %v1488_v55, %v1488_v55 }
 0x18b   :  { %v3605_v62 = vcombine.low %v932_v42, %v946_v54  ;;  %v1909_v63 = vrot.slane %v1908_v50, 4  ;;  %v3430_v2 = vrot.slane %v3413_v51, 9  ;;  %v1136_v3 = vrot.slane %v3414_v56, 5  ;;  %v342_v56 = vld [vmem:[#allocation2 + $0x98] sm:$0x1] }
 0x18c   :  { %v1900_v4 = vsel %vm4505_vm14, %v1895_v57, %v1899_v36  ;;  %v1133_v0 = vsel %vm4494_vm13, %v3429_v52, %v1132_v58  ;;  %v3492_v5 = vcombine.high %v1488_v55, %v1488_v55  ;;  %v3493_v9 = vcombine.low %v1489_v53, %v1489_v53  ;;  %v405_v58 = vld [vmem:[#allocation2 + $0x98] sm:$0x10] }
 0x18d   :  { %2207 = vrot.lane.b32.xlu1 %v3605_v62, %s4298_s16  ;;  %v1914_v7 = vsel %vm4505_vm14, %v1909_v63, %v1913_v46  ;;  %v1137_v21 = vsel %vm4494_vm13, %v3430_v2, %v1136_v3  ;;  %v3494_v22 = vcombine.high %v1489_v53, %v1489_v53  ;;  %v3509_v40 = vrot.slane %v3491_v59, 9  ;;  %v4857_v59 = vpop.permute.xlu1 %2291  ;;  %v1665_v3 = vld [vmem:[#allocation2 + $0x90] sm:$0x1f] }
 0x18e   :  { %v3652_v34 = vcombine.low %v1900_v4, %v1914_v7  ;;  %v3614_v35 = vcombine.low %v1133_v0, %v1137_v21  ;;  %v1628_v14 = vrot.slane %v3492_v5, 5  ;;  %v3510_v15 = vrot.slane %v3493_v9, 9 }
 0x18f   :  { %v1632_v17 = vrot.slane %v3494_v22, 5  ;;  %v3379_v19 = vcombine.low %v666_v10, %v666_v10  ;;  %v3380_v24 = vcombine.high %v666_v10, %v666_v10  ;;  %v3381_v25 = vcombine.low %v667_v11, %v667_v11 }
 0x190   :  { %2461 = vrot.lane.b32.xlu0 %v3652_v34, %s4296_s4  ;;  %v1629_v26 = vsel %vm4494_vm13, %v3509_v40, %v1628_v14  ;;  %v3382_v28 = vcombine.high %v667_v11, %v667_v11  ;;  %v3535_v29 = vcombine.low %v1663_v8, %v1663_v8  ;;  %v3536_v23 = vcombine.high %v1663_v8, %v1663_v8 }
 0x191   :  { %2249 = vrot.lane.b32.xlu1 %v3614_v35, %s4297_s15  ;;  %v1633_v33 = vsel %vm4494_vm13, %v3510_v15, %v1632_v17  ;;  %v948_v60 = vshrl.u32 %v3379_v19, 16  ;;  %v951_v39 = vshll.u32 %v3379_v19, 16  ;;  %v957_v1 = vshll.u32 %v3380_v24, 16 }
 0x192   :  { %v3638_v31 = vcombine.low %v1629_v26, %v1633_v33  ;;  %v962_v44 = vshrl.u32 %v3381_v25, 16  ;;  %v965_v49 = vshll.u32 %v3381_v25, 16  ;;  %v971_v36 = vshll.u32 %v3382_v28, 16  ;;  %v4854_v38 = vpop.permute.xlu0 %2355  ;;  %v1155_v26 = vld [vmem:[#allocation2 + $0x10] sm:$0x1f] }
 0x193   :  { %v950_v41 = vrot.slane %v948_v60, 4  ;;  %v953_v42 = vrot.slane %v951_v39, 5  ;;  %v959_v27 = vrot.slane %v957_v1, 5  ;;  %v3537_v45 = vcombine.low %v1664_v18, %v1664_v18  ;;  %v4189_v60 = vld [vmem:[#allocation2 + $0x88] ss:$8 sps:$4 sm:$0xff]  }
 0x194   :  { %2369 = vrot.lane.b32.xlu0 %v3638_v31, %s4298_s16  ;;  %v964_v37 = vrot.slane %v962_v44, 4  ;;  %v967_v55 = vrot.slane %v965_v49, 5  ;;  %v973_v43 = vrot.slane %v971_v36, 5  ;;  %v3538_v32 = vcombine.high %v1664_v18, %v1664_v18  ;;  %v1154_v1 = vld [vmem:[#allocation2 + $0x8] sm:$0x1f] }
 0x195   :  { %v954_v46 = vor.u32 %v953_v42, %v950_v41  ;;  %v1916_v47 = vshrl.u32 %v3535_v29, 16  ;;  %v1919_v50 = vshll.u32 %v3535_v29, 16  ;;  %v1925_v51 = vshll.u32 %v3536_v23, 16 }
 0x196   :  { %v968_v52 = vor.u32 %v967_v55, %v964_v37  ;;  %v1930_v53 = vshrl.u32 %v3537_v45, 16  ;;  %v1933_v54 = vshll.u32 %v3537_v45, 16  ;;  %v1939_v57 = vshll.u32 %v3538_v32, 16  ;;  %v4859_v10 = vpop.permute.xlu0 %2413 }
 0x197   :  { %v955_v62 = vrot.slane %v954_v46, 4  ;;  %v1918_v63 = vrot.slane %v1916_v47, 4  ;;  %v1921_v2 = vrot.slane %v1919_v50, 5  ;;  %v1927_v0 = vrot.slane %v1925_v51, 5 }
 0x198   :  { %v969_v4 = vrot.slane %v968_v52, 4  ;;  %v1932_v5 = vrot.slane %v1930_v53, 4  ;;  %v1935_v9 = vrot.slane %v1933_v54, 5  ;;  %v343_v21 = vsel %vm4389_vm4, 0, %v342_v56  ;;  %v1157_v53 = vld [vmem:[#allocation2 + $0x20] sm:$0x1f] }
 0x199   :  { %v960_v11 = vsel %vm4505_vm14, %v955_v62, %v959_v27  ;;  %v1922_v7 = vor.u32 %v1921_v2, %v1918_v63  ;;  %v406_v22 = vsel %vm4395_vm5, 0, %v405_v58  ;;  %v1941_v34 = vrot.slane %v1939_v57, 5  ;;  %344 = vst [vmem:[#allocation2 + $0x98] sm:$0x1] %v343_v21  ;;  %v4869_v25 = vpop.permute.xlu1 %2235 }
 0x19a   :  { %v974_v40 = vsel %vm4505_vm14, %v969_v4, %v973_v43  ;;  %v1936_v8 = vor.u32 %v1935_v9, %v1932_v5  ;;  %407 = vst [vmem:[#allocation2 + $0x98] sm:$0x10] %v406_v22  ;;  %v3539_v35 = vcombine.low %v1665_v3, %v1665_v3  ;;  %v3540_v20 = vcombine.high %v1665_v3, %v1665_v3  ;;  %v4876_v23 = vpop.permute.xlu0 %2417  ;;  %v1156_v5 = vld [vmem:[#allocation2 + $0x18] sm:$0x1f] }
 0x19b   :  { %v3606_v14 = vcombine.low %v960_v11, %v974_v40  ;;  %v1923_v15 = vrot.slane %v1922_v7, 4  ;;  %v3433_v39 = vcombine.low %v1155_v26, %v1155_v26  ;;  %v3431_v32 = vcombine.low %v1154_v1, %v1154_v1 }
 0x19c   :  { %v1937_v17 = vrot.slane %v1936_v8, 4  ;;  %v1944_v19 = vshrl.u32 %v3539_v35, 16  ;;  %v1947_v24 = vshll.u32 %v3539_v35, 16  ;;  %v1953_v49 = vshll.u32 %v3540_v20, 16 }
 0x19d   :  { %2209 = vrot.lane.b32.xlu1 %v3606_v14, %s4298_s16  ;;  %v1928_v16 = vsel %vm4505_vm14, %v1923_v15, %v1927_v0  ;;  %v1265_v45 = vshrl.u32 %v3433_v39, 16  ;;  %v3434_v51 = vcombine.high %v1155_v26, %v1155_v26  ;;  %v1268_v57 = vshll.u32 %v3433_v39, 16 }
 0x19e   :  { %v1942_v28 = vsel %vm4505_vm14, %v1937_v17, %v1941_v34  ;;  %v1946_v18 = vrot.slane %v1944_v19, 4  ;;  %v1949_v29 = vrot.slane %v1947_v24, 5  ;;  %v4880_v42 = vpop.permute.xlu1 %2237  ;;  %v4882_v46 = vpop.permute.xlu0 %2415  ;;  %v1955_v50 = vrot.slane %v1953_v49, 5 }
 0x19f   :  { %v3653_v33 = vcombine.low %v1928_v16, %v1942_v28  ;;  %v1267_v54 = vrot.slane %v1265_v45, 4  ;;  %v3432_v58 = vcombine.high %v1154_v1, %v1154_v1  ;;  %v1251_v2 = vshrl.u32 %v3431_v32, 16 }
 0x1a0   :  { %v1950_v44 = vor.u32 %v1949_v29, %v1946_v18  ;;  %v4190_v27 = vld [vmem:[#allocation2 + $0x90] ss:$8 sps:$4 sm:$0xff]   ;;  %v1254_v3 = vshll.u32 %v3431_v32, 16  ;;  %v3437_v9 = vcombine.low %v1157_v53, %v1157_v53  ;;  %v1270_v11 = vrot.slane %v1268_v57, 5 }
 0x1a1   :  { %2463 = vrot.lane.b32.xlu0 %v3653_v33, %s4296_s4  ;;  %2305 = vrot.lane.b32.xlu1 %v4189_v60, %s4296_s4  ;;  %v1666_v31 = vld [vmem:[#allocation2 + $0x98] sm:$0x1f]  ;;  %v1274_v7 = vshll.u32 %v3434_v51, 16  ;;  %v1253_v22 = vrot.slane %v1251_v2, 4  ;;  %v1260_v8 = vshll.u32 %v3432_v58, 16  ;;  %v3435_v15 = vcombine.low %v1156_v5, %v1156_v5 }
 0x1a2   :  { %v3541_v36 = vcombine.low %v1666_v31, %v1666_v31  ;;  %v3542_v41 = vcombine.high %v1666_v31, %v1666_v31  ;;  %v1951_v47 = vrot.slane %v1950_v44, 4  ;;  %v4885_v4 = vpop.permute.xlu1 %2297  ;;  %v1256_v40 = vrot.slane %v1254_v3, 5  ;;  %v4217_v33 = vld [vmem:[#allocation2] ss:$8 sps:$4 sm:$0xff]   ;;  %v1159_v2 = vld [vmem:[#allocation2 + $0x30] sm:$0x1f] }
 0x1a3   :  { %v1271_v35 = vor.u32 %v1270_v11, %v1267_v54  ;;  %v1276_v16 = vrot.slane %v1274_v7, 5  ;;  %v1293_v20 = vshrl.u32 %v3437_v9, 16  ;;  %v1296_v26 = vshll.u32 %v3437_v9, 16  ;;  %v1161_v3 = vld [vmem:[#allocation2 + $0x40] sm:$0x1f] }
 0x1a4   :  { %v1958_v37 = vshrl.u32 %v3541_v36, 16  ;;  %v1961_v55 = vshll.u32 %v3541_v36, 16  ;;  %v1967_v43 = vshll.u32 %v3542_v41, 16  ;;  %v1956_v0 = vsel %vm4505_vm14, %v1951_v47, %v1955_v50 }
 0x1a5   :  { %2425 = vrot.lane.b32.xlu0 %v4190_v27, %s4297_s15  ;;  %v1257_v17 = vor.u32 %v1256_v40, %v1253_v22  ;;  %v1272_v24 = vrot.slane %v1271_v35, 4  ;;  %v1262_v18 = vrot.slane %v1260_v8, 5  ;;  %v1279_v39 = vshrl.u32 %v3435_v15, 16 }
 0x1a6   :  { %v1960_v56 = vrot.slane %v1958_v37, 4  ;;  %v1963_v52 = vrot.slane %v1961_v55, 5  ;;  %v1969_v63 = vrot.slane %v1967_v43, 5  ;;  %v2196_v34 = vpop.permute.xlu0 %2195  ;;  %v4891_v29 = vpop.permute.xlu1 %2295  ;;  %v1282_v1 = vshll.u32 %v3435_v15, 16 }
 0x1a7   :  { %v1258_v28 = vrot.slane %v1257_v17, 4  ;;  %v1277_v60 = vsel %vm4505_vm14, %v1272_v24, %v1276_v16  ;;  %v2493_v44 = vsel %vm276_vm6, %v4217_v33, %v2196_v34  ;;  %v1295_v41 = vrot.slane %v1293_v20, 4  ;;  %v4219_v34 = vld [vmem:[#allocation2 + $0x10] ss:$8 sps:$4 sm:$0xff]  }
 0x1a8   :  { %v1964_v62 = vor.u32 %v1963_v52, %v1960_v56  ;;  %v1298_v27 = vrot.slane %v1296_v26, 5  ;;  %v2517_v37 = vsel %vm2515_vm0, %v2493_v44, %v4869_v25  ;;  %v1281_v55 = vrot.slane %v1279_v39, 4 }
 0x1a9   :  { %v1263_v31 = vsel %vm4505_vm14, %v1258_v28, %v1262_v18  ;;  %v1284_v43 = vrot.slane %v1282_v1, 5  ;;  %v3438_v32 = vcombine.high %v1157_v53, %v1157_v53  ;;  %v3436_v56 = vcombine.high %v1156_v5, %v1156_v5  ;;  %v4270_v53 = vld [vmem:[%s5166_s2 + $0x88] sm:$0xff]  }
 0x1aa   :  { %v1965_v21 = vrot.slane %v1964_v62, 4  ;;  %v3623_v36 = vcombine.low %v1263_v31, %v1277_v60  ;;  %v1299_v52 = vor.u32 %v1298_v27, %v1295_v41  ;;  %v2534_v54 = vsel %vm2532_vm1, %v2517_v37, %v4857_v59  ;;  %v1158_v5 = vld [vmem:[#allocation2 + $0x28] sm:$0x1f] }
 0x1ab   :  { %v2198_v47 = vpop.permute.xlu1 %2197  ;;  %v1285_v57 = vor.u32 %v1284_v43, %v1281_v55  ;;  %v1302_v25 = vshll.u32 %v3438_v32, 16  ;;  %v3445_v22 = vcombine.low %v1161_v3, %v1161_v3  ;;  %v3439_v40 = vcombine.low %v1158_v5, %v1158_v5 }
 0x1ac   :  { %v1970_v14 = vsel %vm4505_vm14, %v1965_v21, %v1969_v63  ;;  %v2559_v45 = vsel %vm276_vm6, %v3623_v36, %v4854_v38  ;;  %v1300_v58 = vrot.slane %v1299_v52, 4  ;;  %v1160_v63 = vld [vmem:[#allocation2 + $0x38] sm:$0x1f]  ;;  %v2496_v16 = vsel %vm276_vm6, %v4219_v34, %v2198_v47  ;;  %v4229_v34 = vld [vmem:[#allocation2 + $0x20] ss:$8 sps:$4 sm:$0xff]  }
 0x1ad   :  { %v3654_v19 = vcombine.low %v1956_v0, %v1970_v14  ;;  %v2582_v50 = vsel %vm2515_vm0, %v2559_v45, %v4849_v30  ;;  %v1288_v30 = vshll.u32 %v3436_v56, 16  ;;  %v1286_v59 = vrot.slane %v1285_v57, 4 }
 0x1ae   :  { %v1304_v0 = vrot.slane %v1302_v25, 5  ;;  %v3443_v11 = vcombine.low %v1160_v63, %v1160_v63  ;;  %v1349_v26 = vshrl.u32 %v3445_v22, 16  ;;  %v1352_v28 = vshll.u32 %v3445_v22, 16 }
 0x1af   :  { %2465 = vrot.lane.b32.xlu0 %v3654_v19, %s4296_s4  ;;  %v1290_v7 = vrot.slane %v1288_v30, 5  ;;  %v1307_v33 = vshrl.u32 %v3439_v40, 16  ;;  %v1310_v60 = vshll.u32 %v3439_v40, 16  ;;  %v3444_v1 = vcombine.high %v1160_v63, %v1160_v63 }
 0x1b0   :  { %v2452_v49 = vpop.permute.xlu0 %2451  ;;  %v4914_v62 = vpop.permute.xlu1 %2239  ;;  %v1305_v21 = vsel %vm4505_vm14, %v1300_v58, %v1304_v0  ;;  %v1335_v17 = vshrl.u32 %v3443_v11, 16  ;;  %v1338_v20 = vshll.u32 %v3443_v11, 16  ;;  %v3446_v31 = vcombine.high %v1161_v3, %v1161_v3 }
 0x1b1   :  { %v2598_v51 = vsel %vm2532_vm1, %v2582_v50, %v2452_v49  ;;  %v1291_v8 = vsel %vm4505_vm14, %v1286_v59, %v1290_v7  ;;  %v2519_v41 = vsel %vm2515_vm0, %v2496_v16, %v4880_v42  ;;  %v1351_v45 = vrot.slane %v1349_v26, 4 }
 0x1b2   :  { %2828 = vmatprep.mubr.bf16.mxu1 %v2598_v51  ;;  %v3624_v15 = vcombine.low %v1291_v8, %v1305_v21  ;;  %v1337_v44 = vrot.slane %v1335_v17, 4  ;;  %v1340_v27 = vrot.slane %v1338_v20, 5  ;;  %v1354_v37 = vrot.slane %v1352_v28, 5  ;;  %v1162_v21 = vld [vmem:[#allocation2 + $0x58] sm:$0x1f] }
 0x1b3   :  { %2829 = vmatmul.mubr.bf16.vlgmr.msra.gmra.mrb[0].mxu1 %v2534_v54  ;;  %v3440_v55 = vcombine.high %v1158_v5, %v1158_v5  ;;  %v3442_v32 = vcombine.high %v1159_v2, %v1159_v2  ;;  %v1309_v47 = vrot.slane %v1307_v33, 4  ;;  %v1312_v50 = vrot.slane %v1310_v60, 5  ;;  %v1163_v17 = vld [vmem:[#allocation2 + $0x60] sm:$0x1f] }
 0x1b4   :  { %v4908_v38 = vpop.permute.xlu0 %2361  ;;  %4009 = vmatpush3.bf16.msra.mxu1 %v4761_v48  ;;  %v3441_v48 = vcombine.low %v1159_v2, %v1159_v2  ;;  %v2562_v18 = vsel %vm276_vm6, %v3624_v15, %v4839_v12  ;;  %v2537_v51 = vsel %vm2532_vm1, %v2519_v41, %v4833_v61  ;;  %v1341_v52 = vor.u32 %v1340_v27, %v1337_v44  ;;  %v4230_v27 = vld [vmem:[#allocation2 + $0x30] ss:$8 sps:$4 sm:$0xff]  }
 0x1b5   :  { %4008 = vmatprep.subr.bf16.mxu1 %v4270_v53  ;;  %v2584_v39 = vsel %vm2515_vm0, %v2562_v18, %v4859_v10  ;;  %v1344_v42 = vshll.u32 %v3444_v1, 16  ;;  %v1358_v54 = vshll.u32 %v3446_v31, 16  ;;  %v1355_v57 = vor.u32 %v1354_v37, %v1351_v45 }
 0x1b6   :  { %v1321_v19 = vshrl.u32 %v3441_v48, 16  ;;  %v1324_v24 = vshll.u32 %v3441_v48, 16  ;;  %v1313_v25 = vor.u32 %v1312_v50, %v1309_v47  ;;  %v1330_v30 = vshll.u32 %v3442_v32, 16 }
 0x1b7   :  { %v1342_v2 = vrot.slane %v1341_v52, 4  ;;  %v1346_v3 = vrot.slane %v1344_v42, 5  ;;  %v1360_v59 = vrot.slane %v1358_v54, 5  ;;  %v1356_v0 = vrot.slane %v1355_v57, 4 }
 0x1b8   :  { %4010 = vmatpush3.bf16.msra.mxu1 %v4270_v53  ;;  %v1323_v49 = vrot.slane %v1321_v19, 4  ;;  %v1326_v36 = vrot.slane %v1324_v24, 5  ;;  %v1316_v53 = vshll.u32 %v3440_v55, 16  ;;  %v1314_v5 = vrot.slane %v1313_v25, 4 }
 0x1b9   :  { %v4922_v35 = vpop.permute.xlu1 %2241  ;;  %v1332_v48 = vrot.slane %v1330_v30, 5  ;;  %v1347_v22 = vsel %vm4505_vm14, %v1342_v2, %v1346_v3  ;;  %v1361_v40 = vsel %vm4505_vm14, %v1356_v0, %v1360_v59  ;;  %v3447_v16 = vcombine.low %v1162_v21, %v1162_v21 }
 0x1ba   :  { %v1327_v56 = vor.u32 %v1326_v36, %v1323_v49  ;;  %v1318_v11 = vrot.slane %v1316_v53, 5  ;;  %v3626_v20 = vcombine.low %v1347_v22, %v1361_v40  ;;  %v3449_v28 = vcombine.low %v1163_v17, %v1163_v17  ;;  %v4239_v22 = vld [vmem:[#allocation2 + $0x50] ss:$8 sps:$4 sm:$0xff]  }
 0x1bb   :  { %v1363_v31 = vshrl.u32 %v3447_v16, 16  ;;  %v1366_v49 = vshll.u32 %v3447_v16, 16  ;;  %v3448_v37 = vcombine.high %v1162_v21, %v1162_v21  ;;  %v3450_v55 = vcombine.high %v1163_v17, %v1163_v17 }
 0x1bc   :  { %v4916_v9 = vpop.permute.xlu0 %2359  ;;  %v1328_v63 = vrot.slane %v1327_v56, 4  ;;  %v1319_v8 = vsel %vm4505_vm14, %v1314_v5, %v1318_v11  ;;  %v2568_v18 = vsel %vm276_vm6, %v3626_v20, %v4908_v38  ;;  %v1377_v36 = vshrl.u32 %v3449_v28, 16  ;;  %v1165_v56 = vld [vmem:[#allocation2 + $0x70] sm:$0x1f] }
 0x1bd   :  { %v4933_v43 = vpop.permute.xlu1 %2301  ;;  %v1380_v41 = vshll.u32 %v3449_v28, 16  ;;  %v2588_v38 = vsel %vm2515_vm0, %v2568_v18, %v4876_v23  ;;  %v1368_v32 = vrot.slane %v1366_v49, 5  ;;  %v1164_v23 = vld [vmem:[#allocation2 + $0x68] sm:$0x1f]  ;;  %v1372_v42 = vshll.u32 %v3448_v37, 16 }
 0x1be   :  { %v1333_v61 = vsel %vm4505_vm14, %v1328_v63, %v1332_v48  ;;  %v1379_v47 = vrot.slane %v1377_v36, 4  ;;  %v1386_v57 = vshll.u32 %v3450_v55, 16  ;;  %v3451_v53 = vcombine.low %v1164_v23, %v1164_v23  ;;  %v1166_v36 = vld [vmem:[#allocation2 + $0x78] sm:$0x1f] }
 0x1bf   :  { %v3625_v19 = vcombine.low %v1319_v8, %v1333_v61  ;;  %v1382_v50 = vrot.slane %v1380_v41, 5  ;;  %v3453_v30 = vcombine.low %v1165_v56, %v1165_v56  ;;  %v1374_v3 = vrot.slane %v1372_v42, 5  ;;  %v1167_v41 = vld [vmem:[#allocation2 + $0x80] sm:$0x1f] }
 0x1c0   :  { %v4924_v14 = vpop.permute.xlu0 %2419  ;;  %v1388_v0 = vrot.slane %v1386_v57, 5  ;;  %v1391_v5 = vshrl.u32 %v3451_v53, 16  ;;  %v1394_v11 = vshll.u32 %v3451_v53, 16  ;;  %v3452_v8 = vcombine.high %v1164_v23, %v1164_v23 }
 0x1c1   :  { %v4938_v58 = vpop.permute.xlu1 %2299  ;;  %v2565_v26 = vsel %vm276_vm6, %v3625_v19, %v4916_v9  ;;  %v1383_v54 = vor.u32 %v1382_v50, %v1379_v47  ;;  %v1405_v48 = vshrl.u32 %v3453_v30, 16  ;;  %v1408_v61 = vshll.u32 %v3453_v30, 16 }
 0x1c2   :  { %v2586_v1 = vsel %vm2515_vm0, %v2565_v26, %v4882_v46  ;;  %v1396_v19 = vrot.slane %v1394_v11, 5  ;;  %v1400_v28 = vshll.u32 %v3452_v8, 16  ;;  %v3455_v37 = vcombine.low %v1166_v36, %v1166_v36 }
 0x1c3   :  { %v1384_v59 = vrot.slane %v1383_v54, 4  ;;  %v1410_v16 = vrot.slane %v1408_v61, 5  ;;  %v3457_v55 = vcombine.low %v1167_v41, %v1167_v41  ;;  %v3458_v53 = vcombine.high %v1167_v41, %v1167_v41 }
 0x1c5   :  { %v1433_v23 = vshrl.u32 %v3457_v55, 16  ;;  %v1442_v8 = vshll.u32 %v3458_v53, 16 }
 0x1c6   :  { %v2454_v12 = vpop.permute.xlu0 %2453 }
 0x1c7   :  { %v2601_v10 = vsel %vm2532_vm1, %v2584_v39, %v2454_v12  ;;  %v1365_v12 = vrot.slane %v1363_v31, 4 }
 0x1c8   :  { %2836 = vmatprep.mubr.bf16.mxu1 %v2601_v10 }
 0x1c9   :  { %2837 = vmatmul.mubr.bf16.gmra.mrb[4].mxu1 %v2537_v51  ;;  %v1369_v52 = vor.u32 %v1368_v32, %v1365_v12 }
 0x1ca   :  { %v2200_v7 = vpop.permute.xlu1 %2199 }
 0x1cb   :  { %v2499_v24 = vsel %vm276_vm6, %v4229_v34, %v2200_v7  ;;  %v1370_v2 = vrot.slane %v1369_v52, 4  ;;  %v3454_v34 = vcombine.high %v1165_v56, %v1165_v56  ;;  %v1436_v56 = vshll.u32 %v3457_v55, 16  ;;  %v4240_v52 = vld [vmem:[#allocation2 + $0x60] ss:$8 sps:$4 sm:$0xff]  }
 0x1cc   :  { %v2521_v33 = vsel %vm2515_vm0, %v2499_v24, %v4914_v62  ;;  %v1407_v24 = vrot.slane %v1405_v48, 4 }
 0x1cd   :  { %v2540_v9 = vsel %vm2532_vm1, %v2521_v33, %v4891_v29  ;;  %v1375_v7 = vsel %vm4505_vm14, %v1370_v2, %v1374_v3  ;;  %v1435_v3 = vrot.slane %v1433_v23, 4 }
 0x1cf   :  { %v2458_v15 = vpop.permute.xlu0 %2457 }
 0x1d0   :  { %v2607_v62 = vsel %vm2532_vm1, %v2588_v38, %v2458_v15  ;;  %v1393_v15 = vrot.slane %v1391_v5, 4  ;;  %v1402_v38 = vrot.slane %v1400_v28, 5  ;;  %v1444_v28 = vrot.slane %v1442_v8, 5 }
 0x1d2   :  { %v1397_v33 = vor.u32 %v1396_v19, %v1393_v15  ;;  %v1168_v15 = vld [vmem:[#allocation2 + $0x88] sm:$0x1f] }
 0x1d4   :  { %v2202_v60 = vpop.permute.xlu1 %2201 }
 0x1d5   :  { %v2502_v45 = vsel %vm276_vm6, %v4230_v27, %v2202_v60  ;;  %v1411_v60 = vor.u32 %v1410_v16, %v1407_v24  ;;  %v3459_v16 = vcombine.low %v1168_v15, %v1168_v15 }
 0x1d6   :  { %v2523_v29 = vsel %vm2515_vm0, %v2502_v45, %v4922_v35 }
 0x1d7   :  { %v2543_v25 = vsel %vm2532_vm1, %v2523_v29, %v4885_v4  ;;  %v1389_v4 = vsel %vm4505_vm14, %v1384_v59, %v1388_v0  ;;  %v1419_v29 = vshrl.u32 %v3455_v37, 16  ;;  %v1438_v59 = vrot.slane %v1436_v56, 5 }
 0x1d8   :  { %v2244_v10 = vpop.permute.xlu1 %2243  ;;  %v3627_v17 = vcombine.low %v1375_v7, %v1389_v4 }
 0x1d9   :  { %v2456_v39 = vpop.permute.xlu0 %2455  ;;  %v1421_v30 = vrot.slane %v1419_v29, 4 }
 0x1da   :  { %v2604_v44 = vsel %vm2532_vm1, %v2586_v1, %v2456_v39  ;;  %v1414_v39 = vshll.u32 %v3454_v34, 16 }
 0x1db   :  { %2844 = vmatprep.mubr.bf16.mxu1 %v2604_v44 }
 0x1dc   :  { %2845 = vmatmul.mubr.bf16.gmra.mrb[8].mxu1 %v2540_v9  ;;  %v1398_v9 = vrot.slane %v1397_v33, 4  ;;  %v1416_v45 = vrot.slane %v1414_v39, 5  ;;  %v1447_v33 = vshrl.u32 %v3459_v16, 16 }
 0x1dd   :  { %v4964_v46 = vpop.permute.xlu0 %2365  ;;  %2852 = vmatprep.mubr.bf16.mxu1 %v2607_v62  ;;  %v1412_v62 = vrot.slane %v1411_v60, 4  ;;  %v1450_v60 = vshll.u32 %v3459_v16, 16  ;;  %v4250_v16 = vld [vmem:[#allocation2 + $0x80] ss:$8 sps:$4 sm:$0xff]  }
 0x1de   :  { %v4970_v63 = vpop.permute.xlu1 %2245 }
 0x1df   :  { %v1417_v47 = vsel %vm4505_vm14, %v1412_v62, %v1416_v45  ;;  %v1449_v62 = vrot.slane %v1447_v33, 4 }
 0x1e1   :  { %v2364_v51 = vpop.permute.xlu0 %2363 }
 0x1e2   :  { %v2571_v26 = vsel %vm276_vm6, %v3627_v17, %v2364_v51  ;;  %v1422_v51 = vshll.u32 %v3455_v37, 16  ;;  %v1452_v37 = vrot.slane %v1450_v60, 5 }
 0x1e3   :  { %v2590_v31 = vsel %vm2515_vm0, %v2571_v26, %v4924_v14 }
 0x1e4   :  { %2853 = vmatmul.mubr.bf16.gmra.mrb[12].mxu1 %v2543_v25  ;;  %v3456_v25 = vcombine.high %v1166_v36, %v1166_v36  ;;  %v1424_v2 = vrot.slane %v1422_v51, 5  ;;  %v1453_v51 = vor.u32 %v1452_v37, %v1449_v62 }
 0x1e5   :  { %v4972_v35 = vpop.permute.xlu0 %2421 }
 0x1e6   :  { %v1428_v61 = vshll.u32 %v3456_v25, 16  ;;  %v1980_v25 = vld [vmem:[#allocation2 + $0x68] sm:$0x1e] }
 0x1e8   :  { %v2204_v21 = vpop.permute.xlu1 %2203  ;;  %v1430_v24 = vrot.slane %v1428_v61, 5 }
 0x1e9   :  { %v4978_v40 = vpop.permute.xlu0 %2423  ;;  %v2505_v20 = vsel %vm276_vm6, %v4239_v22, %v2204_v21  ;;  %v1425_v21 = vor.u32 %v1424_v2, %v1421_v30  ;;  %v1439_v22 = vor.u32 %v1438_v59, %v1435_v3  ;;  %v3561_v59 = vcombine.low %v1980_v25, %v1980_v25 }
 0x1ea   :  { %v2525_v18 = vsel %vm2515_vm0, %v2505_v20, %v2244_v10 }
 0x1eb   :  { %v2546_v49 = vsel %vm2532_vm1, %v2525_v18, %v4938_v58  ;;  %v1403_v58 = vsel %vm4505_vm14, %v1398_v9, %v1402_v38  ;;  %v1426_v20 = vrot.slane %v1425_v21, 4  ;;  %v1440_v26 = vrot.slane %v1439_v22, 4 }
 0x1ec   :  { %v4988_v27 = vpop.permute.xlu1 %2303  ;;  %v3628_v54 = vcombine.low %v1403_v58, %v1417_v47  ;;  %v3460_v9 = vcombine.high %v1168_v15, %v1168_v15  ;;  %v3584_v8 = vrot.slane %v3561_v59, 9  ;;  %v1981_v15 = vld [vmem:[#allocation2 + $0x70] sm:$0x1e] }
 0x1ed   :  { %v1431_v39 = vsel %vm4505_vm14, %v1426_v20, %v1430_v24  ;;  %v1983_v24 = vld [vmem:[#allocation2 + $0x80] sm:$0x1e]  ;;  %v3563_v20 = vcombine.low %v1981_v15, %v1981_v15  ;;  %v3564_v60 = vcombine.high %v1981_v15, %v1981_v15 }
 0x1ee   :  { %v2574_v0 = vsel %vm276_vm6, %v3628_v54, %v4964_v46  ;;  %v3567_v13 = vcombine.low %v1983_v24, %v1983_v24 }
 0x1ef   :  { %v2592_v48 = vsel %vm2515_vm0, %v2574_v0, %v4972_v35  ;;  %v3562_v0 = vcombine.high %v1980_v25, %v1980_v25 }
 0x1f0   :  { %v2206_v10 = vpop.permute.xlu1 %2205 }
 0x1f1   :  { %v2508_v57 = vsel %vm276_vm6, %v4240_v52, %v2206_v10  ;;  %v1456_v10 = vshll.u32 %v3460_v9, 16 }
 0x1f2   :  { %v2460_v1 = vpop.permute.xlu0 %2459  ;;  %v2527_v5 = vsel %vm2515_vm0, %v2508_v57, %v4970_v63  ;;  %v1169_v63 = vld [vmem:[#allocation2 + $0x90] sm:$0x1f]  ;;  %v1979_v57 = vld [vmem:[#allocation2 + $0x60] sm:$0x1e] }
 0x1f3   :  { %v2610_v44 = vsel %vm2532_vm1, %v2590_v31, %v2460_v1  ;;  %v2549_v46 = vsel %vm2532_vm1, %v2527_v5, %v4933_v43  ;;  %v3461_v18 = vcombine.low %v1169_v63, %v1169_v63  ;;  %v1445_v1 = vsel %vm4505_vm14, %v1440_v26, %v1444_v28  ;;  %v1984_v26 = vld [vmem:[#allocation2 + $0x88] sm:$0x1e] }
 0x1f4   :  { %2860 = vmatprep.mubr.bf16.mxu1 %v2610_v44  ;;  %v2248_v35 = vpop.permute.xlu1 %2247  ;;  %v3629_v41 = vcombine.low %v1431_v39, %v1445_v1  ;;  %v3462_v38 = vcombine.high %v1169_v63, %v1169_v63  ;;  %v3560_v3 = vcombine.high %v1979_v57, %v1979_v57  ;;  %v1454_v5 = vrot.slane %v1453_v51, 4 }
 0x1f5   :  { %2861 = vmatmul.mubr.bf16.gmra.mrb[16].mxu1 %v2546_v49  ;;  %v1461_v43 = vshrl.u32 %v3461_v18, 16  ;;  %v1464_v31 = vshll.u32 %v3461_v18, 16  ;;  %v4245_v49 = vld [vmem:[#allocation2 + $0x70] ss:$8 sps:$4 sm:$0xff]   ;;  %v3570_v9 = vcombine.high %v1984_v26, %v1984_v26 }
 0x1f6   :  { %v2368_v42 = vpop.permute.xlu0 %2367  ;;  %v1470_v56 = vshll.u32 %v3462_v38, 16  ;;  %v2101_v22 = vrot.slane %v3560_v3, 5 }
 0x1f7   :  { %v4990_v12 = vpop.f32.mrb[16].mxu0  ;;  %v1463_v55 = vrot.slane %v1461_v43, 4  ;;  %v1466_v58 = vrot.slane %v1464_v31, 5  ;;  %v2577_v47 = vsel %vm276_vm6, %v3629_v41, %v2368_v42  ;;  %v3559_v42 = vcombine.low %v1979_v57, %v1979_v57  ;;  %v1986_v57 = vld [vmem:[#allocation2 + $0x98] sm:$0x1e] }
 0x1f8   :  { %v4992_v14 = vpop.f32.mrb[17].mxu0  ;;  %v2594_v54 = vsel %vm2515_vm0, %v2577_v47, %v4978_v40  ;;  %v3569_v41 = vcombine.low %v1984_v26, %v1984_v26  ;;  %v3574_v3 = vcombine.high %v1986_v57, %v1986_v57 }
 0x1f9   :  { %v4994_v32 = vpop.f32.mrb[18].mxu0  ;;  %v1467_v23 = vor.u32 %v1466_v58, %v1463_v55  ;;  %v3583_v40 = vrot.slane %v3559_v42, 9  ;;  %v3585_v55 = vrot.slane %v3563_v20, 9  ;;  %v2109_v58 = vrot.slane %v3564_v60, 5 }
 0x1fa   :  { %v5000_v50 = vpop.f32.mrb[19].mxu0  ;;  %v3573_v42 = vcombine.low %v1986_v57, %v1986_v57 }
 0x1fb   :  { %v1468_v61 = vrot.slane %v1467_v23, 4  ;;  %v2102_v18 = vsel %vm4494_vm13, %v3583_v40, %v2101_v22  ;;  %v3587_v23 = vrot.slane %v3567_v13, 9  ;;  %v2110_v25 = vsel %vm4494_vm13, %v3585_v55, %v2109_v58 }
 0x1fc   :  { %v3590_v40 = vrot.slane %v3573_v42, 9  ;;  %v2129_v22 = vrot.slane %v3574_v3, 5 }
 0x1ff   :  { %v2208_v44 = vpop.permute.xlu1 %2207 }
 0x200   :  { %v2511_v45 = vsel %vm276_vm6, %v4245_v49, %v2208_v44  ;;  %v3568_v49 = vcombine.high %v1983_v24, %v1983_v24 }
 0x201   :  { %v5007_v11 = vpop.f32.mrb[20].mxu0  ;;  %v2529_v29 = vsel %vm2515_vm0, %v2511_v45, %v2248_v35  ;;  %v1982_v35 = vld [vmem:[#allocation2 + $0x78] sm:$0x1e] }
 0x202   :  { %v2462_v7 = vpop.permute.xlu0 %2461  ;;  %v5011_v4 = vpop.f32.mrb[21].mxu0  ;;  %v2552_v2 = vsel %vm2532_vm1, %v2529_v29, %v4988_v27  ;;  %v3565_v1 = vcombine.low %v1982_v35, %v1982_v35  ;;  %v3566_v43 = vcombine.high %v1982_v35, %v1982_v35 }
 0x203   :  { %v2613_v34 = vsel %vm2532_vm1, %v2592_v48, %v2462_v7  ;;  %v5014_v17 = vpop.f32.mrb[22].mxu0  ;;  %v2250_v53 = vpop.permute.xlu1 %2249  ;;  %v1458_v48 = vrot.slane %v1456_v10, 5  ;;  %v1472_v7 = vrot.slane %v1470_v56, 5  ;;  %v2117_v56 = vrot.slane %v3568_v49, 5 }
 0x204   :  { %2868 = vmatprep.mubr.bf16.mxu1 %v2613_v34  ;;  %v5018_v19 = vpop.f32.mrb[23].mxu0  ;;  %v2105_v34 = vrot.slane %v3562_v0, 5  ;;  %v3586_v29 = vrot.slane %v3565_v1, 9  ;;  %v2113_v51 = vrot.slane %v3566_v43, 5 }
 0x205   :  { %2869 = vmatmul.mubr.bf16.gmra.mrb[20].mxu1 %v2549_v46  ;;  %v1459_v46 = vsel %vm4505_vm14, %v1454_v5, %v1458_v48  ;;  %v1473_v27 = vsel %vm4505_vm14, %v1468_v61, %v1472_v7  ;;  %v2118_v59 = vsel %vm4494_vm13, %v3587_v23, %v2117_v56  ;;  %v4267_v5 = vld [vmem:[%s5167_s3] sm:$0xff]  }
 0x206   :  { %v2370_v36 = vpop.permute.xlu0 %2369  ;;  %v3630_v28 = vcombine.low %v1459_v46, %v1473_v27  ;;  %v2106_v33 = vsel %vm4494_vm13, %v3584_v8, %v2105_v34  ;;  %3987 = vmatprep.subr.bf16.mxu0 %v4267_v5  ;;  %v2130_v34 = vsel %vm4494_vm13, %v3590_v40, %v2129_v22  ;;  %v4268_v46 = vld [vmem:[%s5167_s3 + $0x8] sm:$0xff]  }
 0x207   :  { %v3659_v10 = vcombine.low %v2102_v18, %v2106_v33  ;;  %3988 = vmatpush3.bf16.msra.mxu0 %v4267_v5 }
 0x208   :  { %v2580_v31 = vsel %vm276_vm6, %v3630_v28, %v2370_v36  ;;  %v1985_v36 = vld [vmem:[#allocation2 + $0x90] sm:$0x1e]  ;;  %3989 = vmatprep.subr.bf16.mxu0 %v4268_v46 }
 0x20b   :  { %3990 = vmatpush3.bf16.msra.mxu0 %v4268_v46 }
 0x20f   :  { %v2210_v21 = vpop.permute.xlu1 %2209 }
 0x210   :  { %v2514_v39 = vsel %vm276_vm6, %v4250_v16, %v2210_v21 }
 0x211   :  { %v2531_v37 = vsel %vm2515_vm0, %v2514_v39, %v2250_v53  ;;  %v3571_v53 = vcombine.low %v1985_v36, %v1985_v36 }
 0x213   :  { %v2464_v52 = vpop.permute.xlu0 %2463  ;;  %v2306_v44 = vpop.permute.xlu1 %2305  ;;  %v3589_v61 = vrot.slane %v3571_v53, 9 }
 0x214   :  { %v2616_v30 = vsel %vm2532_vm1, %v2594_v54, %v2464_v52  ;;  %v2555_v47 = vsel %vm2532_vm1, %v2531_v37, %v2306_v44  ;;  %v3588_v52 = vrot.slane %v3569_v41, 9  ;;  %v2121_v54 = vrot.slane %v3570_v9, 5 }
 0x215   :  { %2876 = vmatprep.mubr.bf16.mxu1 %v2616_v30  ;;  %v2114_v30 = vsel %vm4494_vm13, %v3586_v29, %v2113_v51 }
 0x216   :  { %2877 = vmatmul.mubr.bf16.gmra.mrb[24].mxu1 %v2552_v2  ;;  %v3572_v2 = vcombine.high %v1985_v36, %v1985_v36  ;;  %v2122_v0 = vsel %vm4494_vm13, %v3588_v52, %v2121_v54  ;;  %v3660_v48 = vcombine.low %v2110_v25, %v2114_v30 }
 0x217   :  { %v2426_v63 = vpop.permute.xlu0 %2425  ;;  %v3661_v7 = vcombine.low %v2118_v59, %v2122_v0 }
 0x218   :  { %v2596_v38 = vsel %vm2515_vm0, %v2580_v31, %v2426_v63  ;;  %v2125_v21 = vrot.slane %v3572_v2, 5  ;;  %v5071_v63 = vld [vmem:[%s5169_s5] ss:$0 sm:$0xff] }
 0x21a   :  { %v2126_v8 = vsel %vm4494_vm13, %v3589_v61, %v2125_v21 }
 0x21b   :  { %v3662_v15 = vcombine.low %v2126_v8, %v2130_v34 }
 0x221   :  { %v2466_v62 = vpop.permute.xlu0 %2465 }
 0x222   :  { %v2619_v45 = vsel %vm2532_vm1, %v2596_v38, %v2466_v62 }
 0x223   :  { %2884 = vmatprep.mubr.bf16.mxu1 %v2619_v45 }
 0x224   :  { %2885 = vmatmul.mubr.bf16.gmra.mrb[28].mxu1 %v2555_v47 }
 0x225   :  { %3979 = vmatprep.mubr.msk.bf16.mxu1 %vm276_vm6, %v3659_v10 }
 0x22c   :  { %3980 = vmatmul.mubr.msk.bf16.vlgmr.msra.gmra.mrb[32].mxu1 %vm276_vm6, %v3660_v48 }
 0x22d   :  { %3983 = vmatprep.mubr.msk.bf16.mxu1 %vm276_vm6, %v3661_v7 }
 0x234   :  { %3984 = vmatmul.mubr.msk.bf16.gmra.mrb[36].mxu1 %vm276_vm6, %v3662_v15 }
 0x286   :  { %v3867_v27 = vpop.f32.mrb[0].mxu1 }
 0x287   :  { %v3868_v35 = vpop.f32.mrb[1].mxu1 }
 0x288   :  { %v3869_v24 = vadd.f32 %v3868_v35, %v3867_v27  ;;  %v3870_v16 = vpop.f32.mrb[2].mxu1 }
 0x289   :  { %v3871_v6 = vpop.f32.mrb[3].mxu1 }
 0x28a   :  { %v2831_v20 = vadd.f32 %v3869_v24, %v5071_v63  ;;  %v3872_v26 = vadd.f32 %v3871_v6, %v3870_v16 }
 0x28c   :  { %v2928_v28 = vadd.f32 %v4992_v14, %v2831_v20  ;;  %v2834_v18 = vadd.f32 %v3872_v26, %v5071_v63 }
 0x28e   :  { %v2931_v33 = vadd.f32 %v5000_v50, %v2834_v18  ;;  %v2990_v60 = vmax.f32 %v2928_v28, 0.0 }
 0x290   :  { %v2991_v39 = vmax.f32 %v2931_v33, 0.0 }
 0x292   :  { %v3006_v1 = vpack.c.bf16 %v2991_v39, %v2990_v60 }
 0x294   :  { %3991 = vmatprep.mubr.msk.bf16.mxu0 %vm276_vm6, %v3006_v1 }
 0x29c   :  { %v3873_v43 = vpop.f32.mrb[4].mxu1 }
 0x29d   :  { %v3874_v13 = vpop.f32.mrb[5].mxu1 }
 0x29e   :  { %v3875_v31 = vadd.f32 %v3874_v13, %v3873_v43  ;;  %v3876_v44 = vpop.f32.mrb[6].mxu1 }
 0x29f   :  { %v3877_v49 = vpop.f32.mrb[7].mxu1 }
 0x2a0   :  { %v2839_v41 = vadd.f32 %v3875_v31, %v5071_v63  ;;  %v3878_v9 = vadd.f32 %v3877_v49, %v3876_v44 }
 0x2a2   :  { %v2936_v38 = vadd.f32 %v4990_v12, %v2839_v41  ;;  %v2842_v14 = vadd.f32 %v3878_v9, %v5071_v63 }
 0x2a4   :  { %v2939_v62 = vadd.f32 %v4994_v32, %v2842_v14  ;;  %v2992_v50 = vmax.f32 %v2936_v38, 0.0 }
 0x2a6   :  { %v2993_v45 = vmax.f32 %v2939_v62, 0.0 }
 0x2a8   :  { %v3007_v37 = vpack.c.bf16 %v2993_v45, %v2992_v50 }
 0x2aa   :  { %3992 = vmatmul.mubr.msk.bf16.vlgmr.msra.gmra.mrb[24].mxu0 %vm276_vm6, %v3007_v37 }
 0x2af   :  { %v3879_v55 = vpop.f32.mrb[8].mxu1 }
 0x2b0   :  { %v3880_v58 = vpop.f32.mrb[9].mxu1 }
 0x2b1   :  { %v3881_v47 = vadd.f32 %v3880_v58, %v3879_v55  ;;  %v3882_v10 = vpop.f32.mrb[10].mxu1 }
 0x2b2   :  { %v3883_v29 = vpop.f32.mrb[11].mxu1 }
 0x2b3   :  { %v2847_v51 = vadd.f32 %v3881_v47, %v5071_v63  ;;  %v3884_v36 = vadd.f32 %v3883_v29, %v3882_v10 }
 0x2b5   :  { %v2944_v23 = vadd.f32 %v5011_v4, %v2847_v51  ;;  %v2850_v12 = vadd.f32 %v3884_v36, %v5071_v63 }
 0x2b7   :  { %v2947_v56 = vadd.f32 %v5018_v19, %v2850_v12  ;;  %v3885_v32 = vpop.f32.mrb[12].mxu1  ;;  %v2994_v54 = vmax.f32 %v2944_v23, 0.0 }
 0x2b8   :  { %v3886_v52 = vpop.f32.mrb[13].mxu1 }
 0x2b9   :  { %v2995_v57 = vmax.f32 %v2947_v56, 0.0  ;;  %v3887_v25 = vadd.f32 %v3886_v52, %v3885_v32  ;;  %v3888_v53 = vpop.f32.mrb[14].mxu1 }
 0x2ba   :  { %v3889_v30 = vpop.f32.mrb[15].mxu1 }
 0x2bb   :  { %v3008_v2 = vpack.c.bf16 %v2995_v57, %v2994_v54  ;;  %v2855_v42 = vadd.f32 %v3887_v25, %v5071_v63  ;;  %v3890_v3 = vadd.f32 %v3889_v30, %v3888_v53 }
 0x2bd   :  { %v2952_v59 = vadd.f32 %v5007_v11, %v2855_v42  ;;  %v2858_v0 = vadd.f32 %v3890_v3, %v5071_v63  ;;  %3995 = vmatprep.mubr.msk.bf16.mxu0 %vm276_vm6, %v3008_v2 }
 0x2bf   :  { %v2955_v4 = vadd.f32 %v5014_v17, %v2858_v0  ;;  %v2996_v19 = vmax.f32 %v2952_v59, 0.0 }
 0x2c1   :  { %v2997_v5 = vmax.f32 %v2955_v4, 0.0 }
 0x2c3   :  { %v3009_v48 = vpack.c.bf16 %v2997_v5, %v2996_v19  ;;  %v3821_v19 = vld [vmem:[%s5164_s0 + $0x8] sm:$0xff]   ;;  %v5114_v5 = vld [vmem:[%s5170_s6] ss:$0 sm:$0xff] }
 0x2c5   :  { %3996 = vmatmul.mubr.msk.bf16.gmra.mrb[28].mxu0 %vm276_vm6, %v3009_v48  ;;  %v3755_v48 = vunpack.c.l.bf16 %v3821_v19 }
 0x2c8   :  { %v3891_v61 = vpop.f32.mrb[16].mxu1 }
 0x2c9   :  { %v3892_v7 = vpop.f32.mrb[17].mxu1 }
 0x2ca   :  { %v3893_v21 = vadd.f32 %v3892_v7, %v3891_v61  ;;  %v3894_v40 = vpop.f32.mrb[18].mxu1 }
 0x2cb   :  { %v3895_v22 = vpop.f32.mrb[19].mxu1 }
 0x2cc   :  { %v3896_v8 = vadd.f32 %v3895_v22, %v3894_v40  ;;  %v2863_v31 = vadd.f32 %v3893_v21, %v5071_v63  ;;  %v3756_v22 = vunpack.c.h.bf16 %v3821_v19 }
 0x2ce   :  { %v2866_v14 = vadd.f32 %v3896_v8, %v5071_v63 }
 0x2d8   :  { %v3897_v34 = vpop.f32.mrb[20].mxu1 }
 0x2d9   :  { %v3898_v15 = vpop.f32.mrb[21].mxu1 }
 0x2da   :  { %v3899_v11 = vadd.f32 %v3898_v15, %v3897_v34  ;;  %v3900_v46 = vpop.f32.mrb[22].mxu1 }
 0x2db   :  { %v3901_v27 = vpop.f32.mrb[23].mxu1 }
 0x2dc   :  { %v3902_v35 = vadd.f32 %v3901_v27, %v3900_v46  ;;  %v2871_v43 = vadd.f32 %v3899_v11, %v5071_v63 }
 0x2de   :  { %v2874_v41 = vadd.f32 %v3902_v35, %v5071_v63 }
 0x2e9   :  { %v3903_v24 = vpop.f32.mrb[24].mxu1 }
 0x2ea   :  { %v3904_v16 = vpop.f32.mrb[25].mxu1 }
 0x2eb   :  { %v3905_v17 = vadd.f32 %v3904_v16, %v3903_v24  ;;  %v3906_v6 = vpop.f32.mrb[26].mxu1 }
 0x2ec   :  { %v3907_v20 = vpop.f32.mrb[27].mxu1 }
 0x2ed   :  { %v3908_v26 = vadd.f32 %v3907_v20, %v3906_v6  ;;  %v2879_v23 = vadd.f32 %v3905_v17, %v5071_v63 }
 0x2ef   :  { %v2882_v57 = vadd.f32 %v3908_v26, %v5071_v63 }
 0x2f7   :  { %v3909_v28 = vpop.f32.mrb[28].mxu1 }
 0x2f8   :  { %v3910_v18 = vpop.f32.mrb[29].mxu1 }
 0x2f9   :  { %v3911_v33 = vadd.f32 %v3910_v18, %v3909_v28  ;;  %v3912_v60 = vpop.f32.mrb[30].mxu1 }
 0x2fa   :  { %v3913_v39 = vpop.f32.mrb[31].mxu1 }
 0x2fb   :  { %v3914_v1 = vadd.f32 %v3913_v39, %v3912_v60  ;;  %v2887_v29 = vadd.f32 %v3911_v33, %v5071_v63  ;;  %v3823_v60 = vld [vmem:[%s5164_s0 + $0x18] sm:$0xff]   ;;  %v3822_v39 = vld [vmem:[%s5164_s0 + $0x10] sm:$0xff]  }
 0x2fd   :  { %v2890_v32 = vadd.f32 %v3914_v1, %v5071_v63  ;;  %v3750_v63 = vld [vmem:[%s5164_s0] sm:$0xff]   ;;  %v3763_v1 = vunpack.c.l.bf16 %v3823_v60 }
 0x2fe   :  { %v3751_v7 = vunpack.c.l.bf16 %v3750_v63  ;;  %v3752_v15 = vunpack.c.h.bf16 %v3750_v63  ;;  %v3827_v63 = vld [vmem:[%s5164_s0 + $0x38] sm:$0xff]  }
 0x2ff   :  { %v3981_v13 = vpop.f32.mrb[32].mxu1 }
 0x300   :  { %v2968_v44 = vadd.f32 %v3981_v13, %v2871_v43  ;;  %v2959_v49 = vpop.f32.mrb[33].mxu1  ;;  %v3759_v13 = vunpack.c.l.bf16 %v3822_v39 }
 0x301   :  { %v2960_v9 = vadd.f32 %v2959_v49, %v2863_v31  ;;  %v3982_v38 = vpop.f32.mrb[34].mxu1  ;;  %v3764_v49 = vunpack.c.h.bf16 %v3823_v60 }
 0x302   :  { %v2971_v62 = vadd.f32 %v3982_v38, %v2874_v41  ;;  %v2962_v50 = vpop.f32.mrb[35].mxu1  ;;  %v3000_v37 = vmax.f32 %v2968_v44, 0.0  ;;  %v3760_v38 = vunpack.c.h.bf16 %v3822_v39 }
 0x303   :  { %v2963_v45 = vadd.f32 %v2962_v50, %v2866_v14  ;;  %v2998_v58 = vmax.f32 %v2960_v9, 0.0 }
 0x304   :  { %v3001_v55 = vmax.f32 %v2971_v62, 0.0 }
 0x305   :  { %v2999_v47 = vmax.f32 %v2963_v45, 0.0 }
 0x306   :  { %v3011_v10 = vpack.c.bf16 %v3001_v55, %v3000_v37 }
 0x307   :  { %v3010_v51 = vpack.c.bf16 %v2999_v47, %v2998_v58  ;;  %v3985_v36 = vpop.f32.mrb[36].mxu1 }
 0x308   :  { %v2984_v12 = vadd.f32 %v3985_v36, %v2887_v29  ;;  %v2975_v56 = vpop.f32.mrb[37].mxu1 }
 0x309   :  { %v2976_v52 = vadd.f32 %v2975_v56, %v2879_v23  ;;  %v3986_v54 = vpop.f32.mrb[38].mxu1  ;;  %3999 = vmatprep.mubr.msk.bf16.mxu0 %vm276_vm6, %v3010_v51  ;;  %v3824_v56 = vld [vmem:[%s5164_s0 + $0x20] sm:$0xff]  }
 0x30a   :  { %v2987_v25 = vadd.f32 %v3986_v54, %v2890_v32  ;;  %v2978_v53 = vpop.f32.mrb[39].mxu1  ;;  %4000 = vmatmul.mubr.msk.bf16.gmra.mrb[32].mxu0 %vm276_vm6, %v3011_v10  ;;  %v3004_v2 = vmax.f32 %v2984_v12, 0.0  ;;  %v3825_v12 = vld [vmem:[%s5164_s0 + $0x28] sm:$0xff]   ;;  %v3767_v54 = vunpack.c.l.bf16 %v3824_v56 }
 0x30b   :  { %v2979_v30 = vadd.f32 %v2978_v53, %v2882_v57  ;;  %v3002_v3 = vmax.f32 %v2976_v52, 0.0  ;;  %v3771_v32 = vunpack.c.l.bf16 %v3825_v12  ;;  %v3772_v53 = vunpack.c.h.bf16 %v3825_v12 }
 0x30c   :  { %v3005_v42 = vmax.f32 %v2987_v25, 0.0 }
 0x30d   :  { %v3003_v59 = vmax.f32 %v2979_v30, 0.0 }
 0x30e   :  { %v3013_v0 = vpack.c.bf16 %v3005_v42, %v3004_v2  ;;  %v3768_v42 = vunpack.c.h.bf16 %v3824_v56 }
 0x30f   :  { %v3012_v4 = vpack.c.bf16 %v3003_v59, %v3002_v3 }
 0x311   :  { %4003 = vmatprep.mubr.msk.bf16.mxu0 %vm276_vm6, %v3012_v4 }
 0x312   :  { %4004 = vmatmul.mubr.msk.bf16.gmra.mrb[36].mxu0 %vm276_vm6, %v3013_v0 }
 0x37d   :  { %v3993_v61 = vpop.f32.mrb[24].mxu0 }
 0x37e   :  { %v3104_v21 = vadd.f32 %v3993_v61, %v5114_v5  ;;  %v3095_v40 = vpop.f32.mrb[25].mxu0  ;;  %v3826_v61 = vld [vmem:[%s5164_s0 + $0x30] sm:$0xff]   ;;  %s4299_s0 = smov [#allocation3]  }
 0x37f   :  { %v3096_v8 = vadd.f32 %v5114_v5, %v3095_v40  ;;  %v3994_v34 = vpop.f32.mrb[26].mxu0  ;;  %s3307_s26 = sshll.u32 %s4299_s0, 4  ;;  %s3308_s26 = int_to_ptr.vmem [resolvable:$true] %s3307_s26 }
 0x380   :  { %v3192_v11 = vadd.f32 %v3755_v48, %v3104_v21  ;;  %v3107_v46 = vadd.f32 %v3994_v34, %v5114_v5  ;;  %v3098_v27 = vpop.f32.mrb[27].mxu0  ;;  %s4271_s27 = scalar_lea.vmem %s3308_s26, 1024  ;;  %p4276_p1 = scmp.lt.s32.totalorder %s3308_s26, %s3308_s26 }
 0x381   :  { %v3190_v35 = vadd.f32 %v3751_v7, %v3096_v8  ;;  %v3099_v24 = vadd.f32 %v5114_v5, %v3098_v27  ;;  %p4272_p0 = scmp.ne.s32.totalorder %s3308_s26, %s4271_s27  ;;  %p4277_p2 = scmp.lt.s32.totalorder %s4271_s27, %s4271_s27 }
 0x382   :  { %v3193_v16 = vadd.f32 %v3756_v22, %v3107_v46  ;;  %v3208_v6 = vmax.f32 %v3192_v11, 0.0  ;;  %v3779_v22 = vunpack.c.l.bf16 %v3827_v63  ;;  %v3775_v11 = vunpack.c.l.bf16 %v3826_v61 }
 0x383   :  { %v3191_v17 = vadd.f32 %v3752_v15, %v3099_v24  ;;  %v3206_v26 = vmax.f32 %v3190_v35, 0.0  ;;  %v3780_v24 = vunpack.c.h.bf16 %v3827_v63  ;;  %p4278_p3 = por %p4277_p2, %p4276_p1 }
 0x384   :  { %v3209_v20 = vmax.f32 %v3193_v16, 0.0 }
 0x385   :  { %v3207_v28 = vmax.f32 %v3191_v17, 0.0  ;;  %p4279_p4 = pnand %p4278_p3, %p4272_p0 }
 0x386   :  { %v3789_v18 = vpack.c.bf16 %v3209_v20, %v3208_v6  ;;  %v3776_v20 = vunpack.c.h.bf16 %v3826_v61 }
 0x387   :  { %v3784_v33 = vpack.c.bf16 %v3207_v28, %v3206_v26 }
 0x388   :  { %3828 = vst [vmem:[#allocation3 + $0x8] sm:$0xff] %v3789_v18  }
 0x389   :  { %3785 = vst [vmem:[#allocation3] sm:$0xff] %v3784_v33  }
 0x398   :  { %v3997_v43 = vpop.f32.mrb[28].mxu0 }
 0x399   :  { %v3120_v31 = vadd.f32 %v3997_v43, %v5114_v5  ;;  %v3111_v44 = vpop.f32.mrb[29].mxu0 }
 0x39a   :  { %v3112_v41 = vadd.f32 %v5114_v5, %v3111_v44  ;;  %v3998_v9 = vpop.f32.mrb[30].mxu0 }
 0x39b   :  { %v3196_v14 = vadd.f32 %v3763_v1, %v3120_v31  ;;  %v3123_v62 = vadd.f32 %v3998_v9, %v5114_v5  ;;  %v3114_v50 = vpop.f32.mrb[31].mxu0 }
 0x39c   :  { %v3194_v45 = vadd.f32 %v3759_v13, %v3112_v41  ;;  %v3115_v37 = vadd.f32 %v5114_v5, %v3114_v50 }
 0x39d   :  { %v3197_v55 = vadd.f32 %v3764_v49, %v3123_v62  ;;  %v3212_v47 = vmax.f32 %v3196_v14, 0.0 }
 0x39e   :  { %v3195_v58 = vadd.f32 %v3760_v38, %v3115_v37  ;;  %v3210_v29 = vmax.f32 %v3194_v45, 0.0 }
 0x39f   :  { %v3213_v10 = vmax.f32 %v3197_v55, 0.0 }
 0x3a0   :  { %v3211_v51 = vmax.f32 %v3195_v58, 0.0 }
 0x3a1   :  { %v3799_v36 = vpack.c.bf16 %v3213_v10, %v3212_v47 }
 0x3a2   :  { %v3794_v23 = vpack.c.bf16 %v3211_v51, %v3210_v29 }
 0x3a3   :  { %3830 = vst [vmem:[#allocation3 + $0x18] sm:$0xff] %v3799_v36  }
 0x3a4   :  { %3829 = vst [vmem:[#allocation3 + $0x10] sm:$0xff] %v3794_v23  }
 0x3dd   :  { %v4001_v52 = vpop.f32.mrb[32].mxu0 }
 0x3de   :  { %v3136_v57 = vadd.f32 %v4001_v52, %v5114_v5  ;;  %v3127_v25 = vpop.f32.mrb[33].mxu0 }
 0x3df   :  { %v3128_v30 = vadd.f32 %v5114_v5, %v3127_v25  ;;  %v4002_v2 = vpop.f32.mrb[34].mxu0 }
 0x3e0   :  { %v3200_v3 = vadd.f32 %v3771_v32, %v3136_v57  ;;  %v3139_v59 = vadd.f32 %v4002_v2, %v5114_v5  ;;  %v3130_v0 = vpop.f32.mrb[35].mxu0 }
 0x3e1   :  { %v3198_v4 = vadd.f32 %v3767_v54, %v3128_v30  ;;  %v3131_v19 = vadd.f32 %v5114_v5, %v3130_v0 }
 0x3e2   :  { %v3201_v48 = vadd.f32 %v3772_v53, %v3139_v59  ;;  %v3216_v21 = vmax.f32 %v3200_v3, 0.0 }
 0x3e3   :  { %v3199_v7 = vadd.f32 %v3768_v42, %v3131_v19  ;;  %v3214_v8 = vmax.f32 %v3198_v4, 0.0 }
 0x3e4   :  { %v3217_v40 = vmax.f32 %v3201_v48, 0.0 }
 0x3e5   :  { %v3215_v34 = vmax.f32 %v3199_v7, 0.0  ;;  %v4005_v15 = vpop.f32.mrb[36].mxu0 }
 0x3e6   :  { %v3809_v46 = vpack.c.bf16 %v3217_v40, %v3216_v21  ;;  %v3152_v27 = vadd.f32 %v4005_v15, %v5114_v5  ;;  %v3143_v35 = vpop.f32.mrb[37].mxu0 }
 0x3e7   :  { %v3804_v16 = vpack.c.bf16 %v3215_v34, %v3214_v8  ;;  %v3144_v17 = vadd.f32 %v5114_v5, %v3143_v35  ;;  %v4006_v6 = vpop.f32.mrb[38].mxu0 }
 0x3e8   :  { %3832 = vst [vmem:[#allocation3 + $0x28] sm:$0xff] %v3809_v46   ;;  %v3204_v26 = vadd.f32 %v3779_v22, %v3152_v27  ;;  %v3155_v28 = vadd.f32 %v4006_v6, %v5114_v5  ;;  %v3146_v18 = vpop.f32.mrb[39].mxu0 }
 0x3e9   :  { %3831 = vst [vmem:[#allocation3 + $0x20] sm:$0xff] %v3804_v16   ;;  %v3202_v33 = vadd.f32 %v3775_v11, %v3144_v17  ;;  %v3147_v60 = vadd.f32 %v5114_v5, %v3146_v18 }
 0x3ea   :  { %v3205_v39 = vadd.f32 %v3780_v24, %v3155_v28  ;;  %v3220_v43 = vmax.f32 %v3204_v26, 0.0 }
 0x3eb   :  { %v3203_v1 = vadd.f32 %v3776_v20, %v3147_v60  ;;  %v3218_v31 = vmax.f32 %v3202_v33, 0.0 }
 0x3ec   :  { %v3221_v13 = vmax.f32 %v3205_v39, 0.0 }
 0x3ed   :  { %v3219_v44 = vmax.f32 %v3203_v1, 0.0 }
 0x3ee   :  { %v3819_v49 = vpack.c.bf16 %v3221_v13, %v3220_v43 }
 0x3ef   :  { %v3814_v41 = vpack.c.bf16 %v3219_v44, %v3218_v31 }
 0x3f0   :  { %3834 = vst [vmem:[#allocation3 + $0x38] sm:$0xff] %v3819_v49  }
 0x3f1   :  { %3833 = vst [vmem:[#allocation3 + $0x30] sm:$0xff] %v3814_v41  }
 0x3f2   :  { %4282 = shalt.err (!%p4279_p4)
}
 0x3f3   :  { %s4283_s2 = scalar_lea.hbm %s5171_s7, 1024 }
 0x3f4   :  { %p4284_p5 = scmp.ne.s32.totalorder %s5171_s7, %s4283_s2  ;;  %p4287_p6 = scmp.lt.u32.totalorder %s4283_s2, %s5171_s7 }
 0x3f6   :  { %p4289_p7 = pnand %p4287_p6, %p4284_p5 }
 0x3f8   :  { %4292 = shalt.err (!%p4289_p7)
}
 0x3f9   :  { %s4300_s9 = smov 4  }
 0x3fa   :  { %3313 = dma.vmem_to_hbm [thread:$0]  %s3308_s26, 1024, %s5171_s7, [#allocation4], %s4297_s15, %s4297_s15, %s4300_s9  }
 0x3fb   :  { %4293 = dma.done.wait [#allocation4], 1024  }
 0x3fc   :  { %4294 = vsyncadd [#allocation4], 4294966272 }
 0x3fd   :  { %3317 = vsyncpa [#allocation4], 1 }

// kernel: tpu_custom_call.1
= control target key start
LH: loop header
LB: loop body
LE: loop exit
PB: predicated region body
PF: predicated region fallthrough
CT: control target
= control target key end

     0   :  { %s5164_s0 = inlined_call_operand.vmem [shape: bf16[2,64,128], index: 0, kind: input, shape index: {}]   ;;  %s5165_s1 = inlined_call_operand.vmem [shape: bf16[128,32], index: 1, kind: input, shape index: {}]   ;;  %s5166_s2 = inlined_call_operand.vmem [shape: bf16[288,32], index: 2, kind: input, shape index: {}]   ;;  %s5167_s3 = inlined_call_operand.vmem [shape: bf16[32,128], index: 3, kind: input, shape index: {}]   ;;  %s5168_s4 = inlined_call_operand.vmem [shape: f32[1,32], index: 4, kind: input, shape index: {}]   ;;  %s5169_s5 = inlined_call_operand.vmem [shape: f32[1,32], index: 5, kind: input, shape index: {}]   ;;  %s5170_s6 = inlined_call_operand.vmem [shape: f32[1,128], index: 6, kind: input, shape index: {}]   ;;  %s5171_s7 = inlined_call_operand.hbm [shape: bf16[2,64,128], index: 7, kind: output, shape index: {}]  }
   0x1   :  { %v4017_v0 = vld [vmem:[%s5165_s1] sm:$0xff]   ;;  %v4018_v1 = vld [vmem:[%s5165_s1 + $0x8] sm:$0xff]   ;;  %v4019_v2 = vld [vmem:[%s5165_s1 + $0x10] sm:$0xff]  }
   0x2   :  { %3935 = vmatprep.subr.bf16.mxu0 %v4017_v0  ;;  %v4020_v3 = vld [vmem:[%s5165_s1 + $0x18] sm:$0xff]   ;;  %v4025_v4 = vld [vmem:[%s5164_s0] sm:$0xff]   ;;  %v4022_v6 = vld [vmem:[%s5165_s1 + $0x28] sm:$0xff]  }
   0x3   :  { %3936 = vmatpush3.bf16.msra.mxu0 %v4017_v0  ;;  %3951 = vmatprep.mubr.bf16.mxu0 %v4025_v4  ;;  %v4021_v5 = vld [vmem:[%s5165_s1 + $0x20] sm:$0xff]   ;;  %v4023_v7 = vld [vmem:[%s5165_s1 + $0x30] sm:$0xff]   ;;  %v4024_v8 = vld [vmem:[%s5165_s1 + $0x38] sm:$0xff]  }
   0x4   :  { %3937 = vmatprep.subr.bf16.mxu0 %v4018_v1 }
   0x7   :  { %3938 = vmatpush3.bf16.msra.mxu0 %v4018_v1 }
   0x8   :  { %3939 = vmatprep.subr.bf16.mxu0 %v4019_v2 }
   0xb   :  { %3940 = vmatpush3.bf16.msra.mxu0 %v4019_v2 }
   0xc   :  { %3941 = vmatprep.subr.bf16.mxu0 %v4020_v3 }
   0xf   :  { %3942 = vmatpush3.bf16.msra.mxu0 %v4020_v3 }
  0x10   :  { %3943 = vmatprep.subr.bf16.mxu0 %v4021_v5 }
  0x13   :  { %3944 = vmatpush3.bf16.msra.mxu0 %v4021_v5 }
  0x14   :  { %3945 = vmatprep.subr.bf16.mxu0 %v4022_v6 }
  0x17   :  { %3946 = vmatpush3.bf16.msra.mxu0 %v4022_v6 }
  0x18   :  { %3947 = vmatprep.subr.bf16.mxu0 %v4023_v7 }
  0x1b   :  { %3948 = vmatpush3.bf16.msra.mxu0 %v4023_v7 }
  0x1c   :  { %3949 = vmatprep.subr.bf16.mxu0 %v4024_v8 }
  0x1d   :  { %12 = vsyncpa [#allocation4], 0  ;;  %v4026_v9 = vld [vmem:[%s5164_s0 + $0x8] sm:$0xff]   ;;  %v4027_v10 = vld [vmem:[%s5164_s0 + $0x10] sm:$0xff]   ;;  %vm282_vm0 = vcmask 253952   ;;  %vm345_vm2 = vcmask 258052  }
  0x1e   :  { %v4028_v11 = vld [vmem:[%s5164_s0 + $0x18] sm:$0xff]   ;;  %v4029_v12 = vld [vmem:[%s5164_s0 + $0x20] sm:$0xff]   ;;  %v4030_v13 = vld [vmem:[%s5164_s0 + $0x28] sm:$0xff]   ;;  %vm283_vm1 = vsmask.f32 256  ;;  %vm276_vm6 = vcmask 261120  }
  0x1f   :  { %3950 = vmatpush3.bf16.msra.mxu0 %v4024_v8  ;;  %v4031_v14 = vld [vmem:[%s5164_s0 + $0x30] sm:$0xff]   ;;  %v4032_v15 = vld [vmem:[%s5164_s0 + $0x38] sm:$0xff]   ;;  %vm346_vm3 = vsmask.f32 7954  ;;  %vm4389_vm4 = vmand %vm282_vm0, %vm283_vm1  ;;  %v4295_v50 = vmov 0   ;;  %vm1071_vm7 = vcmask 1042432  }
  0x20   :  { %v294_v17 = vld [vmem:[#allocation2 + $0x18] sm:$0x1]  ;;  %v357_v18 = vld [vmem:[#allocation2 + $0x18] sm:$0x10]  ;;  %vm4395_vm5 = vmand %vm345_vm2, %vm346_vm3  ;;  %277 = vst.msk [vmem:[#allocation2] sm:$0xff] %vm276_vm6, %v4295_v50  ;;  %vm1072_vm8 = vcmask 1046532  }
  0x21   :  { %v295_v19 = vsel %vm4389_vm4, 0, %v294_v17  ;;  %v288_v21 = vld [vmem:[#allocation2 + $0x8] sm:$0x1]  ;;  %v351_v22 = vld [vmem:[#allocation2 + $0x8] sm:$0x10]  ;;  %v358_v23 = vsel %vm4395_vm5, 0, %v357_v18  ;;  %vm4494_vm13 = vmor %vm1071_vm7, %vm1072_vm8 }
  0x22   :  { %3952 = vmatmul.mubr.bf16.vlgmr.msra.gmra.mrb[0].mxu0 %v4026_v9  ;;  %296 = vst [vmem:[#allocation2 + $0x18] sm:$0x1] %v295_v19  ;;  %v289_v24 = vsel %vm4389_vm4, 0, %v288_v21  ;;  %v352_v25 = vsel %vm4395_vm5, 0, %v351_v22  ;;  %v297_v26 = vld [vmem:[#allocation2 + $0x20] sm:$0x1] }
  0x23   :  { %3955 = vmatprep.mubr.bf16.mxu0 %v4027_v10  ;;  %359 = vst [vmem:[#allocation2 + $0x18] sm:$0x10] %v358_v23  ;;  %290 = vst [vmem:[#allocation2 + $0x8] sm:$0x1] %v289_v24  ;;  %v298_v27 = vsel %vm4389_vm4, 0, %v297_v26  ;;  %v4034_v55 = vld [vmem:[%s5166_s2 + $0x80] sm:$0xff]  }
  0x24   :  { %353 = vst [vmem:[#allocation2 + $0x8] sm:$0x10] %v352_v25  ;;  %v360_v28 = vld [vmem:[#allocation2 + $0x20] sm:$0x10]  ;;  %v291_v29 = vld [vmem:[#allocation2 + $0x10] sm:$0x1]  ;;  %3967 = vmatprep.subr.bf16.mxu0 %v4034_v55 }
  0x25   :  { %299 = vst [vmem:[#allocation2 + $0x20] sm:$0x1] %v298_v27  ;;  %v361_v30 = vsel %vm4395_vm5, 0, %v360_v28  ;;  %v292_v31 = vsel %vm4389_vm4, 0, %v291_v29  ;;  %v354_v32 = vld [vmem:[#allocation2 + $0x10] sm:$0x10]  ;;  %3968 = vmatpush3.bf16.msra.mxu0 %v4034_v55 }
  0x26   :  { %362 = vst [vmem:[#allocation2 + $0x20] sm:$0x10] %v361_v30  ;;  %293 = vst [vmem:[#allocation2 + $0x10] sm:$0x1] %v292_v31  ;;  %v355_v33 = vsel %vm4395_vm5, 0, %v354_v32  ;;  %vm585_vm11 = vcmask 258048  }
  0x27   :  { %356 = vst [vmem:[#allocation2 + $0x10] sm:$0x10] %v355_v33  ;;  %v306_v34 = vld [vmem:[#allocation2 + $0x38] sm:$0x1]  ;;  %v369_v35 = vld [vmem:[#allocation2 + $0x38] sm:$0x10] }
  0x28   :  { %v307_v36 = vsel %vm4389_vm4, 0, %v306_v34  ;;  %v370_v37 = vsel %vm4395_vm5, 0, %v369_v35  ;;  %v300_v38 = vld [vmem:[#allocation2 + $0x28] sm:$0x1]  ;;  %v363_v39 = vld [vmem:[#allocation2 + $0x28] sm:$0x10] }
  0x29   :  { %308 = vst [vmem:[#allocation2 + $0x38] sm:$0x1] %v307_v36  ;;  %371 = vst [vmem:[#allocation2 + $0x38] sm:$0x10] %v370_v37  ;;  %v309_v40 = vld [vmem:[#allocation2 + $0x40] sm:$0x1] }
  0x2a   :  { %3956 = vmatmul.mubr.bf16.gmra.mrb[4].mxu0 %v4028_v11  ;;  %v301_v41 = vsel %vm4389_vm4, 0, %v300_v38  ;;  %v364_v42 = vsel %vm4395_vm5, 0, %v363_v39  ;;  %v310_v43 = vsel %vm4389_vm4, 0, %v309_v40  ;;  %v372_v44 = vld [vmem:[#allocation2 + $0x40] sm:$0x10]  ;;  %278 = vst.msk [vmem:[#allocation2 + $0x50] sm:$0xff] %vm276_vm6, %v4295_v50 }
  0x2b   :  { %3959 = vmatprep.mubr.bf16.mxu0 %v4029_v12  ;;  %302 = vst [vmem:[#allocation2 + $0x28] sm:$0x1] %v301_v41  ;;  %365 = vst [vmem:[#allocation2 + $0x28] sm:$0x10] %v364_v42  ;;  %v303_v45 = vld [vmem:[#allocation2 + $0x30] sm:$0x1] }
  0x2c   :  { %311 = vst [vmem:[#allocation2 + $0x40] sm:$0x1] %v310_v43  ;;  %v373_v46 = vsel %vm4395_vm5, 0, %v372_v44  ;;  %v304_v47 = vsel %vm4389_vm4, 0, %v303_v45  ;;  %v366_v48 = vld [vmem:[#allocation2 + $0x30] sm:$0x10] }
  0x2d   :  { %374 = vst [vmem:[#allocation2 + $0x40] sm:$0x10] %v373_v46  ;;  %305 = vst [vmem:[#allocation2 + $0x30] sm:$0x1] %v304_v47  ;;  %v367_v49 = vsel %vm4395_vm5, 0, %v366_v48  ;;  %v4044_v12 = vld [vmem:[%s5166_s2 + $0x88] sm:$0xff]  }
  0x2e   :  { %368 = vst [vmem:[#allocation2 + $0x30] sm:$0x10] %v367_v49  ;;  %280 = vst.msk [vmem:[#allocation2 + $0x48] sm:$0xff] %vm276_vm6, %v4295_v50  ;;  %v324_v51 = vld [vmem:[#allocation2 + $0x68] sm:$0x1]  ;;  %3969 = vmatprep.subr.bf16.mxu0 %v4044_v12  ;;  %s4297_s15 = smov 64  }
  0x2f   :  { %281 = vst.msk [vmem:[#allocation2 + $0x98] sm:$0xff] %vm276_vm6, %v4295_v50  ;;  %v387_v52 = vld [vmem:[#allocation2 + $0x68] sm:$0x10]  ;;  %v325_v53 = vsel %vm4389_vm4, 0, %v324_v51  ;;  %v348_v56 = vld [vmem:[#allocation2] sm:$0x10]  ;;  %3970 = vmatpush3.bf16.msra.mxu0 %v4044_v12 }
  0x30   :  { %v388_v54 = vsel %vm4395_vm5, 0, %v387_v52  ;;  %326 = vst [vmem:[#allocation2 + $0x68] sm:$0x1] %v325_v53  ;;  %v349_v57 = vsel %vm4395_vm5, 0, %v348_v56  ;;  %v318_v58 = vld [vmem:[#allocation2 + $0x58] sm:$0x1] }
  0x31   :  { %389 = vst [vmem:[#allocation2 + $0x68] sm:$0x10] %v388_v54  ;;  %v381_v59 = vld [vmem:[#allocation2 + $0x58] sm:$0x10]  ;;  %350 = vst [vmem:[#allocation2] sm:$0x10] %v349_v57 }
  0x32   :  { %3960 = vmatmul.mubr.bf16.gmra.mrb[8].mxu0 %v4030_v13  ;;  %v319_v60 = vsel %vm4389_vm4, 0, %v318_v58  ;;  %v382_v61 = vsel %vm4395_vm5, 0, %v381_v59  ;;  %v327_v62 = vld [vmem:[#allocation2 + $0x70] sm:$0x1]  ;;  %v390_v63 = vld [vmem:[#allocation2 + $0x70] sm:$0x10] }
  0x33   :  { %3963 = vmatprep.mubr.bf16.mxu0 %v4031_v14  ;;  %320 = vst [vmem:[#allocation2 + $0x58] sm:$0x1] %v319_v60  ;;  %383 = vst [vmem:[#allocation2 + $0x58] sm:$0x10] %v382_v61  ;;  %v328_v0 = vsel %vm4389_vm4, 0, %v327_v62  ;;  %v391_v1 = vsel %vm4395_vm5, 0, %v390_v63 }
  0x34   :  { %329 = vst [vmem:[#allocation2 + $0x70] sm:$0x1] %v328_v0  ;;  %392 = vst [vmem:[#allocation2 + $0x70] sm:$0x10] %v391_v1  ;;  %v321_v2 = vld [vmem:[#allocation2 + $0x60] sm:$0x1] }
  0x35   :  { %v384_v3 = vld [vmem:[#allocation2 + $0x60] sm:$0x10]  ;;  %v322_v4 = vsel %vm4389_vm4, 0, %v321_v2  ;;  %v336_v6 = vld [vmem:[#allocation2 + $0x88] sm:$0x1]  ;;  %s4298_s16 = smov 32  }
  0x36   :  { %v385_v5 = vsel %vm4395_vm5, 0, %v384_v3  ;;  %323 = vst [vmem:[#allocation2 + $0x60] sm:$0x1] %v322_v4  ;;  %v399_v7 = vld [vmem:[#allocation2 + $0x88] sm:$0x10]  ;;  %v337_v8 = vsel %vm4389_vm4, 0, %v336_v6 }
  0x37   :  { %386 = vst [vmem:[#allocation2 + $0x60] sm:$0x10] %v385_v5  ;;  %v400_v9 = vsel %vm4395_vm5, 0, %v399_v7  ;;  %v285_v10 = vld [vmem:[#allocation2] sm:$0x1]  ;;  %vm2515_vm0 = vcmask 523264  }
  0x38   :  { %338 = vst [vmem:[#allocation2 + $0x88] sm:$0x1] %v337_v8  ;;  %401 = vst [vmem:[#allocation2 + $0x88] sm:$0x10] %v400_v9  ;;  %v286_v11 = vsel %vm4389_vm4, 0, %v285_v10  ;;  %vm2532_vm1 = vcmask 785408  }
  0x39   :  { %287 = vst [vmem:[#allocation2] sm:$0x1] %v286_v11  ;;  %v330_v13 = vld [vmem:[#allocation2 + $0x78] sm:$0x1]  ;;  %v393_v14 = vld [vmem:[#allocation2 + $0x78] sm:$0x10] }
  0x3a   :  { %3964 = vmatmul.mubr.bf16.gmra.mrb[12].mxu0 %v4032_v15  ;;  %v331_v15 = vsel %vm4389_vm4, 0, %v330_v13  ;;  %v394_v17 = vsel %vm4395_vm5, 0, %v393_v14  ;;  %v312_v18 = vld [vmem:[#allocation2 + $0x48] sm:$0x1]  ;;  %v375_v19 = vld [vmem:[#allocation2 + $0x48] sm:$0x10] }
  0x3b   :  { %332 = vst [vmem:[#allocation2 + $0x78] sm:$0x1] %v331_v15  ;;  %395 = vst [vmem:[#allocation2 + $0x78] sm:$0x10] %v394_v17  ;;  %v313_v21 = vsel %vm4389_vm4, 0, %v312_v18  ;;  %v376_v22 = vsel %vm4395_vm5, 0, %v375_v19 }
  0x3c   :  { %314 = vst [vmem:[#allocation2 + $0x48] sm:$0x1] %v313_v21  ;;  %377 = vst [vmem:[#allocation2 + $0x48] sm:$0x10] %v376_v22  ;;  %v339_v23 = vld [vmem:[#allocation2 + $0x90] sm:$0x1] }
  0x3d   :  { %v402_v24 = vld [vmem:[#allocation2 + $0x90] sm:$0x10]  ;;  %v340_v25 = vsel %vm4389_vm4, 0, %v339_v23  ;;  %v333_v27 = vld [vmem:[#allocation2 + $0x80] sm:$0x1] }
  0x3e   :  { %v403_v26 = vsel %vm4395_vm5, 0, %v402_v24  ;;  %341 = vst [vmem:[#allocation2 + $0x90] sm:$0x1] %v340_v25  ;;  %v396_v28 = vld [vmem:[#allocation2 + $0x80] sm:$0x10]  ;;  %v334_v29 = vsel %vm4389_vm4, 0, %v333_v27 }
  0x3f   :  { %404 = vst [vmem:[#allocation2 + $0x90] sm:$0x10] %v403_v26  ;;  %v397_v30 = vsel %vm4395_vm5, 0, %v396_v28  ;;  %335 = vst [vmem:[#allocation2 + $0x80] sm:$0x1] %v334_v29 }
  0x40   :  { %398 = vst [vmem:[#allocation2 + $0x80] sm:$0x10] %v397_v30  ;;  %v652_v31 = vld [vmem:[#allocation2] sm:$0x1f]  ;;  %v378_v35 = vld [vmem:[#allocation2 + $0x50] sm:$0x10] }
  0x41   :  { %v3351_v33 = vcombine.low %v652_v31, %v652_v31  ;;  %v379_v38 = vsel %vm4395_vm5, 0, %v378_v35  ;;  %v315_v41 = vld [vmem:[#allocation2 + $0x50] sm:$0x1]  ;;  %v975_v42 = vld [vmem:[#allocation2] sm:$0x1e]  ;;  %v3352_v46 = vcombine.high %v652_v31, %v652_v31 }
  0x42   :  { %380 = vst [vmem:[#allocation2 + $0x50] sm:$0x10] %v379_v38  ;;  %v316_v43 = vsel %vm4389_vm4, 0, %v315_v41  ;;  %v3383_v49 = vcombine.low %v975_v42, %v975_v42  ;;  %v3384_v52 = vcombine.high %v975_v42, %v975_v42  ;;  %v4486_v55 = vld [vmem:[%s5168_s4] ss:$0 sm:$0xff]  ;;  %s4296_s4 = smov 96  }
  0x43   :  { %v1658_v32 = vld [vmem:[#allocation2 + $0x48] sm:$0x1f]  ;;  %v752_v36 = vshrl.u32 %v3351_v33, 16  ;;  %v755_v37 = vshll.u32 %v3351_v33, 16  ;;  %317 = vst [vmem:[#allocation2 + $0x50] sm:$0x1] %v316_v43 }
  0x44   :  { %v3525_v34 = vcombine.low %v1658_v32, %v1658_v32  ;;  %v1978_v50 = vld [vmem:[#allocation2 + $0x48] sm:$0x1e]  ;;  %v3526_v51 = vcombine.high %v1658_v32, %v1658_v32  ;;  %v761_v58 = vshll.u32 %v3352_v46, 16  ;;  %v4488_v60 = vrot.slane %v3383_v49, 9 }
  0x45   :  { %v754_v44 = vrot.slane %v752_v36, 4  ;;  %v757_v45 = vrot.slane %v755_v37, 5  ;;  %v3557_v56 = vcombine.low %v1978_v50, %v1978_v50  ;;  %v3558_v57 = vcombine.high %v1978_v50, %v1978_v50 }
  0x46   :  { %v1846_v39 = vshrl.u32 %v3525_v34, 16  ;;  %v1849_v40 = vshll.u32 %v3525_v34, 16  ;;  %vm748_vm9 = vsmask.f32 3328  ;;  %v1855_v61 = vshll.u32 %v3526_v51, 16 }
  0x47   :  { %v758_v53 = vor.u32 %v757_v45, %v754_v44  ;;  %vm749_vm10 = vsmask.f32 7440  ;;  %vm586_vm12 = vsmask.f32 4354  ;;  %v4490_v1 = vrot.slane %v3384_v52, 5 }
  0x48   :  { %v1848_v47 = vrot.slane %v1846_v39, 4  ;;  %v1851_v48 = vrot.slane %v1849_v40, 5  ;;  %v4498_v7 = vrot.slane %v3557_v56, 9  ;;  %v4500_v8 = vrot.slane %v3558_v57, 5  ;;  %vm4505_vm14 = vmor %vm748_vm9, %vm749_vm10  ;;  %v594_v57 = vld [vmem:[#allocation2 + $0x18] sm:$0x1f] }
  0x49   :  { %v983_v54 = vld [vmem:[#allocation2 + $0x50] sm:$0x1e]  ;;  %v759_v2 = vrot.slane %v758_v53, 4  ;;  %v763_v9 = vrot.slane %v761_v58, 5  ;;  %v1857_v14 = vrot.slane %v1855_v61, 5  ;;  %v1077_v31 = vsel %vm4494_vm13, %v4488_v60, %v4490_v1  ;;  %vm4544_vm15 = vmand %vm585_vm11, %vm586_vm12 }
  0x4a   :  { %v1852_v59 = vor.u32 %v1851_v48, %v1848_v47  ;;  %v3399_v62 = vcombine.low %v983_v54, %v983_v54  ;;  %v3400_v63 = vcombine.high %v983_v54, %v983_v54  ;;  %v660_v0 = vld [vmem:[#allocation2 + $0x50] sm:$0x1f]  ;;  %v2098_v35 = vsel %vm4494_vm13, %v4498_v7, %v4500_v8 }
  0x4b   :  { %v3367_v3 = vcombine.low %v660_v0, %v660_v0  ;;  %v3368_v4 = vcombine.high %v660_v0, %v660_v0  ;;  %v4524_v32 = vsel %vm4505_vm14, %v759_v2, %v763_v9  ;;  %v588_v2 = vld [vmem:[#allocation2 + $0x8] sm:$0x1f] }
  0x4c   :  { %v1853_v10 = vrot.slane %v1852_v59, 4  ;;  %v4510_v21 = vrot.slane %v3399_v62, 9  ;;  %v4512_v22 = vrot.slane %v3400_v63, 5 }
  0x4d   :  { %v864_v15 = vshrl.u32 %v3367_v3, 16  ;;  %v867_v17 = vshll.u32 %v3367_v3, 16  ;;  %v4514_v23 = vshll.u32 %v3368_v4, 16 }
  0x4e   :  { %v4532_v39 = vsel %vm4505_vm14, %v1853_v10, %v1857_v14  ;;  %v1109_v40 = vsel %vm4494_vm13, %v4510_v21, %v4512_v22 }
  0x4f   :  { %v866_v27 = vrot.slane %v864_v15, 4  ;;  %v869_v28 = vrot.slane %v867_v17, 5  ;;  %v875_v44 = vrot.slane %v4514_v23, 5 }
  0x51   :  { %v870_v36 = vor.u32 %v869_v28, %v866_v27 }
  0x53   :  { %v4539_v49 = vrot.slane %v870_v36, 4 }
  0xf5   :  { %v3953_v5 = vpop.f32.mrb[0].mxu0 }
  0xf6   :  { %v206_v11 = vadd.f32 %v3953_v5, %v4486_v55  ;;  %v197_v12 = vpop.f32.mrb[1].mxu0 }
  0xf7   :  { %v198_v18 = vadd.f32 %v4486_v55, %v197_v12  ;;  %v3954_v19 = vpop.f32.mrb[2].mxu0 }
  0xf8   :  { %v262_v24 = vmax.f32 %v206_v11, 0.0  ;;  %v209_v25 = vadd.f32 %v3954_v19, %v4486_v55  ;;  %v200_v26 = vpop.f32.mrb[3].mxu0  ;;  %v597_v11 = vld [vmem:[#allocation2 + $0x20] sm:$0x1f]  ;;  %v591_v19 = vld [vmem:[#allocation2 + $0x10] sm:$0x1f] }
  0xf9   :  { %v260_v29 = vmax.f32 %v198_v18, 0.0  ;;  %v201_v30 = vadd.f32 %v4486_v55, %v200_v26 }
  0xfa   :  { %v3719_v33 = vpack.c.bf16 %v262_v24, %v262_v24  ;;  %v263_v34 = vmax.f32 %v209_v25, 0.0 }
  0xfb   :  { %v3717_v37 = vpack.c.bf16 %v260_v29, %v260_v29  ;;  %v261_v38 = vmax.f32 %v201_v30, 0.0 }
  0xfc   :  { %v471_v41 = vshrl.u32 %v3719_v33, 16  ;;  %v474_v42 = vshll.u32 %v3719_v33, 16  ;;  %v3720_v43 = vpack.c.bf16 %v263_v34, %v263_v34 }
  0xfd   :  { %v457_v45 = vshrl.u32 %v3717_v37, 16  ;;  %v460_v46 = vshll.u32 %v3717_v37, 16  ;;  %v3718_v47 = vpack.c.bf16 %v261_v38, %v261_v38  ;;  %v3957_v48 = vpop.f32.mrb[4].mxu0 }
  0xfe   :  { %v473_v50 = vrot.slane %v471_v41, 7  ;;  %v478_v51 = vshrl.u32 %v3720_v43, 16  ;;  %v481_v52 = vshll.u32 %v3720_v43, 16  ;;  %v222_v53 = vadd.f32 %v3957_v48, %v4486_v55  ;;  %v213_v54 = vpop.f32.mrb[5].mxu0 }
  0xff   :  { %v459_v58 = vrot.slane %v457_v45, 7  ;;  %v464_v59 = vshrl.u32 %v3718_v47, 16  ;;  %v467_v61 = vshll.u32 %v3718_v47, 16  ;;  %v214_v62 = vadd.f32 %v4486_v55, %v213_v54  ;;  %v3958_v63 = vpop.f32.mrb[6].mxu0 }
 0x100   :  { %v476_v0 = vor.u32 %v474_v42, %v473_v50  ;;  %v480_v3 = vrot.slane %v478_v51, 7  ;;  %v266_v4 = vmax.f32 %v222_v53, 0.0  ;;  %v225_v5 = vadd.f32 %v3958_v63, %v4486_v55  ;;  %v216_v9 = vpop.f32.mrb[7].mxu0  ;;  %v606_v51 = vld [vmem:[#allocation2 + $0x38] sm:$0x1f] }
 0x101   :  { %v462_v10 = vor.u32 %v460_v46, %v459_v58  ;;  %v466_v12 = vrot.slane %v464_v59, 7  ;;  %v264_v14 = vmax.f32 %v214_v62, 0.0  ;;  %v217_v15 = vadd.f32 %v4486_v55, %v216_v9  ;;  %v603_v9 = vld [vmem:[#allocation2 + $0x30] sm:$0x1f] }
 0x102   :  { %v595_v17 = vsel %vm4544_vm15, %v476_v0, %v594_v57  ;;  %v483_v18 = vor.u32 %v481_v52, %v480_v3  ;;  %v3723_v24 = vpack.c.bf16 %v266_v4, %v266_v4  ;;  %v267_v25 = vmax.f32 %v225_v5, 0.0  ;;  %v609_v4 = vld [vmem:[#allocation2 + $0x40] sm:$0x1f] }
 0x103   :  { %596 = vst [vmem:[#allocation2 + $0x18] sm:$0x1f] %v595_v17  ;;  %v589_v26 = vsel %vm4544_vm15, %v462_v10, %v588_v2  ;;  %v469_v27 = vor.u32 %v467_v61, %v466_v12  ;;  %v3721_v28 = vpack.c.bf16 %v264_v14, %v264_v14  ;;  %v265_v29 = vmax.f32 %v217_v15, 0.0  ;;  %v600_v61 = vld [vmem:[#allocation2 + $0x28] sm:$0x1f] }
 0x104   :  { %590 = vst [vmem:[#allocation2 + $0x8] sm:$0x1f] %v589_v26  ;;  %v598_v30 = vsel %vm4544_vm15, %v483_v18, %v597_v11  ;;  %v499_v33 = vshrl.u32 %v3723_v24, 16  ;;  %v502_v34 = vshll.u32 %v3723_v24, 16  ;;  %v3724_v36 = vpack.c.bf16 %v267_v25, %v267_v25 }
 0x105   :  { %599 = vst [vmem:[#allocation2 + $0x20] sm:$0x1f] %v598_v30  ;;  %v592_v37 = vsel %vm4544_vm15, %v469_v27, %v591_v19  ;;  %v485_v38 = vshrl.u32 %v3721_v28, 16  ;;  %v488_v41 = vshll.u32 %v3721_v28, 16  ;;  %v3722_v42 = vpack.c.bf16 %v265_v29, %v265_v29  ;;  %v3961_v43 = vpop.f32.mrb[8].mxu0 }
 0x106   :  { %593 = vst [vmem:[#allocation2 + $0x10] sm:$0x1f] %v592_v37  ;;  %v501_v45 = vrot.slane %v499_v33, 7  ;;  %v506_v46 = vshrl.u32 %v3724_v36, 16  ;;  %v509_v47 = vshll.u32 %v3724_v36, 16  ;;  %v238_v48 = vadd.f32 %v3961_v43, %v4486_v55  ;;  %v229_v50 = vpop.f32.mrb[9].mxu0 }
 0x107   :  { %v487_v52 = vrot.slane %v485_v38, 7  ;;  %v492_v53 = vshrl.u32 %v3722_v42, 16  ;;  %v495_v54 = vshll.u32 %v3722_v42, 16  ;;  %v230_v57 = vadd.f32 %v4486_v55, %v229_v50  ;;  %v3962_v58 = vpop.f32.mrb[10].mxu0 }
 0x108   :  { %v504_v59 = vor.u32 %v502_v34, %v501_v45  ;;  %v508_v62 = vrot.slane %v506_v46, 7  ;;  %v270_v63 = vmax.f32 %v238_v48, 0.0  ;;  %v241_v0 = vadd.f32 %v3962_v58, %v4486_v55  ;;  %v232_v2 = vpop.f32.mrb[11].mxu0 }
 0x109   :  { %v490_v3 = vor.u32 %v488_v41, %v487_v52  ;;  %v494_v5 = vrot.slane %v492_v53, 7  ;;  %v268_v10 = vmax.f32 %v230_v57, 0.0  ;;  %v233_v11 = vadd.f32 %v4486_v55, %v232_v2  ;;  %v612_v41 = vld [vmem:[#allocation2 + $0x58] sm:$0x1f] }
 0x10a   :  { %v607_v12 = vsel %vm4544_vm15, %v504_v59, %v606_v51  ;;  %v511_v14 = vor.u32 %v509_v47, %v508_v62  ;;  %v3727_v15 = vpack.c.bf16 %v270_v63, %v270_v63  ;;  %v1476_v17 = vld [vmem:[#allocation2 + $0x18] sm:$0x1e]  ;;  %v4570_v18 = vsel %vm4505_vm14, %v4539_v49, %v875_v44  ;;  %v618_v49 = vld [vmem:[#allocation2 + $0x68] sm:$0x1f] }
 0x10b   :  { %608 = vst [vmem:[#allocation2 + $0x38] sm:$0x1f] %v607_v12  ;;  %v601_v19 = vsel %vm4544_vm15, %v490_v3, %v600_v61  ;;  %v497_v24 = vor.u32 %v495_v54, %v494_v5  ;;  %v3725_v25 = vpack.c.bf16 %v268_v10, %v268_v10  ;;  %v3467_v26 = vcombine.low %v1476_v17, %v1476_v17  ;;  %v4574_v27 = vld [vmem:[#allocation2 + $0x18] sm:$0x1e] }
 0x10c   :  { %602 = vst [vmem:[#allocation2 + $0x28] sm:$0x1f] %v601_v19  ;;  %v610_v28 = vsel %vm4544_vm15, %v511_v14, %v609_v4  ;;  %v4033_v29 = vld [vmem:[#allocation2 + $0x18] ss:$8 sps:$4 sm:$0xff]   ;;  %v527_v23 = vshrl.u32 %v3727_v15, 16  ;;  %v530_v30 = vshll.u32 %v3727_v15, 16  ;;  %v3468_v33 = vcombine.high %v1476_v17, %v1476_v17 }
 0x10d   :  { %611 = vst [vmem:[#allocation2 + $0x40] sm:$0x1f] %v610_v28  ;;  %v604_v44 = vsel %vm4544_vm15, %v497_v24, %v603_v9  ;;  %v513_v34 = vshrl.u32 %v3725_v25, 16  ;;  %v516_v36 = vshll.u32 %v3725_v25, 16  ;;  %v3545_v37 = vcombine.low %v4574_v27, %v4574_v27  ;;  %2293 = vrot.lane.b32.xlu1 %v4033_v29, %s4296_s4  ;;  %v1477_v42 = vld [vmem:[#allocation2 + $0x20] sm:$0x1e] }
 0x10e   :  { %605 = vst [vmem:[#allocation2 + $0x30] sm:$0x1f] %v604_v44  ;;  %v529_v38 = vrot.slane %v527_v23, 7  ;;  %v3497_v43 = vrot.slane %v3467_v26, 9  ;;  %v1580_v45 = vrot.slane %v3468_v33, 5  ;;  %v271_v46 = vmax.f32 %v241_v0, 0.0 }
 0x10f   :  { %v515_v47 = vrot.slane %v513_v34, 7  ;;  %v3469_v48 = vcombine.low %v1477_v42, %v1477_v42  ;;  %v3470_v50 = vcombine.high %v1477_v42, %v1477_v42  ;;  %v269_v51 = vmax.f32 %v233_v11, 0.0  ;;  %v1971_v52 = vld [vmem:[#allocation2 + $0x10] sm:$0x1e]  ;;  %v3965_v53 = vpop.f32.mrb[12].mxu0 }
 0x110   :  { %v532_v54 = vor.u32 %v530_v30, %v529_v38  ;;  %v4035_v57 = vld [vmem:[#allocation2 + $0x10] ss:$8 sps:$4 sm:$0xff]   ;;  %v1581_v58 = vsel %vm4494_vm13, %v3497_v43, %v1580_v45  ;;  %v3728_v59 = vpack.c.bf16 %v271_v46, %v271_v46  ;;  %v3543_v61 = vcombine.low %v1971_v52, %v1971_v52  ;;  %v245_v62 = vpop.f32.mrb[13].mxu0  ;;  %v1474_v17 = vld [vmem:[#allocation2 + $0x8] sm:$0x1e] }
 0x111   :  { %v518_v63 = vor.u32 %v516_v36, %v515_v47  ;;  %v3498_v2 = vrot.slane %v3469_v48, 9  ;;  %v1584_v3 = vrot.slane %v3470_v50, 5  ;;  %v3726_v4 = vpack.c.bf16 %v269_v51, %v269_v51  ;;  %2411 = vrot.lane.b32.xlu1 %v4035_v57, %s4297_s15  ;;  %v621_v25 = vld [vmem:[#allocation2 + $0x70] sm:$0x1f]  ;;  %v4595_v34 = vpop.f32.mrb[14].mxu0 }
 0x112   :  { %v619_v0 = vsel %vm4544_vm15, %v532_v54, %v618_v49  ;;  %v534_v5 = vshrl.u32 %v3728_v59, 16  ;;  %v537_v9 = vshll.u32 %v3728_v59, 16  ;;  %v3544_v10 = vcombine.high %v1971_v52, %v1971_v52  ;;  %v4045_v29 = vld [vmem:[#allocation2 + $0x8] ss:$8 sps:$4 sm:$0xff]   ;;  %v615_v38 = vld [vmem:[#allocation2 + $0x60] sm:$0x1f] }
 0x113   :  { %620 = vst [vmem:[#allocation2 + $0x68] sm:$0x1f] %v619_v0  ;;  %v613_v11 = vsel %vm4544_vm15, %v518_v63, %v612_v41  ;;  %v1585_v12 = vsel %vm4494_vm13, %v3498_v2, %v1584_v3  ;;  %v520_v14 = vshrl.u32 %v3726_v4, 16  ;;  %v523_v15 = vshll.u32 %v3726_v4, 16  ;;  %v1475_v49 = vld [vmem:[#allocation2 + $0x10] sm:$0x1e] }
 0x114   :  { %614 = vst [vmem:[#allocation2 + $0x58] sm:$0x1f] %v613_v11  ;;  %v3632_v19 = vcombine.low %v1581_v58, %v1585_v12  ;;  %v536_v24 = vrot.slane %v534_v5, 7  ;;  %v3546_v26 = vcombine.high %v4574_v27, %v4574_v27  ;;  %v3575_v28 = vrot.slane %v3543_v61, 9  ;;  %v4600_v43 = vpop.f32.mrb[15].mxu0 }
 0x115   :  { %v522_v23 = vrot.slane %v520_v14, 7  ;;  %v2069_v30 = vrot.slane %v3544_v10, 5  ;;  %v3576_v33 = vrot.slane %v3545_v37, 9  ;;  %v254_v44 = vadd.f32 %v3965_v53, %v4486_v55  ;;  %2291 = vrot.lane.b32.xlu1 %v4045_v29, %s4296_s4  ;;  %v1973_v53 = vld [vmem:[#allocation2 + $0x20] sm:$0x1e] }
 0x116   :  { %2357 = vrot.lane.b32.xlu0 %v3632_v19, %s4298_s16  ;;  %v539_v36 = vor.u32 %v537_v9, %v536_v24  ;;  %v2073_v41 = vrot.slane %v3546_v26, 5  ;;  %v246_v42 = vadd.f32 %v4486_v55, %v245_v62  ;;  %v3463_v27 = vcombine.low %v1474_v17, %v1474_v17  ;;  %v1974_v61 = vld [vmem:[#allocation2 + $0x28] sm:$0x1e]  ;;  %v1975_v26 = vld [vmem:[#allocation2 + $0x30] sm:$0x1e] }
 0x117   :  { %v525_v45 = vor.u32 %v523_v15, %v522_v23  ;;  %v2070_v37 = vsel %vm4494_vm13, %v3575_v28, %v2069_v30  ;;  %v274_v46 = vmax.f32 %v254_v44, 0.0  ;;  %v3464_v47 = vcombine.high %v1474_v17, %v1474_v17  ;;  %v976_v10 = vld [vmem:[#allocation2 + $0x8] sm:$0x1e]  ;;  %v654_v60 = vld [vmem:[#allocation2 + $0x10] sm:$0x1f] }
 0x118   :  { %v622_v48 = vsel %vm4544_vm15, %v539_v36, %v621_v25  ;;  %v2074_v50 = vsel %vm4494_vm13, %v3576_v33, %v2073_v41  ;;  %v272_v51 = vmax.f32 %v246_v42, 0.0  ;;  %v3465_v52 = vcombine.low %v1475_v49, %v1475_v49  ;;  %v630_v28 = vld [vmem:[#allocation2 + $0x88] sm:$0x1f]  ;;  %v1976_v42 = vld [vmem:[#allocation2 + $0x38] sm:$0x1e] }
 0x119   :  { %623 = vst [vmem:[#allocation2 + $0x70] sm:$0x1f] %v622_v48  ;;  %v616_v54 = vsel %vm4544_vm15, %v525_v45, %v615_v38  ;;  %v3655_v57 = vcombine.low %v2070_v37, %v2074_v50  ;;  %v3731_v58 = vpack.c.bf16 %v274_v46, %v274_v46  ;;  %v3466_v59 = vcombine.high %v1475_v49, %v1475_v49  ;;  %v624_v49 = vld [vmem:[#allocation2 + $0x78] sm:$0x1f] }
 0x11a   :  { %617 = vst [vmem:[#allocation2 + $0x60] sm:$0x1f] %v616_v54  ;;  %v3729_v62 = vpack.c.bf16 %v272_v51, %v272_v51  ;;  %v3495_v63 = vrot.slane %v3463_v27, 9  ;;  %v1572_v2 = vrot.slane %v3464_v47, 5  ;;  %v3496_v3 = vrot.slane %v3465_v52, 9 }
 0x11b   :  { %3971 = vmatprep.mubr.msk.bf16.mxu0 %vm276_vm6, %v3655_v57  ;;  %v555_v4 = vshrl.u32 %v3731_v58, 16  ;;  %v558_v0 = vshll.u32 %v3731_v58, 16  ;;  %v1576_v5 = vrot.slane %v3466_v59, 5  ;;  %v3547_v9 = vcombine.low %v1973_v53, %v1973_v53  ;;  %v977_v47 = vld [vmem:[#allocation2 + $0x10] sm:$0x1e] }
 0x11c   :  { %v541_v11 = vshrl.u32 %v3729_v62, 16  ;;  %v544_v12 = vshll.u32 %v3729_v62, 16  ;;  %v1573_v14 = vsel %vm4494_vm13, %v3495_v63, %v1572_v2  ;;  %v3548_v15 = vcombine.high %v1973_v53, %v1973_v53  ;;  %v978_v53 = vld [vmem:[#allocation2 + $0x18] sm:$0x1e]  ;;  %v4058_v59 = vld [vmem:[#allocation2 + $0x20] ss:$8 sps:$4 sm:$0xff]  }
 0x11d   :  { %v557_v17 = vrot.slane %v555_v4, 7  ;;  %v1577_v19 = vsel %vm4494_vm13, %v3496_v3, %v1576_v5  ;;  %v3549_v24 = vcombine.low %v1974_v61, %v1974_v61  ;;  %v3550_v25 = vcombine.high %v1974_v61, %v1974_v61  ;;  %v1977_v4 = vld [vmem:[#allocation2 + $0x40] sm:$0x1e] }
 0x11e   :  { %v543_v29 = vrot.slane %v541_v11, 7  ;;  %v3631_v23 = vcombine.low %v1573_v14, %v1577_v19  ;;  %v3577_v30 = vrot.slane %v3547_v9, 9  ;;  %v2077_v33 = vrot.slane %v3548_v15, 5  ;;  %v4067_v19 = vld [vmem:[#allocation2 + $0x40] ss:$8 sps:$4 sm:$0xff]  }
 0x11f   :  { %v560_v44 = vor.u32 %v558_v0, %v557_v17  ;;  %v3578_v36 = vrot.slane %v3549_v24, 9  ;;  %v2081_v38 = vrot.slane %v3550_v25, 5  ;;  %v3385_v41 = vcombine.low %v976_v10, %v976_v10  ;;  %v653_v0 = vld [vmem:[#allocation2 + $0x8] sm:$0x1f] }
 0x120   :  { %v546_v27 = vor.u32 %v544_v12, %v543_v29  ;;  %2355 = vrot.lane.b32.xlu0 %v3631_v23, %s4298_s16  ;;  %v2078_v45 = vsel %vm4494_vm13, %v3577_v30, %v2077_v33  ;;  %v3386_v37 = vcombine.high %v976_v10, %v976_v10  ;;  %v3551_v46 = vcombine.low %v1975_v26, %v1975_v26 }
 0x121   :  { %v631_v48 = vsel %vm4544_vm15, %v560_v44, %v630_v28  ;;  %v2082_v50 = vsel %vm4494_vm13, %v3578_v36, %v2081_v38  ;;  %v3416_v51 = vrot.slane %v3385_v41, 9  ;;  %v3552_v52 = vcombine.high %v1975_v26, %v1975_v26  ;;  %v655_v36 = vld [vmem:[#allocation2 + $0x18] sm:$0x1f] }
 0x122   :  { %632 = vst [vmem:[#allocation2 + $0x88] sm:$0x1f] %v631_v48  ;;  %v625_v54 = vsel %vm4544_vm15, %v546_v27, %v624_v49  ;;  %v3656_v57 = vcombine.low %v2078_v45, %v2082_v50  ;;  %v1080_v58 = vrot.slane %v3386_v37, 5  ;;  %v3553_v61 = vcombine.low %v1976_v42, %v1976_v42  ;;  %v4073_v37 = vld [vmem:[#allocation2 + $0x30] ss:$8 sps:$4 sm:$0xff]  }
 0x123   :  { %626 = vst [vmem:[#allocation2 + $0x78] sm:$0x1f] %v625_v54  ;;  %v3554_v62 = vcombine.high %v1976_v42, %v1976_v42  ;;  %v3579_v63 = vrot.slane %v3551_v46, 9  ;;  %v2085_v2 = vrot.slane %v3552_v52, 5  ;;  %v3387_v3 = vcombine.low %v977_v47, %v977_v47  ;;  %v1651_v54 = vld [vmem:[#allocation2 + $0x10] sm:$0x1f] }
 0x124   :  { %3972 = vmatmul.mubr.msk.bf16.vlgmr.msra.gmra.mrb[16].mxu0 %vm276_vm6, %v3656_v57  ;;  %v1081_v5 = vsel %vm4494_vm13, %v3416_v51, %v1080_v58  ;;  %2413 = vrot.lane.b32.xlu0 %v4058_v59, %s4297_s15  ;;  %v3580_v9 = vrot.slane %v3553_v61, 9  ;;  %v3388_v10 = vcombine.high %v977_v47, %v977_v47  ;;  %v3389_v11 = vcombine.low %v978_v53, %v978_v53  ;;  %v4105_v56 = vld [vmem:[#allocation2 + $0x58] ss:$8 sps:$4 sm:$0xff]  }
 0x125   :  { %v3607_v12 = vcombine.low %v1077_v31, %v1081_v5  ;;  %v2086_v14 = vsel %vm4494_vm13, %v3579_v63, %v2085_v2  ;;  %v2089_v15 = vrot.slane %v3554_v62, 5  ;;  %v3390_v17 = vcombine.high %v978_v53, %v978_v53 }
 0x126   :  { %v3417_v24 = vrot.slane %v3387_v3, 9  ;;  %v1084_v25 = vrot.slane %v3388_v10, 5  ;;  %v3418_v26 = vrot.slane %v3389_v11, 9  ;;  %v3555_v28 = vcombine.low %v1977_v4, %v1977_v4 }
 0x127   :  { %2235 = vrot.lane.b32.xlu1 %v3607_v12, %s4297_s15  ;;  %v2090_v29 = vsel %vm4494_vm13, %v3580_v9, %v2089_v15  ;;  %v1088_v23 = vrot.slane %v3390_v17, 5  ;;  %v3556_v30 = vcombine.high %v1977_v4, %v1977_v4  ;;  %v3353_v33 = vcombine.low %v653_v0, %v653_v0  ;;  %v1652_v4 = vld [vmem:[#allocation2 + $0x18] sm:$0x1f] }
 0x128   :  { %v3657_v1 = vcombine.low %v2086_v14, %v2090_v29  ;;  %v1085_v31 = vsel %vm4494_vm13, %v3417_v24, %v1084_v25  ;;  %2417 = vrot.lane.b32.xlu0 %v4067_v19, %s4297_s15  ;;  %v3581_v44 = vrot.slane %v3555_v28, 9  ;;  %v3354_v49 = vcombine.high %v653_v0, %v653_v0  ;;  %v4072_v0 = vld [vmem:[#allocation2 + $0x38] ss:$8 sps:$4 sm:$0xff]  }
 0x129   :  { %v1089_v38 = vsel %vm4494_vm13, %v3418_v26, %v1088_v23  ;;  %v2093_v41 = vrot.slane %v3556_v30, 5  ;;  %v766_v42 = vshrl.u32 %v3353_v33, 16  ;;  %v769_v27 = vshll.u32 %v3353_v33, 16  ;;  %v4195_v29 = vld [vmem:[%s5166_s2 + $0x40] sm:$0xff]   ;;  %v4074_v23 = vld [vmem:[#allocation2 + $0x28] ss:$8 sps:$4 sm:$0xff]  }
 0x12a   :  { %3975 = vmatprep.mubr.msk.bf16.mxu0 %vm276_vm6, %v3657_v1  ;;  %v3608_v45 = vcombine.low %v1085_v31, %v1089_v38  ;;  %v775_v46 = vshll.u32 %v3354_v49, 16  ;;  %v3355_v47 = vcombine.low %v654_v60, %v654_v60  ;;  %v3356_v48 = vcombine.high %v654_v60, %v654_v60  ;;  %v979_v31 = vld [vmem:[#allocation2 + $0x20] sm:$0x1e]  ;;  %3851 = vmatprep.subr.bf16.mxu1 %v4195_v29 }
 0x12b   :  { %v2094_v50 = vsel %vm4494_vm13, %v3581_v44, %v2093_v41  ;;  %v768_v51 = vrot.slane %v766_v42, 4  ;;  %v771_v52 = vrot.slane %v769_v27, 5  ;;  %v3357_v53 = vcombine.low %v655_v36, %v655_v36  ;;  %v980_v41 = vld [vmem:[#allocation2 + $0x28] sm:$0x1e] }
 0x12c   :  { %2237 = vrot.lane.b32.xlu1 %v3608_v45, %s4297_s15  ;;  %v3658_v57 = vcombine.low %v2094_v50, %v2098_v35  ;;  %2415 = vrot.lane.b32.xlu0 %v4073_v37, %s4297_s15  ;;  %v777_v58 = vrot.slane %v775_v46, 5  ;;  %v3358_v59 = vcombine.high %v655_v36, %v655_v36  ;;  %v780_v61 = vshrl.u32 %v3355_v47, 16  ;;  %v1480_v50 = vld [vmem:[#allocation2 + $0x38] sm:$0x1e] }
 0x12d   :  { %v772_v62 = vor.u32 %v771_v52, %v768_v51  ;;  %v783_v63 = vshll.u32 %v3355_v47, 16  ;;  %v789_v2 = vshll.u32 %v3356_v48, 16  ;;  %v794_v3 = vshrl.u32 %v3357_v53, 16 }
 0x12e   :  { %3976 = vmatmul.mubr.msk.bf16.gmra.mrb[20].mxu0 %vm276_vm6, %v3658_v57  ;;  %v782_v5 = vrot.slane %v780_v61, 4  ;;  %v797_v9 = vshll.u32 %v3357_v53, 16  ;;  %v803_v10 = vshll.u32 %v3358_v59, 16  ;;  %v3511_v11 = vcombine.low %v1651_v54, %v1651_v54  ;;  %v4196_v57 = vld [vmem:[%s5166_s2] sm:$0xff]  }
 0x12f   :  { %v773_v12 = vrot.slane %v772_v62, 4  ;;  %v785_v7 = vrot.slane %v783_v63, 5  ;;  %v791_v8 = vrot.slane %v789_v2, 5  ;;  %v796_v35 = vrot.slane %v794_v3, 4  ;;  %3852 = vmatpush3.bf16.msra.mxu1 %v4196_v57 }
 0x130   :  { %2297 = vrot.lane.b32.xlu1 %v4072_v0, %s4296_s4  ;;  %v799_v14 = vrot.slane %v797_v9, 5  ;;  %v805_v15 = vrot.slane %v803_v10, 5  ;;  %v3512_v17 = vcombine.high %v1651_v54, %v1651_v54  ;;  %v3513_v19 = vcombine.low %v1652_v4, %v1652_v4  ;;  %v1481_v0 = vld [vmem:[#allocation2 + $0x40] sm:$0x1e] }
 0x131   :  { %v778_v24 = vsel %vm4505_vm14, %v773_v12, %v777_v58  ;;  %v786_v25 = vor.u32 %v785_v7, %v782_v5  ;;  %v3514_v26 = vcombine.high %v1652_v4, %v1652_v4  ;;  %v1748_v28 = vshrl.u32 %v3511_v11, 16  ;;  %v4197_v5 = vld [vmem:[%s5166_s2 + $0x48] sm:$0xff]  }
 0x132   :  { %v3599_v30 = vcombine.low %v4524_v32, %v778_v24  ;;  %v800_v33 = vor.u32 %v799_v14, %v796_v35  ;;  %v1751_v60 = vshll.u32 %v3511_v11, 16  ;;  %v1757_v1 = vshll.u32 %v3512_v17, 16  ;;  %v4198_v7 = vld [vmem:[%s5166_s2 + $0x8] sm:$0xff]   ;;  %3853 = vmatprep.subr.bf16.mxu1 %v4197_v5 }
 0x133   :  { %v787_v44 = vrot.slane %v786_v25, 4  ;;  %v1750_v49 = vrot.slane %v1748_v28, 4  ;;  %v1762_v36 = vshrl.u32 %v3513_v19, 16  ;;  %v1765_v38 = vshll.u32 %v3513_v19, 16  ;;  %3854 = vmatpush3.bf16.msra.mxu1 %v4198_v7 }
 0x134   :  { %2295 = vrot.lane.b32.xlu1 %v4074_v23, %s4296_s4  ;;  %2195 = vrot.lane.b32.xlu0 %v3599_v30, %s4298_s16  ;;  %v801_v42 = vrot.slane %v800_v33, 4  ;;  %v1753_v27 = vrot.slane %v1751_v60, 5  ;;  %v1759_v45 = vrot.slane %v1757_v1, 5  ;;  %v1771_v37 = vshll.u32 %v3514_v26, 16  ;;  %v981_v26 = vld [vmem:[#allocation2 + $0x30] sm:$0x1e] }
 0x135   :  { %v792_v32 = vsel %vm4505_vm14, %v787_v44, %v791_v8  ;;  %v1764_v46 = vrot.slane %v1762_v36, 4  ;;  %v1767_v47 = vrot.slane %v1765_v38, 5  ;;  %v3391_v48 = vcombine.low %v979_v31, %v979_v31  ;;  %v982_v33 = vld [vmem:[#allocation2 + $0x38] sm:$0x1e]  ;;  %v4204_v60 = vld [vmem:[%s5166_s2 + $0x10] sm:$0xff]  }
 0x136   :  { %v806_v51 = vsel %vm4505_vm14, %v801_v42, %v805_v15  ;;  %v1754_v52 = vor.u32 %v1753_v27, %v1750_v49  ;;  %v1773_v53 = vrot.slane %v1771_v37, 5  ;;  %v3392_v54 = vcombine.high %v979_v31, %v979_v31  ;;  %v4203_v15 = vld [vmem:[%s5166_s2 + $0x50] sm:$0xff]   ;;  %v4209_v36 = vld [vmem:[%s5166_s2 + $0x58] sm:$0xff]  }
 0x137   :  { %v3600_v58 = vcombine.low %v792_v32, %v806_v51  ;;  %v1768_v59 = vor.u32 %v1767_v47, %v1764_v46  ;;  %v3393_v61 = vcombine.low %v980_v41, %v980_v41  ;;  %v3394_v62 = vcombine.high %v980_v41, %v980_v41  ;;  %3855 = vmatprep.subr.bf16.mxu1 %v4203_v15  ;;  %v1479_v46 = vld [vmem:[#allocation2 + $0x30] sm:$0x1e] }
 0x138   :  { %v1755_v63 = vrot.slane %v1754_v52, 4  ;;  %v3419_v2 = vrot.slane %v3391_v48, 9  ;;  %v1092_v3 = vrot.slane %v3392_v54, 5  ;;  %v257_v4 = vadd.f32 %v4595_v34, %v4486_v55  ;;  %3856 = vmatpush3.bf16.msra.mxu1 %v4204_v60  ;;  %v4210_v52 = vld [vmem:[%s5166_s2 + $0x18] sm:$0xff]  }
 0x139   :  { %2197 = vrot.lane.b32.xlu1 %v3600_v58, %s4298_s16  ;;  %v1769_v9 = vrot.slane %v1768_v59, 4  ;;  %v3420_v10 = vrot.slane %v3393_v61, 9  ;;  %v1096_v11 = vrot.slane %v3394_v62, 5  ;;  %v3475_v12 = vcombine.low %v1480_v50, %v1480_v50  ;;  %3857 = vmatprep.subr.bf16.mxu1 %v4209_v36 }
 0x13a   :  { %v1760_v8 = vsel %vm4505_vm14, %v1755_v63, %v1759_v45  ;;  %v1093_v34 = vsel %vm4494_vm13, %v3419_v2, %v1092_v3  ;;  %v275_v35 = vmax.f32 %v257_v4, 0.0  ;;  %v3476_v14 = vcombine.high %v1480_v50, %v1480_v50  ;;  %v1478_v45 = vld [vmem:[#allocation2 + $0x28] sm:$0x1e]  ;;  %v1653_v3 = vld [vmem:[#allocation2 + $0x20] sm:$0x1f] }
 0x13b   :  { %v1774_v17 = vsel %vm4505_vm14, %v1769_v9, %v1773_v53  ;;  %v1097_v19 = vsel %vm4494_vm13, %v3420_v10, %v1096_v11  ;;  %v3477_v24 = vcombine.low %v1481_v0, %v1481_v0  ;;  %v3478_v25 = vcombine.high %v1481_v0, %v1481_v0  ;;  %v633_v53 = vld [vmem:[#allocation2 + $0x90] sm:$0x1f]  ;;  %v4211_v4 = vld [vmem:[%s5166_s2 + $0x60] sm:$0xff]   ;;  %v1654_v11 = vld [vmem:[#allocation2 + $0x28] sm:$0x1f] }
 0x13c   :  { %v3647_v28 = vcombine.low %v1760_v8, %v1774_v17  ;;  %v3609_v29 = vcombine.low %v1093_v34, %v1097_v19  ;;  %v3732_v23 = vpack.c.bf16 %v275_v35, %v275_v35  ;;  %v3501_v30 = vrot.slane %v3475_v12, 9  ;;  %v656_v12 = vld [vmem:[#allocation2 + $0x20] sm:$0x1f]  ;;  %3858 = vmatpush3.bf16.msra.mxu1 %v4210_v52 }
 0x13d   :  { %v1596_v1 = vrot.slane %v3476_v14, 5  ;;  %v3502_v31 = vrot.slane %v3477_v24, 9  ;;  %v1600_v44 = vrot.slane %v3478_v25, 5  ;;  %v249_v49 = vadd.f32 %v4486_v55, %v4600_v43  ;;  %v4212_v14 = vld [vmem:[%s5166_s2 + $0x20] sm:$0xff]   ;;  %3859 = vmatprep.subr.bf16.mxu1 %v4211_v4  ;;  %v4213_v25 = vld [vmem:[%s5166_s2 + $0x68] sm:$0xff]  }
 0x13e   :  { %2451 = vrot.lane.b32.xlu0 %v3647_v28, %s4296_s4  ;;  %2239 = vrot.lane.b32.xlu1 %v3609_v29, %s4297_s15  ;;  %v562_v38 = vshrl.u32 %v3732_v23, 16  ;;  %v565_v41 = vshll.u32 %v3732_v23, 16  ;;  %v3395_v42 = vcombine.low %v981_v26, %v981_v26  ;;  %v3396_v27 = vcombine.high %v981_v26, %v981_v26  ;;  %v627_v26 = vld [vmem:[#allocation2 + $0x80] sm:$0x1f] }
 0x13f   :  { %v1597_v37 = vsel %vm4494_vm13, %v3501_v30, %v1596_v1  ;;  %v1601_v55 = vsel %vm4494_vm13, %v3502_v31, %v1600_v44  ;;  %v273_v43 = vmax.f32 %v249_v49, 0.0  ;;  %v3397_v32 = vcombine.low %v982_v33, %v982_v33  ;;  %v4103_v1 = vld [vmem:[#allocation2 + $0x68] ss:$8 sps:$4 sm:$0xff]  }
 0x140   :  { %v564_v47 = vrot.slane %v562_v38, 7  ;;  %v3634_v48 = vcombine.low %v1597_v37, %v1601_v55  ;;  %v3398_v50 = vcombine.high %v982_v33, %v982_v33  ;;  %v3421_v51 = vrot.slane %v3395_v42, 9  ;;  %v657_v42 = vld [vmem:[#allocation2 + $0x28] sm:$0x1f]  ;;  %3860 = vmatpush3.bf16.msra.mxu1 %v4212_v14 }
 0x141   :  { %v3730_v54 = vpack.c.bf16 %v273_v43, %v273_v43  ;;  %v1100_v57 = vrot.slane %v3396_v27, 5  ;;  %v3422_v58 = vrot.slane %v3397_v32, 9  ;;  %v3471_v59 = vcombine.low %v1478_v45, %v1478_v45  ;;  %v4214_v27 = vld [vmem:[%s5166_s2 + $0x28] sm:$0xff]   ;;  %3861 = vmatprep.subr.bf16.mxu1 %v4213_v25  ;;  %v4215_v32 = vld [vmem:[%s5166_s2 + $0x70] sm:$0xff]  }
 0x142   :  { %v567_v61 = vor.u32 %v565_v41, %v564_v47  ;;  %2361 = vrot.lane.b32.xlu0 %v3634_v48, %s4298_s16  ;;  %v1104_v62 = vrot.slane %v3398_v50, 5  ;;  %v3472_v63 = vcombine.high %v1478_v45, %v1478_v45  ;;  %v3473_v2 = vcombine.low %v1479_v46, %v1479_v46 }
 0x143   :  { %v548_v0 = vshrl.u32 %v3730_v54, 16  ;;  %v551_v5 = vshll.u32 %v3730_v54, 16  ;;  %v1101_v9 = vsel %vm4494_vm13, %v3421_v51, %v1100_v57  ;;  %v3474_v10 = vcombine.high %v1479_v46, %v1479_v46  ;;  %v4104_v46 = vld [vmem:[#allocation2 + $0x60] ss:$8 sps:$4 sm:$0xff]  }
 0x144   :  { %v634_v7 = vsel %vm4544_vm15, %v567_v61, %v633_v53  ;;  %v1105_v8 = vsel %vm4494_vm13, %v3422_v58, %v1104_v62  ;;  %v3499_v34 = vrot.slane %v3471_v59, 9  ;;  %v1588_v35 = vrot.slane %v3472_v63, 5  ;;  %v1657_v58 = vld [vmem:[#allocation2 + $0x40] sm:$0x1f]  ;;  %3862 = vmatpush3.bf16.msra.mxu1 %v4214_v27 }
 0x145   :  { %635 = vst [vmem:[#allocation2 + $0x90] sm:$0x1f] %v634_v7  ;;  %v550_v15 = vrot.slane %v548_v0, 7  ;;  %v3610_v17 = vcombine.low %v1101_v9, %v1105_v8  ;;  %v3500_v19 = vrot.slane %v3473_v2, 9  ;;  %v1592_v24 = vrot.slane %v3474_v10, 5  ;;  %v4216_v2 = vld [vmem:[%s5166_s2 + $0x30] sm:$0xff]   ;;  %3863 = vmatprep.subr.bf16.mxu1 %v4215_v32 }
 0x146   :  { %v1589_v28 = vsel %vm4494_vm13, %v3499_v34, %v1588_v35  ;;  %v3515_v29 = vcombine.low %v1653_v3, %v1653_v3  ;;  %v3516_v23 = vcombine.high %v1653_v3, %v1653_v3  ;;  %v3517_v30 = vcombine.low %v1654_v11, %v1654_v11  ;;  %v658_v9 = vld [vmem:[#allocation2 + $0x30] sm:$0x1f]  ;;  %v4218_v10 = vld [vmem:[%s5166_s2 + $0x78] sm:$0xff]  }
 0x147   :  { %v553_v33 = vor.u32 %v551_v5, %v550_v15  ;;  %2241 = vrot.lane.b32.xlu1 %v3610_v17, %s4297_s15  ;;  %v1593_v60 = vsel %vm4494_vm13, %v3500_v19, %v1592_v24  ;;  %v3518_v31 = vcombine.high %v1654_v11, %v1654_v11  ;;  %v3359_v44 = vcombine.low %v656_v12, %v656_v12  ;;  %v659_v17 = vld [vmem:[#allocation2 + $0x38] sm:$0x1f] }
 0x148   :  { %v3633_v49 = vcombine.low %v1589_v28, %v1593_v60  ;;  %v1776_v36 = vshrl.u32 %v3515_v29, 16  ;;  %v1779_v38 = vshll.u32 %v3515_v29, 16  ;;  %v1785_v41 = vshll.u32 %v3516_v23, 16  ;;  %3864 = vmatpush3.bf16.msra.mxu1 %v4216_v2  ;;  %v4220_v28 = vld [vmem:[%s5166_s2 + $0x38] sm:$0xff]  }
 0x149   :  { %v628_v45 = vsel %vm4544_vm15, %v553_v33, %v627_v26  ;;  %v1790_v37 = vshrl.u32 %v3517_v30, 16  ;;  %v1793_v55 = vshll.u32 %v3517_v30, 16  ;;  %v1799_v43 = vshll.u32 %v3518_v31, 16  ;;  %3865 = vmatprep.subr.bf16.mxu1 %v4218_v10 }
 0x14a   :  { %629 = vst [vmem:[#allocation2 + $0x80] sm:$0x1f] %v628_v45  ;;  %2359 = vrot.lane.b32.xlu0 %v3633_v49, %s4298_s16  ;;  %v1778_v47 = vrot.slane %v1776_v36, 4  ;;  %v1781_v48 = vrot.slane %v1779_v38, 5  ;;  %v1787_v50 = vrot.slane %v1785_v41, 5  ;;  %v3360_v51 = vcombine.high %v656_v12, %v656_v12 }
 0x14b   :  { %2301 = vrot.lane.b32.xlu1 %v4103_v1, %s4296_s4  ;;  %v1792_v52 = vrot.slane %v1790_v37, 4  ;;  %v1795_v53 = vrot.slane %v1793_v55, 5  ;;  %v1801_v54 = vrot.slane %v1799_v43, 5  ;;  %v3361_v57 = vcombine.low %v657_v42, %v657_v42 }
 0x14c   :  { %v1782_v59 = vor.u32 %v1781_v48, %v1778_v47  ;;  %v3362_v61 = vcombine.high %v657_v42, %v657_v42  ;;  %v808_v62 = vshrl.u32 %v3359_v44, 16  ;;  %v811_v63 = vshll.u32 %v3359_v44, 16  ;;  %3866 = vmatpush3.bf16.msra.mxu1 %v4220_v28  ;;  %v1655_v47 = vld [vmem:[#allocation2 + $0x30] sm:$0x1f]  ;;  %v4761_v48 = vld [vmem:[%s5166_s2 + $0x80] sm:$0xff]  }
 0x14d   :  { %v1796_v3 = vor.u32 %v1795_v53, %v1792_v52  ;;  %v817_v4 = vshll.u32 %v3360_v51, 16  ;;  %v822_v0 = vshrl.u32 %v3361_v57, 16  ;;  %v825_v5 = vshll.u32 %v3361_v57, 16  ;;  %4007 = vmatprep.subr.bf16.mxu1 %v4761_v48 }
 0x14e   :  { %2419 = vrot.lane.b32.xlu0 %v4104_v46, %s4297_s15  ;;  %v1783_v11 = vrot.slane %v1782_v59, 4  ;;  %v810_v12 = vrot.slane %v808_v62, 4  ;;  %v813_v7 = vrot.slane %v811_v63, 5  ;;  %v831_v8 = vshll.u32 %v3362_v61, 16  ;;  %v1656_v59 = vld [vmem:[#allocation2 + $0x38] sm:$0x1f] }
 0x14f   :  { %2299 = vrot.lane.b32.xlu1 %v4105_v56, %s4296_s4  ;;  %v1797_v34 = vrot.slane %v1796_v3, 4  ;;  %v819_v35 = vrot.slane %v817_v4, 5  ;;  %v824_v14 = vrot.slane %v822_v0, 4  ;;  %v827_v15 = vrot.slane %v825_v5, 5 }
 0x150   :  { %v1788_v19 = vsel %vm4505_vm14, %v1783_v11, %v1787_v50  ;;  %v814_v24 = vor.u32 %v813_v7, %v810_v12  ;;  %v833_v25 = vrot.slane %v831_v8, 5  ;;  %v3523_v26 = vcombine.low %v1657_v58, %v1657_v58 }
 0x151   :  { %v1802_v29 = vsel %vm4505_vm14, %v1797_v34, %v1801_v54  ;;  %v828_v23 = vor.u32 %v827_v15, %v824_v14  ;;  %v3524_v30 = vcombine.high %v1657_v58, %v1657_v58  ;;  %v3363_v33 = vcombine.low %v658_v9, %v658_v9  ;;  %v1484_v15 = vld [vmem:[#allocation2 + $0x68] sm:$0x1e] }
 0x152   :  { %v3648_v60 = vcombine.low %v1788_v19, %v1802_v29  ;;  %v815_v1 = vrot.slane %v814_v24, 4  ;;  %v1832_v31 = vshrl.u32 %v3523_v26, 16  ;;  %v1835_v44 = vshll.u32 %v3523_v26, 16 }
 0x153   :  { %v829_v49 = vrot.slane %v828_v23, 4  ;;  %v1841_v36 = vshll.u32 %v3524_v30, 16  ;;  %v3364_v38 = vcombine.high %v658_v9, %v658_v9  ;;  %v3365_v41 = vcombine.low %v659_v17, %v659_v17  ;;  %v984_v9 = vld [vmem:[#allocation2 + $0x58] sm:$0x1e]  ;;  %v1485_v30 = vld [vmem:[#allocation2 + $0x70] sm:$0x1e] }
 0x154   :  { %2453 = vrot.lane.b32.xlu0 %v3648_v60, %s4296_s4  ;;  %v820_v42 = vsel %vm4505_vm14, %v815_v1, %v819_v35  ;;  %v1834_v27 = vrot.slane %v1832_v31, 4  ;;  %v1837_v45 = vrot.slane %v1835_v44, 5  ;;  %v3366_v37 = vcombine.high %v659_v17, %v659_v17 }
 0x155   :  { %v834_v55 = vsel %vm4505_vm14, %v829_v49, %v833_v25  ;;  %v1843_v43 = vrot.slane %v1841_v36, 5  ;;  %v836_v32 = vshrl.u32 %v3363_v33, 16  ;;  %v839_v46 = vshll.u32 %v3363_v33, 16 }
 0x156   :  { %v3601_v50 = vcombine.low %v820_v42, %v834_v55  ;;  %v1838_v51 = vor.u32 %v1837_v45, %v1834_v27  ;;  %v845_v56 = vshll.u32 %v3364_v38, 16  ;;  %v850_v52 = vshrl.u32 %v3365_v41, 16  ;;  %v985_v38 = vld [vmem:[#allocation2 + $0x60] sm:$0x1e] }
 0x157   :  { %v838_v53 = vrot.slane %v836_v32, 4  ;;  %v841_v54 = vrot.slane %v839_v46, 5  ;;  %v853_v57 = vshll.u32 %v3365_v41, 16  ;;  %v859_v58 = vshll.u32 %v3366_v37, 16 }
 0x158   :  { %2199 = vrot.lane.b32.xlu1 %v3601_v50, %s4298_s16  ;;  %v1839_v61 = vrot.slane %v1838_v51, 4  ;;  %v847_v62 = vrot.slane %v845_v56, 5  ;;  %v852_v63 = vrot.slane %v850_v52, 4  ;;  %v3519_v2 = vcombine.low %v1655_v47, %v1655_v47  ;;  %v986_v51 = vld [vmem:[#allocation2 + $0x68] sm:$0x1e] }
 0x159   :  { %v842_v3 = vor.u32 %v841_v54, %v838_v53  ;;  %v855_v4 = vrot.slane %v853_v57, 5  ;;  %v861_v0 = vrot.slane %v859_v58, 5  ;;  %v3520_v5 = vcombine.high %v1655_v47, %v1655_v47  ;;  %v1482_v58 = vld [vmem:[#allocation2 + $0x58] sm:$0x1e] }
 0x15a   :  { %v1844_v10 = vsel %vm4505_vm14, %v1839_v61, %v1843_v43  ;;  %v3521_v11 = vcombine.low %v1656_v59, %v1656_v59  ;;  %v3522_v12 = vcombine.high %v1656_v59, %v1656_v59  ;;  %v1804_v7 = vshrl.u32 %v3519_v2, 16 }
 0x15b   :  { %v3650_v8 = vcombine.low %v1844_v10, %v4532_v39  ;;  %v843_v34 = vrot.slane %v842_v3, 4  ;;  %v856_v35 = vor.u32 %v855_v4, %v852_v63  ;;  %v1807_v14 = vshll.u32 %v3519_v2, 16 }
 0x15c   :  { %v1806_v17 = vrot.slane %v1804_v7, 4  ;;  %v1813_v19 = vshll.u32 %v3520_v5, 16  ;;  %v1818_v24 = vshrl.u32 %v3521_v11, 16  ;;  %v1821_v25 = vshll.u32 %v3521_v11, 16  ;;  %v1483_v5 = vld [vmem:[#allocation2 + $0x60] sm:$0x1e] }
 0x15d   :  { %2457 = vrot.lane.b32.xlu0 %v3650_v8, %s4296_s4  ;;  %v848_v26 = vsel %vm4505_vm14, %v843_v34, %v847_v62  ;;  %v857_v28 = vrot.slane %v856_v35, 4  ;;  %v1809_v29 = vrot.slane %v1807_v14, 5  ;;  %v1827_v23 = vshll.u32 %v3522_v12, 16  ;;  %v661_v7 = vld [vmem:[#allocation2 + $0x58] sm:$0x1f] }
 0x15e   :  { %v1815_v33 = vrot.slane %v1813_v19, 5  ;;  %v1820_v60 = vrot.slane %v1818_v24, 4  ;;  %v1823_v39 = vrot.slane %v1821_v25, 5  ;;  %v3401_v1 = vcombine.low %v984_v9, %v984_v9  ;;  %v662_v34 = vld [vmem:[#allocation2 + $0x60] sm:$0x1f] }
 0x15f   :  { %v862_v31 = vsel %vm4505_vm14, %v857_v28, %v861_v0  ;;  %v1810_v44 = vor.u32 %v1809_v29, %v1806_v17  ;;  %v1829_v49 = vrot.slane %v1827_v23, 5  ;;  %v3402_v36 = vcombine.high %v984_v9, %v984_v9  ;;  %v663_v28 = vld [vmem:[#allocation2 + $0x68] sm:$0x1f] }
 0x160   :  { %v3602_v41 = vcombine.low %v848_v26, %v862_v31  ;;  %v1824_v42 = vor.u32 %v1823_v39, %v1820_v60  ;;  %v3424_v27 = vrot.slane %v3401_v1, 9  ;;  %v3483_v45 = vcombine.low %v1484_v15, %v1484_v15 }
 0x161   :  { %v1811_v37 = vrot.slane %v1810_v44, 4  ;;  %v1112_v55 = vrot.slane %v3402_v36, 5  ;;  %v3484_v43 = vcombine.high %v1484_v15, %v1484_v15  ;;  %v3485_v32 = vcombine.low %v1485_v30, %v1485_v30 }
 0x162   :  { %2201 = vrot.lane.b32.xlu1 %v3602_v41, %s4298_s16  ;;  %v1825_v46 = vrot.slane %v1824_v42, 4  ;;  %v3486_v47 = vcombine.high %v1485_v30, %v1485_v30  ;;  %v3505_v50 = vrot.slane %v3483_v45, 9  ;;  %v3403_v56 = vcombine.low %v985_v38, %v985_v38  ;;  %v1659_v41 = vld [vmem:[#allocation2 + $0x60] sm:$0x1f] }
 0x163   :  { %v1816_v52 = vsel %vm4505_vm14, %v1811_v37, %v1815_v33  ;;  %v1113_v53 = vsel %vm4494_vm13, %v3424_v27, %v1112_v55  ;;  %v1612_v54 = vrot.slane %v3484_v43, 5  ;;  %v3506_v57 = vrot.slane %v3485_v32, 9 }
 0x164   :  { %v1830_v59 = vsel %vm4505_vm14, %v1825_v46, %v1829_v49  ;;  %v3611_v61 = vcombine.low %v1109_v40, %v1113_v53  ;;  %v1616_v62 = vrot.slane %v3486_v47, 5  ;;  %v3404_v63 = vcombine.high %v985_v38, %v985_v38 }
 0x165   :  { %v3649_v2 = vcombine.low %v1816_v52, %v1830_v59  ;;  %v1613_v3 = vsel %vm4494_vm13, %v3505_v50, %v1612_v54  ;;  %v3405_v4 = vcombine.low %v986_v51, %v986_v51  ;;  %v3406_v0 = vcombine.high %v986_v51, %v986_v51 }
 0x166   :  { %2243 = vrot.lane.b32.xlu1 %v3611_v61, %s4297_s15  ;;  %v1617_v9 = vsel %vm4494_vm13, %v3506_v57, %v1616_v62  ;;  %v3425_v10 = vrot.slane %v3403_v56, 9  ;;  %v1116_v11 = vrot.slane %v3404_v63, 5  ;;  %v3479_v12 = vcombine.low %v1482_v58, %v1482_v58  ;;  %v1660_v56 = vld [vmem:[#allocation2 + $0x68] sm:$0x1f]  ;;  %v4146_v61 = vld [vmem:[#allocation2 + $0x70] ss:$8 sps:$4 sm:$0xff]  }
 0x167   :  { %2455 = vrot.lane.b32.xlu0 %v3649_v2, %s4296_s4  ;;  %v3636_v21 = vcombine.low %v1613_v3, %v1617_v9  ;;  %v3426_v22 = vrot.slane %v3405_v4, 9  ;;  %v1120_v40 = vrot.slane %v3406_v0, 5  ;;  %v3480_v8 = vcombine.high %v1482_v58, %v1482_v58 }
 0x168   :  { %v1117_v35 = vsel %vm4494_vm13, %v3425_v10, %v1116_v11  ;;  %v3481_v14 = vcombine.low %v1483_v5, %v1483_v5  ;;  %v3482_v15 = vcombine.high %v1483_v5, %v1483_v5  ;;  %v3503_v17 = vrot.slane %v3479_v12, 9 }
 0x169   :  { %v1121_v19 = vsel %vm4494_vm13, %v3426_v22, %v1120_v40  ;;  %v1604_v24 = vrot.slane %v3480_v8, 5  ;;  %v3369_v25 = vcombine.low %v661_v7, %v661_v7  ;;  %v3370_v26 = vcombine.high %v661_v7, %v661_v7  ;;  %v987_v7 = vld [vmem:[#allocation2 + $0x70] sm:$0x1e] }
 0x16a   :  { %v3612_v29 = vcombine.low %v1117_v35, %v1121_v19  ;;  %v3504_v23 = vrot.slane %v3481_v14, 9  ;;  %v1608_v30 = vrot.slane %v3482_v15, 5  ;;  %v3371_v33 = vcombine.low %v662_v34, %v662_v34  ;;  %v4148_v35 = vld [vmem:[#allocation2 + $0x80] ss:$8 sps:$4 sm:$0xff]  }
 0x16b   :  { %2365 = vrot.lane.b32.xlu0 %v3636_v21, %s4298_s16  ;;  %v1605_v60 = vsel %vm4494_vm13, %v3503_v17, %v1604_v24  ;;  %v878_v39 = vshrl.u32 %v3369_v25, 16  ;;  %v881_v1 = vshll.u32 %v3369_v25, 16  ;;  %v887_v31 = vshll.u32 %v3370_v26, 16 }
 0x16c   :  { %2245 = vrot.lane.b32.xlu1 %v3612_v29, %s4297_s15  ;;  %v1609_v44 = vsel %vm4494_vm13, %v3504_v23, %v1608_v30  ;;  %v3372_v49 = vcombine.high %v662_v34, %v662_v34  ;;  %v3373_v36 = vcombine.low %v663_v28, %v663_v28  ;;  %v3374_v38 = vcombine.high %v663_v28, %v663_v28  ;;  %v988_v34 = vld [vmem:[#allocation2 + $0x78] sm:$0x1e] }
 0x16d   :  { %v3635_v42 = vcombine.low %v1605_v60, %v1609_v44  ;;  %v880_v27 = vrot.slane %v878_v39, 4  ;;  %v883_v45 = vrot.slane %v881_v1, 5  ;;  %v889_v37 = vrot.slane %v887_v31, 5  ;;  %v4147_v60 = vld [vmem:[#allocation2 + $0x78] ss:$8 sps:$4 sm:$0xff]  }
 0x16e   :  { %v892_v55 = vshrl.u32 %v3371_v33, 16  ;;  %v895_v43 = vshll.u32 %v3371_v33, 16  ;;  %v901_v32 = vshll.u32 %v3372_v49, 16  ;;  %v906_v46 = vshrl.u32 %v3373_v36, 16  ;;  %v1486_v33 = vld [vmem:[#allocation2 + $0x78] sm:$0x1e] }
 0x16f   :  { %2363 = vrot.lane.b32.xlu0 %v3635_v42, %s4298_s16  ;;  %v884_v47 = vor.u32 %v883_v45, %v880_v27  ;;  %v909_v50 = vshll.u32 %v3373_v36, 16  ;;  %v915_v51 = vshll.u32 %v3374_v38, 16  ;;  %v3527_v52 = vcombine.low %v1659_v41, %v1659_v41  ;;  %v1487_v49 = vld [vmem:[#allocation2 + $0x80] sm:$0x1e] }
 0x170   :  { %v894_v53 = vrot.slane %v892_v55, 4  ;;  %v897_v54 = vrot.slane %v895_v43, 5  ;;  %v903_v57 = vrot.slane %v901_v32, 5  ;;  %v908_v58 = vrot.slane %v906_v46, 4  ;;  %v664_v43 = vld [vmem:[#allocation2 + $0x70] sm:$0x1f] }
 0x171   :  { %v885_v59 = vrot.slane %v884_v47, 4  ;;  %v911_v62 = vrot.slane %v909_v50, 5  ;;  %v917_v63 = vrot.slane %v915_v51, 5  ;;  %v3528_v2 = vcombine.high %v1659_v41, %v1659_v41 }
 0x172   :  { %v898_v3 = vor.u32 %v897_v54, %v894_v53  ;;  %v3529_v4 = vcombine.low %v1660_v56, %v1660_v56  ;;  %v3530_v0 = vcombine.high %v1660_v56, %v1660_v56  ;;  %v1860_v5 = vshrl.u32 %v3527_v52, 16  ;;  %v665_v54 = vld [vmem:[#allocation2 + $0x78] sm:$0x1f] }
 0x173   :  { %v890_v9 = vsel %vm4505_vm14, %v885_v59, %v889_v37  ;;  %2421 = vrot.lane.b32.xlu0 %v4146_v61, %s4297_s15  ;;  %v912_v10 = vor.u32 %v911_v62, %v908_v58  ;;  %v1863_v11 = vshll.u32 %v3527_v52, 16  ;;  %v1869_v12 = vshll.u32 %v3528_v2, 16  ;;  %v1661_v62 = vld [vmem:[#allocation2 + $0x70] sm:$0x1f] }
 0x174   :  { %v3603_v21 = vcombine.low %v4570_v18, %v890_v9  ;;  %v899_v22 = vrot.slane %v898_v3, 4  ;;  %v1862_v40 = vrot.slane %v1860_v5, 4  ;;  %v1874_v8 = vshrl.u32 %v3529_v4, 16 }
 0x175   :  { %v913_v14 = vrot.slane %v912_v10, 4  ;;  %v1865_v15 = vrot.slane %v1863_v11, 5  ;;  %v1871_v17 = vrot.slane %v1869_v12, 5  ;;  %v1877_v19 = vshll.u32 %v3529_v4, 16  ;;  %v1662_v11 = vld [vmem:[#allocation2 + $0x78] sm:$0x1f] }
 0x176   :  { %2203 = vrot.lane.b32.xlu1 %v3603_v21, %s4298_s16  ;;  %v904_v24 = vsel %vm4505_vm14, %v899_v22, %v903_v57  ;;  %v1876_v25 = vrot.slane %v1874_v8, 4  ;;  %v1883_v26 = vshll.u32 %v3530_v0, 16  ;;  %v3407_v28 = vcombine.low %v987_v7, %v987_v7 }
 0x177   :  { %2423 = vrot.lane.b32.xlu0 %v4148_v35, %s4297_s15  ;;  %v918_v18 = vsel %vm4505_vm14, %v913_v14, %v917_v63  ;;  %v1866_v29 = vor.u32 %v1865_v15, %v1862_v40  ;;  %v1879_v23 = vrot.slane %v1877_v19, 5  ;;  %v3408_v30 = vcombine.high %v987_v7, %v987_v7 }
 0x178   :  { %v3604_v39 = vcombine.low %v904_v24, %v918_v18  ;;  %v1885_v1 = vrot.slane %v1883_v26, 5  ;;  %v3409_v31 = vcombine.low %v988_v34, %v988_v34  ;;  %v3410_v44 = vcombine.high %v988_v34, %v988_v34 }
 0x179   :  { %v1867_v36 = vrot.slane %v1866_v29, 4  ;;  %v1880_v38 = vor.u32 %v1879_v23, %v1876_v25  ;;  %v3427_v41 = vrot.slane %v3407_v28, 9  ;;  %v1124_v42 = vrot.slane %v3408_v30, 5 }
 0x17a   :  { %2303 = vrot.lane.b32.xlu1 %v4147_v60, %s4296_s4  ;;  %v3428_v27 = vrot.slane %v3409_v31, 9  ;;  %v1128_v45 = vrot.slane %v3410_v44, 5  ;;  %v3487_v37 = vcombine.low %v1486_v33, %v1486_v33  ;;  %v3488_v55 = vcombine.high %v1486_v33, %v1486_v33  ;;  %v989_v33 = vld [vmem:[#allocation2 + $0x80] sm:$0x1e] }
 0x17b   :  { %v1872_v32 = vsel %vm4505_vm14, %v1867_v36, %v1871_v17  ;;  %v1881_v46 = vrot.slane %v1880_v38, 4  ;;  %v1125_v47 = vsel %vm4494_vm13, %v3427_v41, %v1124_v42  ;;  %v3489_v50 = vcombine.low %v1487_v49, %v1487_v49  ;;  %v990_v41 = vld [vmem:[#allocation2 + $0x88] sm:$0x1e] }
 0x17c   :  { %v1129_v51 = vsel %vm4494_vm13, %v3428_v27, %v1128_v45  ;;  %v3490_v56 = vcombine.high %v1487_v49, %v1487_v49  ;;  %v3507_v52 = vrot.slane %v3487_v37, 9  ;;  %v1620_v53 = vrot.slane %v3488_v55, 5  ;;  %v1488_v55 = vld [vmem:[#allocation2 + $0x88] sm:$0x1e] }
 0x17d   :  { %v1886_v57 = vsel %vm4505_vm14, %v1881_v46, %v1885_v1  ;;  %v3613_v58 = vcombine.low %v1125_v47, %v1129_v51  ;;  %v3508_v59 = vrot.slane %v3489_v50, 9  ;;  %v3375_v61 = vcombine.low %v664_v43, %v664_v43 }
 0x17e   :  { %2205 = vrot.lane.b32.xlu1 %v3604_v39, %s4298_s16  ;;  %v3651_v63 = vcombine.low %v1872_v32, %v1886_v57  ;;  %v1621_v2 = vsel %vm4494_vm13, %v3507_v52, %v1620_v53  ;;  %v1624_v3 = vrot.slane %v3490_v56, 5  ;;  %v3376_v4 = vcombine.high %v664_v43, %v664_v43  ;;  %v1489_v53 = vld [vmem:[#allocation2 + $0x90] sm:$0x1e] }
 0x17f   :  { %v3377_v0 = vcombine.low %v665_v54, %v665_v54  ;;  %v3378_v5 = vcombine.high %v665_v54, %v665_v54  ;;  %v920_v9 = vshrl.u32 %v3375_v61, 16  ;;  %v923_v10 = vshll.u32 %v3375_v61, 16  ;;  %v4833_v61 = vpop.permute.xlu1 %2293 }
 0x180   :  { %2459 = vrot.lane.b32.xlu0 %v3651_v63, %s4296_s4  ;;  %v1625_v12 = vsel %vm4494_vm13, %v3508_v59, %v1624_v3  ;;  %v929_v7 = vshll.u32 %v3376_v4, 16  ;;  %v3531_v21 = vcombine.low %v1661_v62, %v1661_v62  ;;  %v3532_v22 = vcombine.high %v1661_v62, %v1661_v62 }
 0x181   :  { %v3637_v40 = vcombine.low %v1621_v2, %v1625_v12  ;;  %v922_v8 = vrot.slane %v920_v9, 4  ;;  %v925_v34 = vrot.slane %v923_v10, 5  ;;  %v934_v35 = vshrl.u32 %v3377_v0, 16  ;;  %v666_v10 = vld [vmem:[#allocation2 + $0x80] sm:$0x1f] }
 0x182   :  { %2247 = vrot.lane.b32.xlu1 %v3613_v58, %s4297_s15  ;;  %v931_v14 = vrot.slane %v929_v7, 5  ;;  %v937_v15 = vshll.u32 %v3377_v0, 16  ;;  %v943_v17 = vshll.u32 %v3378_v5, 16  ;;  %v3533_v19 = vcombine.low %v1662_v11, %v1662_v11 }
 0x183   :  { %v926_v24 = vor.u32 %v925_v34, %v922_v8  ;;  %v936_v25 = vrot.slane %v934_v35, 4  ;;  %v3534_v26 = vcombine.high %v1662_v11, %v1662_v11  ;;  %v1888_v28 = vshrl.u32 %v3531_v21, 16  ;;  %v667_v11 = vld [vmem:[#allocation2 + $0x88] sm:$0x1f]  ;;  %v1663_v8 = vld [vmem:[#allocation2 + $0x80] sm:$0x1f] }
 0x184   :  { %2367 = vrot.lane.b32.xlu0 %v3637_v40, %s4298_s16  ;;  %v939_v18 = vrot.slane %v937_v15, 5  ;;  %v945_v29 = vrot.slane %v943_v17, 5  ;;  %v1891_v23 = vshll.u32 %v3531_v21, 16  ;;  %v1897_v30 = vshll.u32 %v3532_v22, 16 }
 0x185   :  { %v927_v60 = vrot.slane %v926_v24, 4  ;;  %v1890_v39 = vrot.slane %v1888_v28, 4  ;;  %v1902_v1 = vshrl.u32 %v3533_v19, 16  ;;  %v1905_v31 = vshll.u32 %v3533_v19, 16 }
 0x186   :  { %v940_v44 = vor.u32 %v939_v18, %v936_v25  ;;  %v1893_v49 = vrot.slane %v1891_v23, 5  ;;  %v1899_v36 = vrot.slane %v1897_v30, 5  ;;  %v1911_v38 = vshll.u32 %v3534_v26, 16  ;;  %v1664_v18 = vld [vmem:[#allocation2 + $0x88] sm:$0x1f]  ;;  %v4849_v30 = vpop.permute.xlu1 %2411 }
 0x187   :  { %v932_v42 = vsel %vm4505_vm14, %v927_v60, %v931_v14  ;;  %v1904_v27 = vrot.slane %v1902_v1, 4  ;;  %v1907_v45 = vrot.slane %v1905_v31, 5  ;;  %v3411_v37 = vcombine.low %v989_v33, %v989_v33 }
 0x188   :  { %v941_v43 = vrot.slane %v940_v44, 4  ;;  %v1894_v32 = vor.u32 %v1893_v49, %v1890_v39  ;;  %v1913_v46 = vrot.slane %v1911_v38, 5  ;;  %v3412_v47 = vcombine.high %v989_v33, %v989_v33  ;;  %v4839_v12 = vpop.permute.xlu0 %2357 }
 0x189   :  { %v1908_v50 = vor.u32 %v1907_v45, %v1904_v27  ;;  %v3413_v51 = vcombine.low %v990_v41, %v990_v41  ;;  %v3414_v56 = vcombine.high %v990_v41, %v990_v41  ;;  %v3429_v52 = vrot.slane %v3411_v37, 9 }
 0x18a   :  { %v946_v54 = vsel %vm4505_vm14, %v941_v43, %v945_v29  ;;  %v1895_v57 = vrot.slane %v1894_v32, 4  ;;  %v1132_v58 = vrot.slane %v3412_v47, 5  ;;  %v3491_v59 = vcombine.low %v1488_v55, %v1488_v55 }
 0x18b   :  { %v3605_v62 = vcombine.low %v932_v42, %v946_v54  ;;  %v1909_v63 = vrot.slane %v1908_v50, 4  ;;  %v3430_v2 = vrot.slane %v3413_v51, 9  ;;  %v1136_v3 = vrot.slane %v3414_v56, 5  ;;  %v342_v56 = vld [vmem:[#allocation2 + $0x98] sm:$0x1] }
 0x18c   :  { %v1900_v4 = vsel %vm4505_vm14, %v1895_v57, %v1899_v36  ;;  %v1133_v0 = vsel %vm4494_vm13, %v3429_v52, %v1132_v58  ;;  %v3492_v5 = vcombine.high %v1488_v55, %v1488_v55  ;;  %v3493_v9 = vcombine.low %v1489_v53, %v1489_v53  ;;  %v405_v58 = vld [vmem:[#allocation2 + $0x98] sm:$0x10] }
 0x18d   :  { %2207 = vrot.lane.b32.xlu1 %v3605_v62, %s4298_s16  ;;  %v1914_v7 = vsel %vm4505_vm14, %v1909_v63, %v1913_v46  ;;  %v1137_v21 = vsel %vm4494_vm13, %v3430_v2, %v1136_v3  ;;  %v3494_v22 = vcombine.high %v1489_v53, %v1489_v53  ;;  %v3509_v40 = vrot.slane %v3491_v59, 9  ;;  %v4857_v59 = vpop.permute.xlu1 %2291  ;;  %v1665_v3 = vld [vmem:[#allocation2 + $0x90] sm:$0x1f] }
 0x18e   :  { %v3652_v34 = vcombine.low %v1900_v4, %v1914_v7  ;;  %v3614_v35 = vcombine.low %v1133_v0, %v1137_v21  ;;  %v1628_v14 = vrot.slane %v3492_v5, 5  ;;  %v3510_v15 = vrot.slane %v3493_v9, 9 }
 0x18f   :  { %v1632_v17 = vrot.slane %v3494_v22, 5  ;;  %v3379_v19 = vcombine.low %v666_v10, %v666_v10  ;;  %v3380_v24 = vcombine.high %v666_v10, %v666_v10  ;;  %v3381_v25 = vcombine.low %v667_v11, %v667_v11 }
 0x190   :  { %2461 = vrot.lane.b32.xlu0 %v3652_v34, %s4296_s4  ;;  %v1629_v26 = vsel %vm4494_vm13, %v3509_v40, %v1628_v14  ;;  %v3382_v28 = vcombine.high %v667_v11, %v667_v11  ;;  %v3535_v29 = vcombine.low %v1663_v8, %v1663_v8  ;;  %v3536_v23 = vcombine.high %v1663_v8, %v1663_v8 }
 0x191   :  { %2249 = vrot.lane.b32.xlu1 %v3614_v35, %s4297_s15  ;;  %v1633_v33 = vsel %vm4494_vm13, %v3510_v15, %v1632_v17  ;;  %v948_v60 = vshrl.u32 %v3379_v19, 16  ;;  %v951_v39 = vshll.u32 %v3379_v19, 16  ;;  %v957_v1 = vshll.u32 %v3380_v24, 16 }
 0x192   :  { %v3638_v31 = vcombine.low %v1629_v26, %v1633_v33  ;;  %v962_v44 = vshrl.u32 %v3381_v25, 16  ;;  %v965_v49 = vshll.u32 %v3381_v25, 16  ;;  %v971_v36 = vshll.u32 %v3382_v28, 16  ;;  %v4854_v38 = vpop.permute.xlu0 %2355  ;;  %v1155_v26 = vld [vmem:[#allocation2 + $0x10] sm:$0x1f] }
 0x193   :  { %v950_v41 = vrot.slane %v948_v60, 4  ;;  %v953_v42 = vrot.slane %v951_v39, 5  ;;  %v959_v27 = vrot.slane %v957_v1, 5  ;;  %v3537_v45 = vcombine.low %v1664_v18, %v1664_v18  ;;  %v4189_v60 = vld [vmem:[#allocation2 + $0x88] ss:$8 sps:$4 sm:$0xff]  }
 0x194   :  { %2369 = vrot.lane.b32.xlu0 %v3638_v31, %s4298_s16  ;;  %v964_v37 = vrot.slane %v962_v44, 4  ;;  %v967_v55 = vrot.slane %v965_v49, 5  ;;  %v973_v43 = vrot.slane %v971_v36, 5  ;;  %v3538_v32 = vcombine.high %v1664_v18, %v1664_v18  ;;  %v1154_v1 = vld [vmem:[#allocation2 + $0x8] sm:$0x1f] }
 0x195   :  { %v954_v46 = vor.u32 %v953_v42, %v950_v41  ;;  %v1916_v47 = vshrl.u32 %v3535_v29, 16  ;;  %v1919_v50 = vshll.u32 %v3535_v29, 16  ;;  %v1925_v51 = vshll.u32 %v3536_v23, 16 }
 0x196   :  { %v968_v52 = vor.u32 %v967_v55, %v964_v37  ;;  %v1930_v53 = vshrl.u32 %v3537_v45, 16  ;;  %v1933_v54 = vshll.u32 %v3537_v45, 16  ;;  %v1939_v57 = vshll.u32 %v3538_v32, 16  ;;  %v4859_v10 = vpop.permute.xlu0 %2413 }
 0x197   :  { %v955_v62 = vrot.slane %v954_v46, 4  ;;  %v1918_v63 = vrot.slane %v1916_v47, 4  ;;  %v1921_v2 = vrot.slane %v1919_v50, 5  ;;  %v1927_v0 = vrot.slane %v1925_v51, 5 }
 0x198   :  { %v969_v4 = vrot.slane %v968_v52, 4  ;;  %v1932_v5 = vrot.slane %v1930_v53, 4  ;;  %v1935_v9 = vrot.slane %v1933_v54, 5  ;;  %v343_v21 = vsel %vm4389_vm4, 0, %v342_v56  ;;  %v1157_v53 = vld [vmem:[#allocation2 + $0x20] sm:$0x1f] }
 0x199   :  { %v960_v11 = vsel %vm4505_vm14, %v955_v62, %v959_v27  ;;  %v1922_v7 = vor.u32 %v1921_v2, %v1918_v63  ;;  %v406_v22 = vsel %vm4395_vm5, 0, %v405_v58  ;;  %v1941_v34 = vrot.slane %v1939_v57, 5  ;;  %344 = vst [vmem:[#allocation2 + $0x98] sm:$0x1] %v343_v21  ;;  %v4869_v25 = vpop.permute.xlu1 %2235 }
 0x19a   :  { %v974_v40 = vsel %vm4505_vm14, %v969_v4, %v973_v43  ;;  %v1936_v8 = vor.u32 %v1935_v9, %v1932_v5  ;;  %407 = vst [vmem:[#allocation2 + $0x98] sm:$0x10] %v406_v22  ;;  %v3539_v35 = vcombine.low %v1665_v3, %v1665_v3  ;;  %v3540_v20 = vcombine.high %v1665_v3, %v1665_v3  ;;  %v4876_v23 = vpop.permute.xlu0 %2417  ;;  %v1156_v5 = vld [vmem:[#allocation2 + $0x18] sm:$0x1f] }
 0x19b   :  { %v3606_v14 = vcombine.low %v960_v11, %v974_v40  ;;  %v1923_v15 = vrot.slane %v1922_v7, 4  ;;  %v3433_v39 = vcombine.low %v1155_v26, %v1155_v26  ;;  %v3431_v32 = vcombine.low %v1154_v1, %v1154_v1 }
 0x19c   :  { %v1937_v17 = vrot.slane %v1936_v8, 4  ;;  %v1944_v19 = vshrl.u32 %v3539_v35, 16  ;;  %v1947_v24 = vshll.u32 %v3539_v35, 16  ;;  %v1953_v49 = vshll.u32 %v3540_v20, 16 }
 0x19d   :  { %2209 = vrot.lane.b32.xlu1 %v3606_v14, %s4298_s16  ;;  %v1928_v16 = vsel %vm4505_vm14, %v1923_v15, %v1927_v0  ;;  %v1265_v45 = vshrl.u32 %v3433_v39, 16  ;;  %v3434_v51 = vcombine.high %v1155_v26, %v1155_v26  ;;  %v1268_v57 = vshll.u32 %v3433_v39, 16 }
 0x19e   :  { %v1942_v28 = vsel %vm4505_vm14, %v1937_v17, %v1941_v34  ;;  %v1946_v18 = vrot.slane %v1944_v19, 4  ;;  %v1949_v29 = vrot.slane %v1947_v24, 5  ;;  %v4880_v42 = vpop.permute.xlu1 %2237  ;;  %v4882_v46 = vpop.permute.xlu0 %2415  ;;  %v1955_v50 = vrot.slane %v1953_v49, 5 }
 0x19f   :  { %v3653_v33 = vcombine.low %v1928_v16, %v1942_v28  ;;  %v1267_v54 = vrot.slane %v1265_v45, 4  ;;  %v3432_v58 = vcombine.high %v1154_v1, %v1154_v1  ;;  %v1251_v2 = vshrl.u32 %v3431_v32, 16 }
 0x1a0   :  { %v1950_v44 = vor.u32 %v1949_v29, %v1946_v18  ;;  %v4190_v27 = vld [vmem:[#allocation2 + $0x90] ss:$8 sps:$4 sm:$0xff]   ;;  %v1254_v3 = vshll.u32 %v3431_v32, 16  ;;  %v3437_v9 = vcombine.low %v1157_v53, %v1157_v53  ;;  %v1270_v11 = vrot.slane %v1268_v57, 5 }
 0x1a1   :  { %2463 = vrot.lane.b32.xlu0 %v3653_v33, %s4296_s4  ;;  %2305 = vrot.lane.b32.xlu1 %v4189_v60, %s4296_s4  ;;  %v1666_v31 = vld [vmem:[#allocation2 + $0x98] sm:$0x1f]  ;;  %v1274_v7 = vshll.u32 %v3434_v51, 16  ;;  %v1253_v22 = vrot.slane %v1251_v2, 4  ;;  %v1260_v8 = vshll.u32 %v3432_v58, 16  ;;  %v3435_v15 = vcombine.low %v1156_v5, %v1156_v5 }
 0x1a2   :  { %v3541_v36 = vcombine.low %v1666_v31, %v1666_v31  ;;  %v3542_v41 = vcombine.high %v1666_v31, %v1666_v31  ;;  %v1951_v47 = vrot.slane %v1950_v44, 4  ;;  %v4885_v4 = vpop.permute.xlu1 %2297  ;;  %v1256_v40 = vrot.slane %v1254_v3, 5  ;;  %v4217_v33 = vld [vmem:[#allocation2] ss:$8 sps:$4 sm:$0xff]   ;;  %v1159_v2 = vld [vmem:[#allocation2 + $0x30] sm:$0x1f] }
 0x1a3   :  { %v1271_v35 = vor.u32 %v1270_v11, %v1267_v54  ;;  %v1276_v16 = vrot.slane %v1274_v7, 5  ;;  %v1293_v20 = vshrl.u32 %v3437_v9, 16  ;;  %v1296_v26 = vshll.u32 %v3437_v9, 16  ;;  %v1161_v3 = vld [vmem:[#allocation2 + $0x40] sm:$0x1f] }
 0x1a4   :  { %v1958_v37 = vshrl.u32 %v3541_v36, 16  ;;  %v1961_v55 = vshll.u32 %v3541_v36, 16  ;;  %v1967_v43 = vshll.u32 %v3542_v41, 16  ;;  %v1956_v0 = vsel %vm4505_vm14, %v1951_v47, %v1955_v50 }
 0x1a5   :  { %2425 = vrot.lane.b32.xlu0 %v4190_v27, %s4297_s15  ;;  %v1257_v17 = vor.u32 %v1256_v40, %v1253_v22  ;;  %v1272_v24 = vrot.slane %v1271_v35, 4  ;;  %v1262_v18 = vrot.slane %v1260_v8, 5  ;;  %v1279_v39 = vshrl.u32 %v3435_v15, 16 }
 0x1a6   :  { %v1960_v56 = vrot.slane %v1958_v37, 4  ;;  %v1963_v52 = vrot.slane %v1961_v55, 5  ;;  %v1969_v63 = vrot.slane %v1967_v43, 5  ;;  %v2196_v34 = vpop.permute.xlu0 %2195  ;;  %v4891_v29 = vpop.permute.xlu1 %2295  ;;  %v1282_v1 = vshll.u32 %v3435_v15, 16 }
 0x1a7   :  { %v1258_v28 = vrot.slane %v1257_v17, 4  ;;  %v1277_v60 = vsel %vm4505_vm14, %v1272_v24, %v1276_v16  ;;  %v2493_v44 = vsel %vm276_vm6, %v4217_v33, %v2196_v34  ;;  %v1295_v41 = vrot.slane %v1293_v20, 4  ;;  %v4219_v34 = vld [vmem:[#allocation2 + $0x10] ss:$8 sps:$4 sm:$0xff]  }
 0x1a8   :  { %v1964_v62 = vor.u32 %v1963_v52, %v1960_v56  ;;  %v1298_v27 = vrot.slane %v1296_v26, 5  ;;  %v2517_v37 = vsel %vm2515_vm0, %v2493_v44, %v4869_v25  ;;  %v1281_v55 = vrot.slane %v1279_v39, 4 }
 0x1a9   :  { %v1263_v31 = vsel %vm4505_vm14, %v1258_v28, %v1262_v18  ;;  %v1284_v43 = vrot.slane %v1282_v1, 5  ;;  %v3438_v32 = vcombine.high %v1157_v53, %v1157_v53  ;;  %v3436_v56 = vcombine.high %v1156_v5, %v1156_v5  ;;  %v4270_v53 = vld [vmem:[%s5166_s2 + $0x88] sm:$0xff]  }
 0x1aa   :  { %v1965_v21 = vrot.slane %v1964_v62, 4  ;;  %v3623_v36 = vcombine.low %v1263_v31, %v1277_v60  ;;  %v1299_v52 = vor.u32 %v1298_v27, %v1295_v41  ;;  %v2534_v54 = vsel %vm2532_vm1, %v2517_v37, %v4857_v59  ;;  %v1158_v5 = vld [vmem:[#allocation2 + $0x28] sm:$0x1f] }
 0x1ab   :  { %v2198_v47 = vpop.permute.xlu1 %2197  ;;  %v1285_v57 = vor.u32 %v1284_v43, %v1281_v55  ;;  %v1302_v25 = vshll.u32 %v3438_v32, 16  ;;  %v3445_v22 = vcombine.low %v1161_v3, %v1161_v3  ;;  %v3439_v40 = vcombine.low %v1158_v5, %v1158_v5 }
 0x1ac   :  { %v1970_v14 = vsel %vm4505_vm14, %v1965_v21, %v1969_v63  ;;  %v2559_v45 = vsel %vm276_vm6, %v3623_v36, %v4854_v38  ;;  %v1300_v58 = vrot.slane %v1299_v52, 4  ;;  %v1160_v63 = vld [vmem:[#allocation2 + $0x38] sm:$0x1f]  ;;  %v2496_v16 = vsel %vm276_vm6, %v4219_v34, %v2198_v47  ;;  %v4229_v34 = vld [vmem:[#allocation2 + $0x20] ss:$8 sps:$4 sm:$0xff]  }
 0x1ad   :  { %v3654_v19 = vcombine.low %v1956_v0, %v1970_v14  ;;  %v2582_v50 = vsel %vm2515_vm0, %v2559_v45, %v4849_v30  ;;  %v1288_v30 = vshll.u32 %v3436_v56, 16  ;;  %v1286_v59 = vrot.slane %v1285_v57, 4 }
 0x1ae   :  { %v1304_v0 = vrot.slane %v1302_v25, 5  ;;  %v3443_v11 = vcombine.low %v1160_v63, %v1160_v63  ;;  %v1349_v26 = vshrl.u32 %v3445_v22, 16  ;;  %v1352_v28 = vshll.u32 %v3445_v22, 16 }
 0x1af   :  { %2465 = vrot.lane.b32.xlu0 %v3654_v19, %s4296_s4  ;;  %v1290_v7 = vrot.slane %v1288_v30, 5  ;;  %v1307_v33 = vshrl.u32 %v3439_v40, 16  ;;  %v1310_v60 = vshll.u32 %v3439_v40, 16  ;;  %v3444_v1 = vcombine.high %v1160_v63, %v1160_v63 }
 0x1b0   :  { %v2452_v49 = vpop.permute.xlu0 %2451  ;;  %v4914_v62 = vpop.permute.xlu1 %2239  ;;  %v1305_v21 = vsel %vm4505_vm14, %v1300_v58, %v1304_v0  ;;  %v1335_v17 = vshrl.u32 %v3443_v11, 16  ;;  %v1338_v20 = vshll.u32 %v3443_v11, 16  ;;  %v3446_v31 = vcombine.high %v1161_v3, %v1161_v3 }
 0x1b1   :  { %v2598_v51 = vsel %vm2532_vm1, %v2582_v50, %v2452_v49  ;;  %v1291_v8 = vsel %vm4505_vm14, %v1286_v59, %v1290_v7  ;;  %v2519_v41 = vsel %vm2515_vm0, %v2496_v16, %v4880_v42  ;;  %v1351_v45 = vrot.slane %v1349_v26, 4 }
 0x1b2   :  { %2828 = vmatprep.mubr.bf16.mxu1 %v2598_v51  ;;  %v3624_v15 = vcombine.low %v1291_v8, %v1305_v21  ;;  %v1337_v44 = vrot.slane %v1335_v17, 4  ;;  %v1340_v27 = vrot.slane %v1338_v20, 5  ;;  %v1354_v37 = vrot.slane %v1352_v28, 5  ;;  %v1162_v21 = vld [vmem:[#allocation2 + $0x58] sm:$0x1f] }
 0x1b3   :  { %2829 = vmatmul.mubr.bf16.vlgmr.msra.gmra.mrb[0].mxu1 %v2534_v54  ;;  %v3440_v55 = vcombine.high %v1158_v5, %v1158_v5  ;;  %v3442_v32 = vcombine.high %v1159_v2, %v1159_v2  ;;  %v1309_v47 = vrot.slane %v1307_v33, 4  ;;  %v1312_v50 = vrot.slane %v1310_v60, 5  ;;  %v1163_v17 = vld [vmem:[#allocation2 + $0x60] sm:$0x1f] }
 0x1b4   :  { %v4908_v38 = vpop.permute.xlu0 %2361  ;;  %4009 = vmatpush3.bf16.msra.mxu1 %v4761_v48  ;;  %v3441_v48 = vcombine.low %v1159_v2, %v1159_v2  ;;  %v2562_v18 = vsel %vm276_vm6, %v3624_v15, %v4839_v12  ;;  %v2537_v51 = vsel %vm2532_vm1, %v2519_v41, %v4833_v61  ;;  %v1341_v52 = vor.u32 %v1340_v27, %v1337_v44  ;;  %v4230_v27 = vld [vmem:[#allocation2 + $0x30] ss:$8 sps:$4 sm:$0xff]  }
 0x1b5   :  { %4008 = vmatprep.subr.bf16.mxu1 %v4270_v53  ;;  %v2584_v39 = vsel %vm2515_vm0, %v2562_v18, %v4859_v10  ;;  %v1344_v42 = vshll.u32 %v3444_v1, 16  ;;  %v1358_v54 = vshll.u32 %v3446_v31, 16  ;;  %v1355_v57 = vor.u32 %v1354_v37, %v1351_v45 }
 0x1b6   :  { %v1321_v19 = vshrl.u32 %v3441_v48, 16  ;;  %v1324_v24 = vshll.u32 %v3441_v48, 16  ;;  %v1313_v25 = vor.u32 %v1312_v50, %v1309_v47  ;;  %v1330_v30 = vshll.u32 %v3442_v32, 16 }
 0x1b7   :  { %v1342_v2 = vrot.slane %v1341_v52, 4  ;;  %v1346_v3 = vrot.slane %v1344_v42, 5  ;;  %v1360_v59 = vrot.slane %v1358_v54, 5  ;;  %v1356_v0 = vrot.slane %v1355_v57, 4 }
 0x1b8   :  { %4010 = vmatpush3.bf16.msra.mxu1 %v4270_v53  ;;  %v1323_v49 = vrot.slane %v1321_v19, 4  ;;  %v1326_v36 = vrot.slane %v1324_v24, 5  ;;  %v1316_v53 = vshll.u32 %v3440_v55, 16  ;;  %v1314_v5 = vrot.slane %v1313_v25, 4 }
 0x1b9   :  { %v4922_v35 = vpop.permute.xlu1 %2241  ;;  %v1332_v48 = vrot.slane %v1330_v30, 5  ;;  %v1347_v22 = vsel %vm4505_vm14, %v1342_v2, %v1346_v3  ;;  %v1361_v40 = vsel %vm4505_vm14, %v1356_v0, %v1360_v59  ;;  %v3447_v16 = vcombine.low %v1162_v21, %v1162_v21 }
 0x1ba   :  { %v1327_v56 = vor.u32 %v1326_v36, %v1323_v49  ;;  %v1318_v11 = vrot.slane %v1316_v53, 5  ;;  %v3626_v20 = vcombine.low %v1347_v22, %v1361_v40  ;;  %v3449_v28 = vcombine.low %v1163_v17, %v1163_v17  ;;  %v4239_v22 = vld [vmem:[#allocation2 + $0x50] ss:$8 sps:$4 sm:$0xff]  }
 0x1bb   :  { %v1363_v31 = vshrl.u32 %v3447_v16, 16  ;;  %v1366_v49 = vshll.u32 %v3447_v16, 16  ;;  %v3448_v37 = vcombine.high %v1162_v21, %v1162_v21  ;;  %v3450_v55 = vcombine.high %v1163_v17, %v1163_v17 }
 0x1bc   :  { %v4916_v9 = vpop.permute.xlu0 %2359  ;;  %v1328_v63 = vrot.slane %v1327_v56, 4  ;;  %v1319_v8 = vsel %vm4505_vm14, %v1314_v5, %v1318_v11  ;;  %v2568_v18 = vsel %vm276_vm6, %v3626_v20, %v4908_v38  ;;  %v1377_v36 = vshrl.u32 %v3449_v28, 16  ;;  %v1165_v56 = vld [vmem:[#allocation2 + $0x70] sm:$0x1f] }
 0x1bd   :  { %v4933_v43 = vpop.permute.xlu1 %2301  ;;  %v1380_v41 = vshll.u32 %v3449_v28, 16  ;;  %v2588_v38 = vsel %vm2515_vm0, %v2568_v18, %v4876_v23  ;;  %v1368_v32 = vrot.slane %v1366_v49, 5  ;;  %v1164_v23 = vld [vmem:[#allocation2 + $0x68] sm:$0x1f]  ;;  %v1372_v42 = vshll.u32 %v3448_v37, 16 }
 0x1be   :  { %v1333_v61 = vsel %vm4505_vm14, %v1328_v63, %v1332_v48  ;;  %v1379_v47 = vrot.slane %v1377_v36, 4  ;;  %v1386_v57 = vshll.u32 %v3450_v55, 16  ;;  %v3451_v53 = vcombine.low %v1164_v23, %v1164_v23  ;;  %v1166_v36 = vld [vmem:[#allocation2 + $0x78] sm:$0x1f] }
 0x1bf   :  { %v3625_v19 = vcombine.low %v1319_v8, %v1333_v61  ;;  %v1382_v50 = vrot.slane %v1380_v41, 5  ;;  %v3453_v30 = vcombine.low %v1165_v56, %v1165_v56  ;;  %v1374_v3 = vrot.slane %v1372_v42, 5  ;;  %v1167_v41 = vld [vmem:[#allocation2 + $0x80] sm:$0x1f] }
 0x1c0   :  { %v4924_v14 = vpop.permute.xlu0 %2419  ;;  %v1388_v0 = vrot.slane %v1386_v57, 5  ;;  %v1391_v5 = vshrl.u32 %v3451_v53, 16  ;;  %v1394_v11 = vshll.u32 %v3451_v53, 16  ;;  %v3452_v8 = vcombine.high %v1164_v23, %v1164_v23 }
 0x1c1   :  { %v4938_v58 = vpop.permute.xlu1 %2299  ;;  %v2565_v26 = vsel %vm276_vm6, %v3625_v19, %v4916_v9  ;;  %v1383_v54 = vor.u32 %v1382_v50, %v1379_v47  ;;  %v1405_v48 = vshrl.u32 %v3453_v30, 16  ;;  %v1408_v61 = vshll.u32 %v3453_v30, 16 }
 0x1c2   :  { %v2586_v1 = vsel %vm2515_vm0, %v2565_v26, %v4882_v46  ;;  %v1396_v19 = vrot.slane %v1394_v11, 5  ;;  %v1400_v28 = vshll.u32 %v3452_v8, 16  ;;  %v3455_v37 = vcombine.low %v1166_v36, %v1166_v36 }
 0x1c3   :  { %v1384_v59 = vrot.slane %v1383_v54, 4  ;;  %v1410_v16 = vrot.slane %v1408_v61, 5  ;;  %v3457_v55 = vcombine.low %v1167_v41, %v1167_v41  ;;  %v3458_v53 = vcombine.high %v1167_v41, %v1167_v41 }
 0x1c5   :  { %v1433_v23 = vshrl.u32 %v3457_v55, 16  ;;  %v1442_v8 = vshll.u32 %v3458_v53, 16 }
 0x1c6   :  { %v2454_v12 = vpop.permute.xlu0 %2453 }
 0x1c7   :  { %v2601_v10 = vsel %vm2532_vm1, %v2584_v39, %v2454_v12  ;;  %v1365_v12 = vrot.slane %v1363_v31, 4 }
 0x1c8   :  { %2836 = vmatprep.mubr.bf16.mxu1 %v2601_v10 }
 0x1c9   :  { %2837 = vmatmul.mubr.bf16.gmra.mrb[4].mxu1 %v2537_v51  ;;  %v1369_v52 = vor.u32 %v1368_v32, %v1365_v12 }
 0x1ca   :  { %v2200_v7 = vpop.permute.xlu1 %2199 }
 0x1cb   :  { %v2499_v24 = vsel %vm276_vm6, %v4229_v34, %v2200_v7  ;;  %v1370_v2 = vrot.slane %v1369_v52, 4  ;;  %v3454_v34 = vcombine.high %v1165_v56, %v1165_v56  ;;  %v1436_v56 = vshll.u32 %v3457_v55, 16  ;;  %v4240_v52 = vld [vmem:[#allocation2 + $0x60] ss:$8 sps:$4 sm:$0xff]  }
 0x1cc   :  { %v2521_v33 = vsel %vm2515_vm0, %v2499_v24, %v4914_v62  ;;  %v1407_v24 = vrot.slane %v1405_v48, 4 }
 0x1cd   :  { %v2540_v9 = vsel %vm2532_vm1, %v2521_v33, %v4891_v29  ;;  %v1375_v7 = vsel %vm4505_vm14, %v1370_v2, %v1374_v3  ;;  %v1435_v3 = vrot.slane %v1433_v23, 4 }
 0x1cf   :  { %v2458_v15 = vpop.permute.xlu0 %2457 }
 0x1d0   :  { %v2607_v62 = vsel %vm2532_vm1, %v2588_v38, %v2458_v15  ;;  %v1393_v15 = vrot.slane %v1391_v5, 4  ;;  %v1402_v38 = vrot.slane %v1400_v28, 5  ;;  %v1444_v28 = vrot.slane %v1442_v8, 5 }
 0x1d2   :  { %v1397_v33 = vor.u32 %v1396_v19, %v1393_v15  ;;  %v1168_v15 = vld [vmem:[#allocation2 + $0x88] sm:$0x1f] }
 0x1d4   :  { %v2202_v60 = vpop.permute.xlu1 %2201 }
 0x1d5   :  { %v2502_v45 = vsel %vm276_vm6, %v4230_v27, %v2202_v60  ;;  %v1411_v60 = vor.u32 %v1410_v16, %v1407_v24  ;;  %v3459_v16 = vcombine.low %v1168_v15, %v1168_v15 }
 0x1d6   :  { %v2523_v29 = vsel %vm2515_vm0, %v2502_v45, %v4922_v35 }
 0x1d7   :  { %v2543_v25 = vsel %vm2532_vm1, %v2523_v29, %v4885_v4  ;;  %v1389_v4 = vsel %vm4505_vm14, %v1384_v59, %v1388_v0  ;;  %v1419_v29 = vshrl.u32 %v3455_v37, 16  ;;  %v1438_v59 = vrot.slane %v1436_v56, 5 }
 0x1d8   :  { %v2244_v10 = vpop.permute.xlu1 %2243  ;;  %v3627_v17 = vcombine.low %v1375_v7, %v1389_v4 }
 0x1d9   :  { %v2456_v39 = vpop.permute.xlu0 %2455  ;;  %v1421_v30 = vrot.slane %v1419_v29, 4 }
 0x1da   :  { %v2604_v44 = vsel %vm2532_vm1, %v2586_v1, %v2456_v39  ;;  %v1414_v39 = vshll.u32 %v3454_v34, 16 }
 0x1db   :  { %2844 = vmatprep.mubr.bf16.mxu1 %v2604_v44 }
 0x1dc   :  { %2845 = vmatmul.mubr.bf16.gmra.mrb[8].mxu1 %v2540_v9  ;;  %v1398_v9 = vrot.slane %v1397_v33, 4  ;;  %v1416_v45 = vrot.slane %v1414_v39, 5  ;;  %v1447_v33 = vshrl.u32 %v3459_v16, 16 }
 0x1dd   :  { %v4964_v46 = vpop.permute.xlu0 %2365  ;;  %2852 = vmatprep.mubr.bf16.mxu1 %v2607_v62  ;;  %v1412_v62 = vrot.slane %v1411_v60, 4  ;;  %v1450_v60 = vshll.u32 %v3459_v16, 16  ;;  %v4250_v16 = vld [vmem:[#allocation2 + $0x80] ss:$8 sps:$4 sm:$0xff]  }
 0x1de   :  { %v4970_v63 = vpop.permute.xlu1 %2245 }
 0x1df   :  { %v1417_v47 = vsel %vm4505_vm14, %v1412_v62, %v1416_v45  ;;  %v1449_v62 = vrot.slane %v1447_v33, 4 }
 0x1e1   :  { %v2364_v51 = vpop.permute.xlu0 %2363 }
 0x1e2   :  { %v2571_v26 = vsel %vm276_vm6, %v3627_v17, %v2364_v51  ;;  %v1422_v51 = vshll.u32 %v3455_v37, 16  ;;  %v1452_v37 = vrot.slane %v1450_v60, 5 }
 0x1e3   :  { %v2590_v31 = vsel %vm2515_vm0, %v2571_v26, %v4924_v14 }
 0x1e4   :  { %2853 = vmatmul.mubr.bf16.gmra.mrb[12].mxu1 %v2543_v25  ;;  %v3456_v25 = vcombine.high %v1166_v36, %v1166_v36  ;;  %v1424_v2 = vrot.slane %v1422_v51, 5  ;;  %v1453_v51 = vor.u32 %v1452_v37, %v1449_v62 }
 0x1e5   :  { %v4972_v35 = vpop.permute.xlu0 %2421 }
 0x1e6   :  { %v1428_v61 = vshll.u32 %v3456_v25, 16  ;;  %v1980_v25 = vld [vmem:[#allocation2 + $0x68] sm:$0x1e] }
 0x1e8   :  { %v2204_v21 = vpop.permute.xlu1 %2203  ;;  %v1430_v24 = vrot.slane %v1428_v61, 5 }
 0x1e9   :  { %v4978_v40 = vpop.permute.xlu0 %2423  ;;  %v2505_v20 = vsel %vm276_vm6, %v4239_v22, %v2204_v21  ;;  %v1425_v21 = vor.u32 %v1424_v2, %v1421_v30  ;;  %v1439_v22 = vor.u32 %v1438_v59, %v1435_v3  ;;  %v3561_v59 = vcombine.low %v1980_v25, %v1980_v25 }
 0x1ea   :  { %v2525_v18 = vsel %vm2515_vm0, %v2505_v20, %v2244_v10 }
 0x1eb   :  { %v2546_v49 = vsel %vm2532_vm1, %v2525_v18, %v4938_v58  ;;  %v1403_v58 = vsel %vm4505_vm14, %v1398_v9, %v1402_v38  ;;  %v1426_v20 = vrot.slane %v1425_v21, 4  ;;  %v1440_v26 = vrot.slane %v1439_v22, 4 }
 0x1ec   :  { %v4988_v27 = vpop.permute.xlu1 %2303  ;;  %v3628_v54 = vcombine.low %v1403_v58, %v1417_v47  ;;  %v3460_v9 = vcombine.high %v1168_v15, %v1168_v15  ;;  %v3584_v8 = vrot.slane %v3561_v59, 9  ;;  %v1981_v15 = vld [vmem:[#allocation2 + $0x70] sm:$0x1e] }
 0x1ed   :  { %v1431_v39 = vsel %vm4505_vm14, %v1426_v20, %v1430_v24  ;;  %v1983_v24 = vld [vmem:[#allocation2 + $0x80] sm:$0x1e]  ;;  %v3563_v20 = vcombine.low %v1981_v15, %v1981_v15  ;;  %v3564_v60 = vcombine.high %v1981_v15, %v1981_v15 }
 0x1ee   :  { %v2574_v0 = vsel %vm276_vm6, %v3628_v54, %v4964_v46  ;;  %v3567_v13 = vcombine.low %v1983_v24, %v1983_v24 }
 0x1ef   :  { %v2592_v48 = vsel %vm2515_vm0, %v2574_v0, %v4972_v35  ;;  %v3562_v0 = vcombine.high %v1980_v25, %v1980_v25 }
 0x1f0   :  { %v2206_v10 = vpop.permute.xlu1 %2205 }
 0x1f1   :  { %v2508_v57 = vsel %vm276_vm6, %v4240_v52, %v2206_v10  ;;  %v1456_v10 = vshll.u32 %v3460_v9, 16 }
 0x1f2   :  { %v2460_v1 = vpop.permute.xlu0 %2459  ;;  %v2527_v5 = vsel %vm2515_vm0, %v2508_v57, %v4970_v63  ;;  %v1169_v63 = vld [vmem:[#allocation2 + $0x90] sm:$0x1f]  ;;  %v1979_v57 = vld [vmem:[#allocation2 + $0x60] sm:$0x1e] }
 0x1f3   :  { %v2610_v44 = vsel %vm2532_vm1, %v2590_v31, %v2460_v1  ;;  %v2549_v46 = vsel %vm2532_vm1, %v2527_v5, %v4933_v43  ;;  %v3461_v18 = vcombine.low %v1169_v63, %v1169_v63  ;;  %v1445_v1 = vsel %vm4505_vm14, %v1440_v26, %v1444_v28  ;;  %v1984_v26 = vld [vmem:[#allocation2 + $0x88] sm:$0x1e] }
 0x1f4   :  { %2860 = vmatprep.mubr.bf16.mxu1 %v2610_v44  ;;  %v2248_v35 = vpop.permute.xlu1 %2247  ;;  %v3629_v41 = vcombine.low %v1431_v39, %v1445_v1  ;;  %v3462_v38 = vcombine.high %v1169_v63, %v1169_v63  ;;  %v3560_v3 = vcombine.high %v1979_v57, %v1979_v57  ;;  %v1454_v5 = vrot.slane %v1453_v51, 4 }
 0x1f5   :  { %2861 = vmatmul.mubr.bf16.gmra.mrb[16].mxu1 %v2546_v49  ;;  %v1461_v43 = vshrl.u32 %v3461_v18, 16  ;;  %v1464_v31 = vshll.u32 %v3461_v18, 16  ;;  %v4245_v49 = vld [vmem:[#allocation2 + $0x70] ss:$8 sps:$4 sm:$0xff]   ;;  %v3570_v9 = vcombine.high %v1984_v26, %v1984_v26 }
 0x1f6   :  { %v2368_v42 = vpop.permute.xlu0 %2367  ;;  %v1470_v56 = vshll.u32 %v3462_v38, 16  ;;  %v2101_v22 = vrot.slane %v3560_v3, 5 }
 0x1f7   :  { %v4990_v12 = vpop.f32.mrb[16].mxu0  ;;  %v1463_v55 = vrot.slane %v1461_v43, 4  ;;  %v1466_v58 = vrot.slane %v1464_v31, 5  ;;  %v2577_v47 = vsel %vm276_vm6, %v3629_v41, %v2368_v42  ;;  %v3559_v42 = vcombine.low %v1979_v57, %v1979_v57  ;;  %v1986_v57 = vld [vmem:[#allocation2 + $0x98] sm:$0x1e] }
 0x1f8   :  { %v4992_v14 = vpop.f32.mrb[17].mxu0  ;;  %v2594_v54 = vsel %vm2515_vm0, %v2577_v47, %v4978_v40  ;;  %v3569_v41 = vcombine.low %v1984_v26, %v1984_v26  ;;  %v3574_v3 = vcombine.high %v1986_v57, %v1986_v57 }
 0x1f9   :  { %v4994_v32 = vpop.f32.mrb[18].mxu0  ;;  %v1467_v23 = vor.u32 %v1466_v58, %v1463_v55  ;;  %v3583_v40 = vrot.slane %v3559_v42, 9  ;;  %v3585_v55 = vrot.slane %v3563_v20, 9  ;;  %v2109_v58 = vrot.slane %v3564_v60, 5 }
 0x1fa   :  { %v5000_v50 = vpop.f32.mrb[19].mxu0  ;;  %v3573_v42 = vcombine.low %v1986_v57, %v1986_v57 }
 0x1fb   :  { %v1468_v61 = vrot.slane %v1467_v23, 4  ;;  %v2102_v18 = vsel %vm4494_vm13, %v3583_v40, %v2101_v22  ;;  %v3587_v23 = vrot.slane %v3567_v13, 9  ;;  %v2110_v25 = vsel %vm4494_vm13, %v3585_v55, %v2109_v58 }
 0x1fc   :  { %v3590_v40 = vrot.slane %v3573_v42, 9  ;;  %v2129_v22 = vrot.slane %v3574_v3, 5 }
 0x1ff   :  { %v2208_v44 = vpop.permute.xlu1 %2207 }
 0x200   :  { %v2511_v45 = vsel %vm276_vm6, %v4245_v49, %v2208_v44  ;;  %v3568_v49 = vcombine.high %v1983_v24, %v1983_v24 }
 0x201   :  { %v5007_v11 = vpop.f32.mrb[20].mxu0  ;;  %v2529_v29 = vsel %vm2515_vm0, %v2511_v45, %v2248_v35  ;;  %v1982_v35 = vld [vmem:[#allocation2 + $0x78] sm:$0x1e] }
 0x202   :  { %v2462_v7 = vpop.permute.xlu0 %2461  ;;  %v5011_v4 = vpop.f32.mrb[21].mxu0  ;;  %v2552_v2 = vsel %vm2532_vm1, %v2529_v29, %v4988_v27  ;;  %v3565_v1 = vcombine.low %v1982_v35, %v1982_v35  ;;  %v3566_v43 = vcombine.high %v1982_v35, %v1982_v35 }
 0x203   :  { %v2613_v34 = vsel %vm2532_vm1, %v2592_v48, %v2462_v7  ;;  %v5014_v17 = vpop.f32.mrb[22].mxu0  ;;  %v2250_v53 = vpop.permute.xlu1 %2249  ;;  %v1458_v48 = vrot.slane %v1456_v10, 5  ;;  %v1472_v7 = vrot.slane %v1470_v56, 5  ;;  %v2117_v56 = vrot.slane %v3568_v49, 5 }
 0x204   :  { %2868 = vmatprep.mubr.bf16.mxu1 %v2613_v34  ;;  %v5018_v19 = vpop.f32.mrb[23].mxu0  ;;  %v2105_v34 = vrot.slane %v3562_v0, 5  ;;  %v3586_v29 = vrot.slane %v3565_v1, 9  ;;  %v2113_v51 = vrot.slane %v3566_v43, 5 }
 0x205   :  { %2869 = vmatmul.mubr.bf16.gmra.mrb[20].mxu1 %v2549_v46  ;;  %v1459_v46 = vsel %vm4505_vm14, %v1454_v5, %v1458_v48  ;;  %v1473_v27 = vsel %vm4505_vm14, %v1468_v61, %v1472_v7  ;;  %v2118_v59 = vsel %vm4494_vm13, %v3587_v23, %v2117_v56  ;;  %v4267_v5 = vld [vmem:[%s5167_s3] sm:$0xff]  }
 0x206   :  { %v2370_v36 = vpop.permute.xlu0 %2369  ;;  %v3630_v28 = vcombine.low %v1459_v46, %v1473_v27  ;;  %v2106_v33 = vsel %vm4494_vm13, %v3584_v8, %v2105_v34  ;;  %3987 = vmatprep.subr.bf16.mxu0 %v4267_v5  ;;  %v2130_v34 = vsel %vm4494_vm13, %v3590_v40, %v2129_v22  ;;  %v4268_v46 = vld [vmem:[%s5167_s3 + $0x8] sm:$0xff]  }
 0x207   :  { %v3659_v10 = vcombine.low %v2102_v18, %v2106_v33  ;;  %3988 = vmatpush3.bf16.msra.mxu0 %v4267_v5 }
 0x208   :  { %v2580_v31 = vsel %vm276_vm6, %v3630_v28, %v2370_v36  ;;  %v1985_v36 = vld [vmem:[#allocation2 + $0x90] sm:$0x1e]  ;;  %3989 = vmatprep.subr.bf16.mxu0 %v4268_v46 }
 0x20b   :  { %3990 = vmatpush3.bf16.msra.mxu0 %v4268_v46 }
 0x20f   :  { %v2210_v21 = vpop.permute.xlu1 %2209 }
 0x210   :  { %v2514_v39 = vsel %vm276_vm6, %v4250_v16, %v2210_v21 }
 0x211   :  { %v2531_v37 = vsel %vm2515_vm0, %v2514_v39, %v2250_v53  ;;  %v3571_v53 = vcombine.low %v1985_v36, %v1985_v36 }
 0x213   :  { %v2464_v52 = vpop.permute.xlu0 %2463  ;;  %v2306_v44 = vpop.permute.xlu1 %2305  ;;  %v3589_v61 = vrot.slane %v3571_v53, 9 }
 0x214   :  { %v2616_v30 = vsel %vm2532_vm1, %v2594_v54, %v2464_v52  ;;  %v2555_v47 = vsel %vm2532_vm1, %v2531_v37, %v2306_v44  ;;  %v3588_v52 = vrot.slane %v3569_v41, 9  ;;  %v2121_v54 = vrot.slane %v3570_v9, 5 }
 0x215   :  { %2876 = vmatprep.mubr.bf16.mxu1 %v2616_v30  ;;  %v2114_v30 = vsel %vm4494_vm13, %v3586_v29, %v2113_v51 }
 0x216   :  { %2877 = vmatmul.mubr.bf16.gmra.mrb[24].mxu1 %v2552_v2  ;;  %v3572_v2 = vcombine.high %v1985_v36, %v1985_v36  ;;  %v2122_v0 = vsel %vm4494_vm13, %v3588_v52, %v2121_v54  ;;  %v3660_v48 = vcombine.low %v2110_v25, %v2114_v30 }
 0x217   :  { %v2426_v63 = vpop.permute.xlu0 %2425  ;;  %v3661_v7 = vcombine.low %v2118_v59, %v2122_v0 }
 0x218   :  { %v2596_v38 = vsel %vm2515_vm0, %v2580_v31, %v2426_v63  ;;  %v2125_v21 = vrot.slane %v3572_v2, 5  ;;  %v5071_v63 = vld [vmem:[%s5169_s5] ss:$0 sm:$0xff] }
 0x21a   :  { %v2126_v8 = vsel %vm4494_vm13, %v3589_v61, %v2125_v21 }
 0x21b   :  { %v3662_v15 = vcombine.low %v2126_v8, %v2130_v34 }
 0x221   :  { %v2466_v62 = vpop.permute.xlu0 %2465 }
 0x222   :  { %v2619_v45 = vsel %vm2532_vm1, %v2596_v38, %v2466_v62 }
 0x223   :  { %2884 = vmatprep.mubr.bf16.mxu1 %v2619_v45 }
 0x224   :  { %2885 = vmatmul.mubr.bf16.gmra.mrb[28].mxu1 %v2555_v47 }
 0x225   :  { %3979 = vmatprep.mubr.msk.bf16.mxu1 %vm276_vm6, %v3659_v10 }
 0x22c   :  { %3980 = vmatmul.mubr.msk.bf16.vlgmr.msra.gmra.mrb[32].mxu1 %vm276_vm6, %v3660_v48 }
 0x22d   :  { %3983 = vmatprep.mubr.msk.bf16.mxu1 %vm276_vm6, %v3661_v7 }
 0x234   :  { %3984 = vmatmul.mubr.msk.bf16.gmra.mrb[36].mxu1 %vm276_vm6, %v3662_v15 }
 0x286   :  { %v3867_v27 = vpop.f32.mrb[0].mxu1 }
 0x287   :  { %v3868_v35 = vpop.f32.mrb[1].mxu1 }
 0x288   :  { %v3869_v24 = vadd.f32 %v3868_v35, %v3867_v27  ;;  %v3870_v16 = vpop.f32.mrb[2].mxu1 }
 0x289   :  { %v3871_v6 = vpop.f32.mrb[3].mxu1 }
 0x28a   :  { %v2831_v20 = vadd.f32 %v3869_v24, %v5071_v63  ;;  %v3872_v26 = vadd.f32 %v3871_v6, %v3870_v16 }
 0x28c   :  { %v2928_v28 = vadd.f32 %v4992_v14, %v2831_v20  ;;  %v2834_v18 = vadd.f32 %v3872_v26, %v5071_v63 }
 0x28e   :  { %v2931_v33 = vadd.f32 %v5000_v50, %v2834_v18  ;;  %v2990_v60 = vmax.f32 %v2928_v28, 0.0 }
 0x290   :  { %v2991_v39 = vmax.f32 %v2931_v33, 0.0 }
 0x292   :  { %v3006_v1 = vpack.c.bf16 %v2991_v39, %v2990_v60 }
 0x294   :  { %3991 = vmatprep.mubr.msk.bf16.mxu0 %vm276_vm6, %v3006_v1 }
 0x29c   :  { %v3873_v43 = vpop.f32.mrb[4].mxu1 }
 0x29d   :  { %v3874_v13 = vpop.f32.mrb[5].mxu1 }
 0x29e   :  { %v3875_v31 = vadd.f32 %v3874_v13, %v3873_v43  ;;  %v3876_v44 = vpop.f32.mrb[6].mxu1 }
 0x29f   :  { %v3877_v49 = vpop.f32.mrb[7].mxu1 }
 0x2a0   :  { %v2839_v41 = vadd.f32 %v3875_v31, %v5071_v63  ;;  %v3878_v9 = vadd.f32 %v3877_v49, %v3876_v44 }
 0x2a2   :  { %v2936_v38 = vadd.f32 %v4990_v12, %v2839_v41  ;;  %v2842_v14 = vadd.f32 %v3878_v9, %v5071_v63 }
 0x2a4   :  { %v2939_v62 = vadd.f32 %v4994_v32, %v2842_v14  ;;  %v2992_v50 = vmax.f32 %v2936_v38, 0.0 }
 0x2a6   :  { %v2993_v45 = vmax.f32 %v2939_v62, 0.0 }
 0x2a8   :  { %v3007_v37 = vpack.c.bf16 %v2993_v45, %v2992_v50 }
 0x2aa   :  { %3992 = vmatmul.mubr.msk.bf16.vlgmr.msra.gmra.mrb[24].mxu0 %vm276_vm6, %v3007_v37 }
 0x2af   :  { %v3879_v55 = vpop.f32.mrb[8].mxu1 }
 0x2b0   :  { %v3880_v58 = vpop.f32.mrb[9].mxu1 }
 0x2b1   :  { %v3881_v47 = vadd.f32 %v3880_v58, %v3879_v55  ;;  %v3882_v10 = vpop.f32.mrb[10].mxu1 }
 0x2b2   :  { %v3883_v29 = vpop.f32.mrb[11].mxu1 }
 0x2b3   :  { %v2847_v51 = vadd.f32 %v3881_v47, %v5071_v63  ;;  %v3884_v36 = vadd.f32 %v3883_v29, %v3882_v10 }
 0x2b5   :  { %v2944_v23 = vadd.f32 %v5011_v4, %v2847_v51  ;;  %v2850_v12 = vadd.f32 %v3884_v36, %v5071_v63 }
 0x2b7   :  { %v2947_v56 = vadd.f32 %v5018_v19, %v2850_v12  ;;  %v3885_v32 = vpop.f32.mrb[12].mxu1  ;;  %v2994_v54 = vmax.f32 %v2944_v23, 0.0 }
 0x2b8   :  { %v3886_v52 = vpop.f32.mrb[13].mxu1 }
 0x2b9   :  { %v2995_v57 = vmax.f32 %v2947_v56, 0.0  ;;  %v3887_v25 = vadd.f32 %v3886_v52, %v3885_v32  ;;  %v3888_v53 = vpop.f32.mrb[14].mxu1 }
 0x2ba   :  { %v3889_v30 = vpop.f32.mrb[15].mxu1 }
 0x2bb   :  { %v3008_v2 = vpack.c.bf16 %v2995_v57, %v2994_v54  ;;  %v2855_v42 = vadd.f32 %v3887_v25, %v5071_v63  ;;  %v3890_v3 = vadd.f32 %v3889_v30, %v3888_v53 }
 0x2bd   :  { %v2952_v59 = vadd.f32 %v5007_v11, %v2855_v42  ;;  %v2858_v0 = vadd.f32 %v3890_v3, %v5071_v63  ;;  %3995 = vmatprep.mubr.msk.bf16.mxu0 %vm276_vm6, %v3008_v2 }
 0x2bf   :  { %v2955_v4 = vadd.f32 %v5014_v17, %v2858_v0  ;;  %v2996_v19 = vmax.f32 %v2952_v59, 0.0 }
 0x2c1   :  { %v2997_v5 = vmax.f32 %v2955_v4, 0.0 }
 0x2c3   :  { %v3009_v48 = vpack.c.bf16 %v2997_v5, %v2996_v19  ;;  %v3821_v19 = vld [vmem:[%s5164_s0 + $0x8] sm:$0xff]   ;;  %v5114_v5 = vld [vmem:[%s5170_s6] ss:$0 sm:$0xff] }
 0x2c5   :  { %3996 = vmatmul.mubr.msk.bf16.gmra.mrb[28].mxu0 %vm276_vm6, %v3009_v48  ;;  %v3755_v48 = vunpack.c.l.bf16 %v3821_v19 }
 0x2c8   :  { %v3891_v61 = vpop.f32.mrb[16].mxu1 }
 0x2c9   :  { %v3892_v7 = vpop.f32.mrb[17].mxu1 }
 0x2ca   :  { %v3893_v21 = vadd.f32 %v3892_v7, %v3891_v61  ;;  %v3894_v40 = vpop.f32.mrb[18].mxu1 }
 0x2cb   :  { %v3895_v22 = vpop.f32.mrb[19].mxu1 }
 0x2cc   :  { %v3896_v8 = vadd.f32 %v3895_v22, %v3894_v40  ;;  %v2863_v31 = vadd.f32 %v3893_v21, %v5071_v63  ;;  %v3756_v22 = vunpack.c.h.bf16 %v3821_v19 }
 0x2ce   :  { %v2866_v14 = vadd.f32 %v3896_v8, %v5071_v63 }
 0x2d8   :  { %v3897_v34 = vpop.f32.mrb[20].mxu1 }
 0x2d9   :  { %v3898_v15 = vpop.f32.mrb[21].mxu1 }
 0x2da   :  { %v3899_v11 = vadd.f32 %v3898_v15, %v3897_v34  ;;  %v3900_v46 = vpop.f32.mrb[22].mxu1 }
 0x2db   :  { %v3901_v27 = vpop.f32.mrb[23].mxu1 }
 0x2dc   :  { %v3902_v35 = vadd.f32 %v3901_v27, %v3900_v46  ;;  %v2871_v43 = vadd.f32 %v3899_v11, %v5071_v63 }
 0x2de   :  { %v2874_v41 = vadd.f32 %v3902_v35, %v5071_v63 }
 0x2e9   :  { %v3903_v24 = vpop.f32.mrb[24].mxu1 }
 0x2ea   :  { %v3904_v16 = vpop.f32.mrb[25].mxu1 }
 0x2eb   :  { %v3905_v17 = vadd.f32 %v3904_v16, %v3903_v24  ;;  %v3906_v6 = vpop.f32.mrb[26].mxu1 }
 0x2ec   :  { %v3907_v20 = vpop.f32.mrb[27].mxu1 }
 0x2ed   :  { %v3908_v26 = vadd.f32 %v3907_v20, %v3906_v6  ;;  %v2879_v23 = vadd.f32 %v3905_v17, %v5071_v63 }
 0x2ef   :  { %v2882_v57 = vadd.f32 %v3908_v26, %v5071_v63 }
 0x2f7   :  { %v3909_v28 = vpop.f32.mrb[28].mxu1 }
 0x2f8   :  { %v3910_v18 = vpop.f32.mrb[29].mxu1 }
 0x2f9   :  { %v3911_v33 = vadd.f32 %v3910_v18, %v3909_v28  ;;  %v3912_v60 = vpop.f32.mrb[30].mxu1 }
 0x2fa   :  { %v3913_v39 = vpop.f32.mrb[31].mxu1 }
 0x2fb   :  { %v3914_v1 = vadd.f32 %v3913_v39, %v3912_v60  ;;  %v2887_v29 = vadd.f32 %v3911_v33, %v5071_v63  ;;  %v3823_v60 = vld [vmem:[%s5164_s0 + $0x18] sm:$0xff]   ;;  %v3822_v39 = vld [vmem:[%s5164_s0 + $0x10] sm:$0xff]  }
 0x2fd   :  { %v2890_v32 = vadd.f32 %v3914_v1, %v5071_v63  ;;  %v3750_v63 = vld [vmem:[%s5164_s0] sm:$0xff]   ;;  %v3763_v1 = vunpack.c.l.bf16 %v3823_v60 }
 0x2fe   :  { %v3751_v7 = vunpack.c.l.bf16 %v3750_v63  ;;  %v3752_v15 = vunpack.c.h.bf16 %v3750_v63  ;;  %v3827_v63 = vld [vmem:[%s5164_s0 + $0x38] sm:$0xff]  }
 0x2ff   :  { %v3981_v13 = vpop.f32.mrb[32].mxu1 }
 0x300   :  { %v2968_v44 = vadd.f32 %v3981_v13, %v2871_v43  ;;  %v2959_v49 = vpop.f32.mrb[33].mxu1  ;;  %v3759_v13 = vunpack.c.l.bf16 %v3822_v39 }
 0x301   :  { %v2960_v9 = vadd.f32 %v2959_v49, %v2863_v31  ;;  %v3982_v38 = vpop.f32.mrb[34].mxu1  ;;  %v3764_v49 = vunpack.c.h.bf16 %v3823_v60 }
 0x302   :  { %v2971_v62 = vadd.f32 %v3982_v38, %v2874_v41  ;;  %v2962_v50 = vpop.f32.mrb[35].mxu1  ;;  %v3000_v37 = vmax.f32 %v2968_v44, 0.0  ;;  %v3760_v38 = vunpack.c.h.bf16 %v3822_v39 }
 0x303   :  { %v2963_v45 = vadd.f32 %v2962_v50, %v2866_v14  ;;  %v2998_v58 = vmax.f32 %v2960_v9, 0.0 }
 0x304   :  { %v3001_v55 = vmax.f32 %v2971_v62, 0.0 }
 0x305   :  { %v2999_v47 = vmax.f32 %v2963_v45, 0.0 }
 0x306   :  { %v3011_v10 = vpack.c.bf16 %v3001_v55, %v3000_v37 }
 0x307   :  { %v3010_v51 = vpack.c.bf16 %v2999_v47, %v2998_v58  ;;  %v3985_v36 = vpop.f32.mrb[36].mxu1 }
 0x308   :  { %v2984_v12 = vadd.f32 %v3985_v36, %v2887_v29  ;;  %v2975_v56 = vpop.f32.mrb[37].mxu1 }
 0x309   :  { %v2976_v52 = vadd.f32 %v2975_v56, %v2879_v23  ;;  %v3986_v54 = vpop.f32.mrb[38].mxu1  ;;  %3999 = vmatprep.mubr.msk.bf16.mxu0 %vm276_vm6, %v3010_v51  ;;  %v3824_v56 = vld [vmem:[%s5164_s0 + $0x20] sm:$0xff]  }
 0x30a   :  { %v2987_v25 = vadd.f32 %v3986_v54, %v2890_v32  ;;  %v2978_v53 = vpop.f32.mrb[39].mxu1  ;;  %4000 = vmatmul.mubr.msk.bf16.gmra.mrb[32].mxu0 %vm276_vm6, %v3011_v10  ;;  %v3004_v2 = vmax.f32 %v2984_v12, 0.0  ;;  %v3825_v12 = vld [vmem:[%s5164_s0 + $0x28] sm:$0xff]   ;;  %v3767_v54 = vunpack.c.l.bf16 %v3824_v56 }
 0x30b   :  { %v2979_v30 = vadd.f32 %v2978_v53, %v2882_v57  ;;  %v3002_v3 = vmax.f32 %v2976_v52, 0.0  ;;  %v3771_v32 = vunpack.c.l.bf16 %v3825_v12  ;;  %v3772_v53 = vunpack.c.h.bf16 %v3825_v12 }
 0x30c   :  { %v3005_v42 = vmax.f32 %v2987_v25, 0.0 }
 0x30d   :  { %v3003_v59 = vmax.f32 %v2979_v30, 0.0 }
 0x30e   :  { %v3013_v0 = vpack.c.bf16 %v3005_v42, %v3004_v2  ;;  %v3768_v42 = vunpack.c.h.bf16 %v3824_v56 }
 0x30f   :  { %v3012_v4 = vpack.c.bf16 %v3003_v59, %v3002_v3 }
 0x311   :  { %4003 = vmatprep.mubr.msk.bf16.mxu0 %vm276_vm6, %v3012_v4 }
 0x312   :  { %4004 = vmatmul.mubr.msk.bf16.gmra.mrb[36].mxu0 %vm276_vm6, %v3013_v0 }
 0x37d   :  { %v3993_v61 = vpop.f32.mrb[24].mxu0 }
 0x37e   :  { %v3104_v21 = vadd.f32 %v3993_v61, %v5114_v5  ;;  %v3095_v40 = vpop.f32.mrb[25].mxu0  ;;  %v3826_v61 = vld [vmem:[%s5164_s0 + $0x30] sm:$0xff]   ;;  %s4299_s0 = smov [#allocation3]  }
 0x37f   :  { %v3096_v8 = vadd.f32 %v5114_v5, %v3095_v40  ;;  %v3994_v34 = vpop.f32.mrb[26].mxu0  ;;  %s3307_s26 = sshll.u32 %s4299_s0, 4  ;;  %s3308_s26 = int_to_ptr.vmem [resolvable:$true] %s3307_s26 }
 0x380   :  { %v3192_v11 = vadd.f32 %v3755_v48, %v3104_v21  ;;  %v3107_v46 = vadd.f32 %v3994_v34, %v5114_v5  ;;  %v3098_v27 = vpop.f32.mrb[27].mxu0  ;;  %s4271_s27 = scalar_lea.vmem %s3308_s26, 1024  ;;  %p4276_p1 = scmp.lt.s32.totalorder %s3308_s26, %s3308_s26 }
 0x381   :  { %v3190_v35 = vadd.f32 %v3751_v7, %v3096_v8  ;;  %v3099_v24 = vadd.f32 %v5114_v5, %v3098_v27  ;;  %p4272_p0 = scmp.ne.s32.totalorder %s3308_s26, %s4271_s27  ;;  %p4277_p2 = scmp.lt.s32.totalorder %s4271_s27, %s4271_s27 }
 0x382   :  { %v3193_v16 = vadd.f32 %v3756_v22, %v3107_v46  ;;  %v3208_v6 = vmax.f32 %v3192_v11, 0.0  ;;  %v3779_v22 = vunpack.c.l.bf16 %v3827_v63  ;;  %v3775_v11 = vunpack.c.l.bf16 %v3826_v61 }
 0x383   :  { %v3191_v17 = vadd.f32 %v3752_v15, %v3099_v24  ;;  %v3206_v26 = vmax.f32 %v3190_v35, 0.0  ;;  %v3780_v24 = vunpack.c.h.bf16 %v3827_v63  ;;  %p4278_p3 = por %p4277_p2, %p4276_p1 }
 0x384   :  { %v3209_v20 = vmax.f32 %v3193_v16, 0.0 }
 0x385   :  { %v3207_v28 = vmax.f32 %v3191_v17, 0.0  ;;  %p4279_p4 = pnand %p4278_p3, %p4272_p0 }
 0x386   :  { %v3789_v18 = vpack.c.bf16 %v3209_v20, %v3208_v6  ;;  %v3776_v20 = vunpack.c.h.bf16 %v3826_v61 }
 0x387   :  { %v3784_v33 = vpack.c.bf16 %v3207_v28, %v3206_v26 }
 0x388   :  { %3828 = vst [vmem:[#allocation3 + $0x8] sm:$0xff] %v3789_v18  }
 0x389   :  { %3785 = vst [vmem:[#allocation3] sm:$0xff] %v3784_v33  }
 0x398   :  { %v3997_v43 = vpop.f32.mrb[28].mxu0 }
 0x399   :  { %v3120_v31 = vadd.f32 %v3997_v43, %v5114_v5  ;;  %v3111_v44 = vpop.f32.mrb[29].mxu0 }
 0x39a   :  { %v3112_v41 = vadd.f32 %v5114_v5, %v3111_v44  ;;  %v3998_v9 = vpop.f32.mrb[30].mxu0 }
 0x39b   :  { %v3196_v14 = vadd.f32 %v3763_v1, %v3120_v31  ;;  %v3123_v62 = vadd.f32 %v3998_v9, %v5114_v5  ;;  %v3114_v50 = vpop.f32.mrb[31].mxu0 }
 0x39c   :  { %v3194_v45 = vadd.f32 %v3759_v13, %v3112_v41  ;;  %v3115_v37 = vadd.f32 %v5114_v5, %v3114_v50 }
 0x39d   :  { %v3197_v55 = vadd.f32 %v3764_v49, %v3123_v62  ;;  %v3212_v47 = vmax.f32 %v3196_v14, 0.0 }
 0x39e   :  { %v3195_v58 = vadd.f32 %v3760_v38, %v3115_v37  ;;  %v3210_v29 = vmax.f32 %v3194_v45, 0.0 }
 0x39f   :  { %v3213_v10 = vmax.f32 %v3197_v55, 0.0 }
 0x3a0   :  { %v3211_v51 = vmax.f32 %v3195_v58, 0.0 }
 0x3a1   :  { %v3799_v36 = vpack.c.bf16 %v3213_v10, %v3212_v47 }
 0x3a2   :  { %v3794_v23 = vpack.c.bf16 %v3211_v51, %v3210_v29 }
 0x3a3   :  { %3830 = vst [vmem:[#allocation3 + $0x18] sm:$0xff] %v3799_v36  }
 0x3a4   :  { %3829 = vst [vmem:[#allocation3 + $0x10] sm:$0xff] %v3794_v23  }
 0x3dd   :  { %v4001_v52 = vpop.f32.mrb[32].mxu0 }
 0x3de   :  { %v3136_v57 = vadd.f32 %v4001_v52, %v5114_v5  ;;  %v3127_v25 = vpop.f32.mrb[33].mxu0 }
 0x3df   :  { %v3128_v30 = vadd.f32 %v5114_v5, %v3127_v25  ;;  %v4002_v2 = vpop.f32.mrb[34].mxu0 }
 0x3e0   :  { %v3200_v3 = vadd.f32 %v3771_v32, %v3136_v57  ;;  %v3139_v59 = vadd.f32 %v4002_v2, %v5114_v5  ;;  %v3130_v0 = vpop.f32.mrb[35].mxu0 }
 0x3e1   :  { %v3198_v4 = vadd.f32 %v3767_v54, %v3128_v30  ;;  %v3131_v19 = vadd.f32 %v5114_v5, %v3130_v0 }
 0x3e2   :  { %v3201_v48 = vadd.f32 %v3772_v53, %v3139_v59  ;;  %v3216_v21 = vmax.f32 %v3200_v3, 0.0 }
 0x3e3   :  { %v3199_v7 = vadd.f32 %v3768_v42, %v3131_v19  ;;  %v3214_v8 = vmax.f32 %v3198_v4, 0.0 }
 0x3e4   :  { %v3217_v40 = vmax.f32 %v3201_v48, 0.0 }
 0x3e5   :  { %v3215_v34 = vmax.f32 %v3199_v7, 0.0  ;;  %v4005_v15 = vpop.f32.mrb[36].mxu0 }
 0x3e6   :  { %v3809_v46 = vpack.c.bf16 %v3217_v40, %v3216_v21  ;;  %v3152_v27 = vadd.f32 %v4005_v15, %v5114_v5  ;;  %v3143_v35 = vpop.f32.mrb[37].mxu0 }
 0x3e7   :  { %v3804_v16 = vpack.c.bf16 %v3215_v34, %v3214_v8  ;;  %v3144_v17 = vadd.f32 %v5114_v5, %v3143_v35  ;;  %v4006_v6 = vpop.f32.mrb[38].mxu0 }
 0x3e8   :  { %3832 = vst [vmem:[#allocation3 + $0x28] sm:$0xff] %v3809_v46   ;;  %v3204_v26 = vadd.f32 %v3779_v22, %v3152_v27  ;;  %v3155_v28 = vadd.f32 %v4006_v6, %v5114_v5  ;;  %v3146_v18 = vpop.f32.mrb[39].mxu0 }
 0x3e9   :  { %3831 = vst [vmem:[#allocation3 + $0x20] sm:$0xff] %v3804_v16   ;;  %v3202_v33 = vadd.f32 %v3775_v11, %v3144_v17  ;;  %v3147_v60 = vadd.f32 %v5114_v5, %v3146_v18 }
 0x3ea   :  { %v3205_v39 = vadd.f32 %v3780_v24, %v3155_v28  ;;  %v3220_v43 = vmax.f32 %v3204_v26, 0.0 }
 0x3eb   :  { %v3203_v1 = vadd.f32 %v3776_v20, %v3147_v60  ;;  %v3218_v31 = vmax.f32 %v3202_v33, 0.0 }
 0x3ec   :  { %v3221_v13 = vmax.f32 %v3205_v39, 0.0 }
 0x3ed   :  { %v3219_v44 = vmax.f32 %v3203_v1, 0.0 }
 0x3ee   :  { %v3819_v49 = vpack.c.bf16 %v3221_v13, %v3220_v43 }
 0x3ef   :  { %v3814_v41 = vpack.c.bf16 %v3219_v44, %v3218_v31 }
 0x3f0   :  { %3834 = vst [vmem:[#allocation3 + $0x38] sm:$0xff] %v3819_v49  }
 0x3f1   :  { %3833 = vst [vmem:[#allocation3 + $0x30] sm:$0xff] %v3814_v41  }
 0x3f2   :  { %4282 = shalt.err (!%p4279_p4)
}
 0x3f3   :  { %s4283_s2 = scalar_lea.hbm %s5171_s7, 1024 }
 0x3f4   :  { %p4284_p5 = scmp.ne.s32.totalorder %s5171_s7, %s4283_s2  ;;  %p4287_p6 = scmp.lt.u32.totalorder %s4283_s2, %s5171_s7 }
 0x3f6   :  { %p4289_p7 = pnand %p4287_p6, %p4284_p5 }
 0x3f8   :  { %4292 = shalt.err (!%p4289_p7)
}
 0x3f9   :  { %s4300_s9 = smov 4  }
 0x3fa   :  { %3313 = dma.vmem_to_hbm [thread:$0]  %s3308_s26, 1024, %s5171_s7, [#allocation4], %s4297_s15, %s4297_s15, %s4300_s9  }
 0x3fb   :  { %4293 = dma.done.wait [#allocation4], 1024  }
 0x3fc   :  { %4294 = vsyncadd [#allocation4], 4294966272 }
 0x3fd   :  { %3317 = vsyncpa [#allocation4], 1 }

</bundles_post_ra>
